<compile_context>
chip_gen: v7x
topology: tpu7x:2x2x1
jax: 0.10.0
libtpu: 0.0.40
codegen_flags: <defaults>
</compile_context>

<pallas_src>
import functools

import jax
import jax.numpy as jnp
from jax.experimental import pallas as pl
from jax.experimental.pallas import tpu as pltpu

LANE = 128          # lane width; all channel / class dims are padded to this
NCLS = 10           # real number of classes
CIN, C1, C2 = 4, 8, 16   # real channel counts of the synthetic backbone


# ---------------------------------------------------------------------------
# Fused kernel: conv1 -> EE1 -> conv2 -> [EE2 | final], one image per step.
# ---------------------------------------------------------------------------

def _early_exit_fused_kernel(x1p_ref, w1_ref, b1_ref, ee1w_ref, ee1b_ref,
                             w2_ref, b2_ref, hdw_ref, hdb_ref,
                             ee1_out_ref, heads_out_ref, patches_ref,
                             *, h, w, c1):
    """x1p_ref : (1, H*W, 128) bf16  tap-packed conv1 patches (K = 9*cin padded)
       w1_ref  : (128, 128)    bf16  conv1 weight, rows = packed K
       w2_ref  : (128, 128)    bf16  conv2 weight, rows = packed K (9*c1)
       b*_ref  : (1, 128)      f32   conv biases
       ee1w/b  : (128,128)/(1,128) f32   early-exit ramp 1 head
       hdw/b   : (128,256)/(1,256) f32   [EE ramp 2 | final] concatenated head
       outs    : (1,1,128) f32 ee1 logits ; (1,1,256) f32 [ee2 | final] logits
       patches_ref : (H*W, 128) f32 VMEM scratch for conv2 packed patches
    """
    hw = h * w
    inv_hw = 1.0 / hw

    # ---- conv1 + ReLU: single tap-packed matmul (real K = 9*cin) ----------
    f1 = jnp.dot(x1p_ref[0], w1_ref[...], preferred_element_type=jnp.float32)
    f1 = jnp.maximum(f1 + b1_ref[...], 0.0)          # (HW, 128) f32, real [:c1]

    # ---- early-exit ramp 1: GAP + linear (f32) ----------------------------
    pooled1 = jnp.sum(f1, axis=0, keepdims=True) * inv_hw        # (1, 128)
    ee1_out_ref[0] = (jnp.dot(pooled1, ee1w_ref[...],
                              preferred_element_type=jnp.float32)
                      + ee1b_ref[...])

    # ---- build conv2 tap-packed patches in VMEM (f1 never leaves chip) ----
    # Flattened-row trick: zero-pad f1 with `pad_rows` rows on each side; the
    # 3x3 tap (sh, sw) is then a contiguous row window starting at
    # pad_rows + sh*W + sw.  Vertical out-of-range reads fall into the zero
    # pad; horizontal ones wrap to the neighbouring spatial row and are
    # masked with the per-pixel column index.
    patches_ref[...] = jnp.zeros_like(patches_ref)   # also clears lanes >= 9*c1
    pad_rows = ((w + 1 + 7) // 8) * 8                # sublane-aligned zero pad
    zpad = jnp.zeros((pad_rows, c1), jnp.float32)
    f1pad = jnp.concatenate([zpad, f1[:, :c1], zpad], axis=0)
    w_idx = jax.lax.broadcasted_iota(jnp.int32, (hw, c1), 0) % w

    t = 0
    for sh in (-1, 0, 1):
        for sw in (-1, 0, 1):
            start = pad_rows + sh * w + sw
            s = f1pad[start:start + hw, :]           # (HW, c1) shifted window
            if sw == -1:
                s = jnp.where(w_idx >= 1, s, 0.0)
            elif sw == 1:
                s = jnp.where(w_idx <= w - 2, s, 0.0)
            patches_ref[:, t * c1:(t + 1) * c1] = s
            t += 1

    # ---- conv2 + ReLU: single tap-packed matmul (real K = 9*c1) -----------
    f2 = jnp.dot(patches_ref[...].astype(jnp.bfloat16), w2_ref[...],
                 preferred_element_type=jnp.float32)
    f2 = jnp.maximum(f2 + b2_ref[...], 0.0)          # (HW, 128) f32, real [:c2]

    # ---- fused [EE ramp 2 | final] head: shared GAP, one linear -----------
    pooled2 = jnp.sum(f2, axis=0, keepdims=True) * inv_hw        # (1, 128)
    heads_out_ref[0] = (jnp.dot(pooled2, hdw_ref[...],
                                preferred_element_type=jnp.float32)
                        + hdb_ref[...])


def _fused_forward(pp, x1p, *, h, w):
    B, hw, _ = x1p.shape
    kernel = functools.partial(_early_exit_fused_kernel, h=h, w=w, c1=C1)
    return pl.pallas_call(
        kernel,
        out_shape=(jax.ShapeDtypeStruct((B, 1, LANE), jnp.float32),
                   jax.ShapeDtypeStruct((B, 1, 2 * LANE), jnp.float32)),
        grid_spec=pltpu.PrefetchScalarGridSpec(
            num_scalar_prefetch=0,
            grid=(B,),
            in_specs=[
                pl.BlockSpec((1, hw, LANE), lambda b: (b, 0, 0)),   # x patches
                pl.BlockSpec((LANE, LANE), lambda b: (0, 0)),       # w1
                pl.BlockSpec((1, LANE), lambda b: (0, 0)),          # b1
                pl.BlockSpec((LANE, LANE), lambda b: (0, 0)),       # ee1_w
                pl.BlockSpec((1, LANE), lambda b: (0, 0)),          # ee1_b
                pl.BlockSpec((LANE, LANE), lambda b: (0, 0)),       # w2
                pl.BlockSpec((1, LANE), lambda b: (0, 0)),          # b2
                pl.BlockSpec((LANE, 2 * LANE), lambda b: (0, 0)),   # heads_w
                pl.BlockSpec((1, 2 * LANE), lambda b: (0, 0)),      # heads_b
            ],
            out_specs=(pl.BlockSpec((1, 1, LANE), lambda b: (b, 0, 0)),
                       pl.BlockSpec((1, 1, 2 * LANE), lambda b: (b, 0, 0))),
            scratch_shapes=[pltpu.VMEM((hw, LANE), jnp.float32)],
        ),
        compiler_params=pltpu.CompilerParams(
            dimension_semantics=("parallel",)),
    )(x1p, pp["w1"], pp["b1"], pp["ee1_w"], pp["ee1_b"],
      pp["w2"], pp["b2"], pp["heads_w"], pp["heads_b"])


# ---------------------------------------------------------------------------
# Parameters (same synthetic backbone as before) + tap-packed / padded packing
# ---------------------------------------------------------------------------

def init_params(key, cin=CIN, c1=C1, c2=C2, ncls=NCLS):
    ks = jax.random.split(key, 10)
    s = 0.1
    return {
        "conv1_w": s * jax.random.normal(ks[0], (3, 3, cin, c1), jnp.float32),
        "conv1_b": s * jax.random.normal(ks[1], (c1,), jnp.float32),
        "conv2_w": s * jax.random.normal(ks[2], (3, 3, c1, c2), jnp.float32),
        "conv2_b": s * jax.random.normal(ks[3], (c2,), jnp.float32),
        # early-exit ramp 1 (after conv1)
        "ee1_w": s * jax.random.normal(ks[4], (c1, ncls), jnp.float32),
        "ee1_b": s * jax.random.normal(ks[5], (ncls,), jnp.float32),
        # early-exit ramp 2 (after conv2)
        "ee2_w": s * jax.random.normal(ks[6], (c2, ncls), jnp.float32),
        "ee2_b": s * jax.random.normal(ks[7], (ncls,), jnp.float32),
        # final head
        "head_w": s * jax.random.normal(ks[8], (c2, ncls), jnp.float32),
        "head_b": s * jax.random.normal(ks[9], (ncls,), jnp.float32),
    }


def pad_params(p):
    """Conv weights tap-packed along the contraction dim ((3,3,ci,co) ->
    (9*ci, co)) and zero-padded to (128,128) bf16; biases/heads zero-padded to
    128 lanes (f32); ee2 + final head concatenated into one (128, 256) weight."""

    def pack_conv(wc):                            # (3,3,ci,co) -> (128,128) bf16
        kh, kw, ci, co = wc.shape
        w2d = wc.reshape(kh * kw * ci, co)
        out = jnp.zeros((LANE, LANE), jnp.float32).at[:kh * kw * ci, :co].set(w2d)
        return out.astype(jnp.bfloat16)

    def pad_bias(b):                              # (n,) -> (1, 128) f32
        return jnp.zeros((1, LANE), jnp.float32).at[0, :b.shape[0]].set(b)

    def pad_head(wh):                             # (ci, ncls) -> (128, 128) f32
        ci, co = wh.shape
        return jnp.zeros((LANE, LANE), jnp.float32).at[:ci, :co].set(wh)

    heads_w = jnp.concatenate([pad_head(p["ee2_w"]), pad_head(p["head_w"])], axis=1)
    heads_b = jnp.concatenate([pad_bias(p["ee2_b"]), pad_bias(p["head_b"])], axis=1)
    return {
        "w1": pack_conv(p["conv1_w"]), "b1": pad_bias(p["conv1_b"]),
        "w2": pack_conv(p["conv2_w"]), "b2": pad_bias(p["conv2_b"]),
        "ee1_w": pad_head(p["ee1_w"]), "ee1_b": pad_bias(p["ee1_b"]),
        "heads_w": heads_w, "heads_b": heads_b,   # (128, 256), (1, 256)
    }


# ---------------------------------------------------------------------------
# EarlyExitModel forward: backbone + statically attached ramps
# ---------------------------------------------------------------------------

def early_exit_forward(pp, x_nchw):
    """Mirrors EarlyExitModel.forward: returns (final_output, ee_outputs)."""
    B, cin, h, w = x_nchw.shape
    hw = h * w

    # NCHW->NHWC + 3x3 im2col (tap-packed K = 9*cin) + lane pad to 128 + bf16
    # cast: one small XLA input-prep fusion feeding the single fused kernel.
    x_nhwc = jnp.transpose(x_nchw, (0, 2, 3, 1))
    xp = jnp.pad(x_nhwc, ((0, 0), (1, 1), (1, 1), (0, 0)))
    pats = jnp.concatenate(
        [xp[:, dh:dh + h, dw:dw + w, :] for dh in range(3) for dw in range(3)],
        axis=-1).reshape(B, hw, 9 * cin).astype(jnp.bfloat16)
    x1p = jnp.zeros((B, hw, LANE), jnp.bfloat16).at[:, :, :9 * cin].set(pats)

    ee1_p, heads_p = _fused_forward(pp, x1p, h=h, w=w)

    ee1 = ee1_p[:, 0, :NCLS]
    ee2 = heads_p[:, 0, :NCLS]
    final = heads_p[:, 0, LANE:LANE + NCLS]
    return final, [ee1, ee2]


# ---------------------------------------------------------------------------
# Pure-JAX f32 reference (same math as the original implementation)
# ---------------------------------------------------------------------------

def reference_forward(params, x_nchw):
    x = jnp.transpose(x_nchw, (0, 2, 3, 1))

    def conv3x3_relu(x, w, b):
        B, H, W, cin = x.shape
        xp = jnp.pad(x, ((0, 0), (1, 1), (1, 1), (0, 0)))
        pats = jnp.concatenate(
            [xp[:, dh:dh + H, dw:dw + W, :] for dh in range(3) for dw in range(3)],
            axis=-1)
        out = pats.reshape(B * H * W, 9 * cin) @ w.reshape(9 * cin, -1) + b
        return jnp.maximum(out, 0.0).reshape(B, H, W, -1)

    def head(f, w, b):
        return f.mean(axis=(1, 2)) @ w + b

    f1 = conv3x3_relu(x, params["conv1_w"], params["conv1_b"])
    ee1 = head(f1, params["ee1_w"], params["ee1_b"])
    f2 = conv3x3_relu(f1, params["conv2_w"], params["conv2_b"])
    ee2 = head(f2, params["ee2_w"], params["ee2_b"])
    final = head(f2, params["head_w"], params["head_b"])
    return final, [ee1, ee2]


if __name__ == "__main__":
    key = jax.random.PRNGKey(0)
    k_param, k_x = jax.random.split(key)
    params = init_params(k_param)
    pp = pad_params(params)

    # Input in PyTorch NCHW convention: [batch=2, channels=4, H=16, W=16]
    x = jax.random.normal(k_x, (2, 4, 16, 16), jnp.float32)

    final, ee_outputs = jax.jit(early_exit_forward)(pp, x)
    jax.block_until_ready(final)
    for o in ee_outputs:
        jax.block_until_ready(o)

    assert final.shape == (2, NCLS)
    assert len(ee_outputs) == 2
    assert ee_outputs[0].shape == (2, NCLS) and ee_outputs[1].shape == (2, NCLS)

    # Numerical sanity check vs. pure-JAX f32 reference (loose tol: bf16 acts).
    ref_final, ref_ee = reference_forward(params, x)
    assert jnp.allclose(final, ref_final, atol=2e-2, rtol=2e-2)
    assert jnp.allclose(ee_outputs[0], ref_ee[0], atol=2e-2, rtol=2e-2)
    assert jnp.allclose(ee_outputs[1], ref_ee[1], atol=2e-2, rtol=2e-2)

    print("KERNEL_OK")
</pallas_src>

<mosaic_0001>
module attributes {stable_mosaic.version = 11 : i64} {
  func.func @_early_exit_fused_kernel(%arg0: i32, %arg1: memref<1x256x128xbf16, #tpu.memory_space<vmem>>, %arg2: memref<128x128xbf16, #tpu.memory_space<vmem>>, %arg3: memref<1x128xf32, #tpu.memory_space<vmem>>, %arg4: memref<128x128xf32, #tpu.memory_space<vmem>>, %arg5: memref<1x128xf32, #tpu.memory_space<vmem>>, %arg6: memref<128x128xbf16, #tpu.memory_space<vmem>>, %arg7: memref<1x128xf32, #tpu.memory_space<vmem>>, %arg8: memref<128x256xf32, #tpu.memory_space<vmem>>, %arg9: memref<1x256xf32, #tpu.memory_space<vmem>>, %arg10: memref<1x1x128xf32, #tpu.memory_space<vmem>>, %arg11: memref<1x1x256xf32, #tpu.memory_space<vmem>>, %arg12: memref<256x128xf32, #tpu.memory_space<vmem>>) attributes {dimension_semantics = [#tpu.dimension_semantics<parallel>], iteration_bounds = array<i64: 2>, scalar_prefetch = 0 : i64, scratch_operands = 1 : i64, tpu.core_type = #tpu.core_type<tc>, window_params = [{transform_indices = @transform_0, window_bounds = array<i64: 1, 256, 128>}, {pipeline_mode = #tpu.pipeline_mode<synchronous>, transform_indices = @transform_1, window_bounds = array<i64: 128, 128>}, {pipeline_mode = #tpu.pipeline_mode<synchronous>, transform_indices = @transform_2, window_bounds = array<i64: 1, 128>}, {pipeline_mode = #tpu.pipeline_mode<synchronous>, transform_indices = @transform_3, window_bounds = array<i64: 128, 128>}, {pipeline_mode = #tpu.pipeline_mode<synchronous>, transform_indices = @transform_4, window_bounds = array<i64: 1, 128>}, {pipeline_mode = #tpu.pipeline_mode<synchronous>, transform_indices = @transform_5, window_bounds = array<i64: 128, 128>}, {pipeline_mode = #tpu.pipeline_mode<synchronous>, transform_indices = @transform_6, window_bounds = array<i64: 1, 128>}, {pipeline_mode = #tpu.pipeline_mode<synchronous>, transform_indices = @transform_7, window_bounds = array<i64: 128, 256>}, {pipeline_mode = #tpu.pipeline_mode<synchronous>, transform_indices = @transform_8, window_bounds = array<i64: 1, 256>}, {transform_indices = @transform_9, window_bounds = array<i64: 1, 1, 128>}, {transform_indices = @transform_10, window_bounds = array<i64: 1, 1, 256>}]} {
    %c0 = arith.constant 0 : index
    %c0_0 = arith.constant 0 : index
    %c0_1 = arith.constant 0 : index
    %0 = vector.load %arg1[%c0, %c0_0, %c0_1] : memref<1x256x128xbf16, #tpu.memory_space<vmem>>, vector<1x256x128xbf16>
    %1 = vector.shape_cast %0 : vector<1x256x128xbf16> to vector<256x128xbf16>
    %c0_2 = arith.constant 0 : index
    %c0_3 = arith.constant 0 : index
    %2 = vector.load %arg2[%c0_2, %c0_3] : memref<128x128xbf16, #tpu.memory_space<vmem>>, vector<128x128xbf16>
    %cst = arith.constant dense<0.000000e+00> : vector<256x128xf32>
    %3 = tpu.matmul %1, %2, %cst {dimension_numbers = #tpu.dot_dimension_numbers<[1], [0], [0], [1], [0, 0, 1, 1], [], []>} : vector<256x128xbf16>, vector<128x128xbf16>, vector<256x128xf32> -> vector<256x128xf32>
    %c0_4 = arith.constant 0 : index
    %c0_5 = arith.constant 0 : index
    %4 = vector.load %arg3[%c0_4, %c0_5] : memref<1x128xf32, #tpu.memory_space<vmem>>, vector<1x128xf32>
    %5 = vector.broadcast %4 : vector<1x128xf32> to vector<256x128xf32>
    %6 = arith.addf %3, %5 : vector<256x128xf32>
    %cst_6 = arith.constant 0.000000e+00 : f32
    %7 = vector.broadcast %cst_6 : f32 to vector<256x128xf32>
    %8 = arith.maximumf %6, %7 : vector<256x128xf32>
    %cst_7 = arith.constant dense<0.000000e+00> : vector<128xf32>
    %9 = vector.multi_reduction <add>, %8, %cst_7 [0] : vector<256x128xf32> to vector<128xf32>
    %10 = vector.shape_cast %9 : vector<128xf32> to vector<1x128xf32>
    %cst_8 = arith.constant 3.906250e-03 : f32
    %11 = vector.broadcast %cst_8 : f32 to vector<1x128xf32>
    %12 = arith.mulf %10, %11 : vector<1x128xf32>
    %c0_9 = arith.constant 0 : index
    %c0_10 = arith.constant 0 : index
    %13 = vector.load %arg4[%c0_9, %c0_10] : memref<128x128xf32, #tpu.memory_space<vmem>>, vector<128x128xf32>
    %cst_11 = arith.constant dense<0.000000e+00> : vector<1x128xf32>
    %14 = tpu.matmul %12, %13, %cst_11 {dimension_numbers = #tpu.dot_dimension_numbers<[1], [0], [0], [1], [0, 0, 1, 1], [], []>} : vector<1x128xf32>, vector<128x128xf32>, vector<1x128xf32> -> vector<1x128xf32>
    %c0_12 = arith.constant 0 : index
    %c0_13 = arith.constant 0 : index
    %15 = vector.load %arg5[%c0_12, %c0_13] : memref<1x128xf32, #tpu.memory_space<vmem>>, vector<1x128xf32>
    %16 = arith.addf %14, %15 : vector<1x128xf32>
    %c0_14 = arith.constant 0 : index
    %c0_15 = arith.constant 0 : index
    %c0_16 = arith.constant 0 : index
    %17 = vector.load %arg10[%c0_14, %c0_15, %c0_16] : memref<1x1x128xf32, #tpu.memory_space<vmem>>, vector<1x1x128xf32>
    %18 = vector.shape_cast %17 : vector<1x1x128xf32> to vector<1x128xf32>
    %19 = vector.shape_cast %16 : vector<1x128xf32> to vector<1x1x128xf32>
    tpu.vector_store %arg10[%c0_14, %c0_15, %c0_16], %19 {strides = array<i32>} : memref<1x1x128xf32, #tpu.memory_space<vmem>>, vector<1x1x128xf32>,
    %cst_17 = arith.constant 0.000000e+00 : f32
    %20 = vector.broadcast %cst_17 : f32 to vector<256x128xf32>
    %c0_18 = arith.constant 0 : index
    %c0_19 = arith.constant 0 : index
    %21 = vector.load %arg12[%c0_18, %c0_19] : memref<256x128xf32, #tpu.memory_space<vmem>>, vector<256x128xf32>
    tpu.vector_store %arg12[%c0_18, %c0_19], %20 {strides = array<i32>} : memref<256x128xf32, #tpu.memory_space<vmem>>, vector<256x128xf32>,
    %cst_20 = arith.constant 0.000000e+00 : f32
    %22 = vector.broadcast %cst_20 : f32 to vector<24x8xf32>
    %23 = vector.extract_strided_slice %8 {offsets = [0, 0], sizes = [256, 8], strides = [1, 1]} : vector<256x128xf32> to vector<256x8xf32>
    %24 = tpu.concatenate %22, %23, %22 in 0 : vector<24x8xf32>, vector<256x8xf32>, vector<24x8xf32> -> vector<304x8xf32>
    %25 = tpu.iota {dimensions = array<i32: 0>} : vector<256x8xi32>
    %c16_i32 = arith.constant 16 : i32
    %c0_i32 = arith.constant 0 : i32
    %26 = arith.cmpi eq, %c16_i32, %c0_i32 : i32
    %c1_i32 = arith.constant 1 : i32
    %27 = arith.select %26, %c1_i32, %c16_i32 : i32
    %28 = vector.broadcast %27 : i32 to vector<256x8xi32>
    %29 = arith.remsi %25, %28 : vector<256x8xi32>
    %c0_i32_21 = arith.constant 0 : i32
    %30 = vector.broadcast %c0_i32_21 : i32 to vector<256x8xi32>
    %31 = arith.cmpi ne, %29, %30 : vector<256x8xi32>
    %c0_i32_22 = arith.constant 0 : i32
    %32 = vector.broadcast %c0_i32_22 : i32 to vector<256x8xi32>
    %33 = arith.cmpi slt, %29, %32 : vector<256x8xi32>
    %c0_i32_23 = arith.constant 0 : i32
    %34 = arith.cmpi slt, %27, %c0_i32_23 : i32
    %35 = vector.broadcast %34 : i1 to vector<256x8xi1>
    %36 = vector.broadcast %35 : vector<256x8xi1> to vector<256x8xi1>
    %37 = arith.xori %33, %36 : vector<256x8xi1>
    %38 = arith.andi %37, %31 : vector<256x8xi1>
    %39 = vector.broadcast %27 : i32 to vector<256x8xi32>
    %40 = arith.addi %29, %39 : vector<256x8xi32>
    %41 = arith.select %38, %40, %29 : vector<256x8xi1>, vector<256x8xi32>
    %42 = vector.extract_strided_slice %24 {offsets = [7, 0], sizes = [256, 8], strides = [1, 1]} : vector<304x8xf32> to vector<256x8xf32>
    %c1_i32_24 = arith.constant 1 : i32
    %43 = vector.broadcast %c1_i32_24 : i32 to vector<256x8xi32>
    %44 = arith.cmpi sge, %41, %43 : vector<256x8xi32>
    %cst_25 = arith.constant 0.000000e+00 : f32
    %45 = vector.broadcast %cst_25 : f32 to vector<256x8xf32>
    %46 = arith.select %44, %42, %45 : vector<256x8xi1>, vector<256x8xf32>
    %c0_26 = arith.constant 0 : index
    %c0_27 = arith.constant 0 : index
    %47 = vector.load %arg12[%c0_26, %c0_27] : memref<256x128xf32, #tpu.memory_space<vmem>>, vector<256x8xf32>
    tpu.vector_store %arg12[%c0_26, %c0_27], %46 {strides = array<i32>} : memref<256x128xf32, #tpu.memory_space<vmem>>, vector<256x8xf32>,
    %48 = vector.extract_strided_slice %24 {offsets = [8, 0], sizes = [256, 8], strides = [1, 1]} : vector<304x8xf32> to vector<256x8xf32>
    %c0_28 = arith.constant 0 : index
    %c8 = arith.constant 8 : index
    %49 = vector.load %arg12[%c0_28, %c8] : memref<256x128xf32, #tpu.memory_space<vmem>>, vector<256x8xf32>
    tpu.vector_store %arg12[%c0_28, %c8], %48 {strides = array<i32>} : memref<256x128xf32, #tpu.memory_space<vmem>>, vector<256x8xf32>,
    %50 = vector.extract_strided_slice %24 {offsets = [9, 0], sizes = [256, 8], strides = [1, 1]} : vector<304x8xf32> to vector<256x8xf32>
    %c14_i32 = arith.constant 14 : i32
    %51 = vector.broadcast %c14_i32 : i32 to vector<256x8xi32>
    %52 = arith.cmpi sle, %41, %51 : vector<256x8xi32>
    %cst_29 = arith.constant 0.000000e+00 : f32
    %53 = vector.broadcast %cst_29 : f32 to vector<256x8xf32>
    %54 = arith.select %52, %50, %53 : vector<256x8xi1>, vector<256x8xf32>
    %c0_30 = arith.constant 0 : index
    %c16 = arith.constant 16 : index
    %55 = vector.load %arg12[%c0_30, %c16] : memref<256x128xf32, #tpu.memory_space<vmem>>, vector<256x8xf32>
    tpu.vector_store %arg12[%c0_30, %c16], %54 {strides = array<i32>} : memref<256x128xf32, #tpu.memory_space<vmem>>, vector<256x8xf32>,
    %56 = vector.extract_strided_slice %24 {offsets = [23, 0], sizes = [256, 8], strides = [1, 1]} : vector<304x8xf32> to vector<256x8xf32>
    %c1_i32_31 = arith.constant 1 : i32
    %57 = vector.broadcast %c1_i32_31 : i32 to vector<256x8xi32>
    %58 = arith.cmpi sge, %41, %57 : vector<256x8xi32>
    %cst_32 = arith.constant 0.000000e+00 : f32
    %59 = vector.broadcast %cst_32 : f32 to vector<256x8xf32>
    %60 = arith.select %58, %56, %59 : vector<256x8xi1>, vector<256x8xf32>
    %c0_33 = arith.constant 0 : index
    %c24 = arith.constant 24 : index
    %61 = vector.load %arg12[%c0_33, %c24] : memref<256x128xf32, #tpu.memory_space<vmem>>, vector<256x8xf32>
    tpu.vector_store %arg12[%c0_33, %c24], %60 {strides = array<i32>} : memref<256x128xf32, #tpu.memory_space<vmem>>, vector<256x8xf32>,
    %62 = vector.extract_strided_slice %24 {offsets = [24, 0], sizes = [256, 8], strides = [1, 1]} : vector<304x8xf32> to vector<256x8xf32>
    %c0_34 = arith.constant 0 : index
    %c32 = arith.constant 32 : index
    %63 = vector.load %arg12[%c0_34, %c32] : memref<256x128xf32, #tpu.memory_space<vmem>>, vector<256x8xf32>
    tpu.vector_store %arg12[%c0_34, %c32], %62 {strides = array<i32>} : memref<256x128xf32, #tpu.memory_space<vmem>>, vector<256x8xf32>,
    %64 = vector.extract_strided_slice %24 {offsets = [25, 0], sizes = [256, 8], strides = [1, 1]} : vector<304x8xf32> to vector<256x8xf32>
    %c14_i32_35 = arith.constant 14 : i32
    %65 = vector.broadcast %c14_i32_35 : i32 to vector<256x8xi32>
    %66 = arith.cmpi sle, %41, %65 : vector<256x8xi32>
    %cst_36 = arith.constant 0.000000e+00 : f32
    %67 = vector.broadcast %cst_36 : f32 to vector<256x8xf32>
    %68 = arith.select %66, %64, %67 : vector<256x8xi1>, vector<256x8xf32>
    %c0_37 = arith.constant 0 : index
    %c40 = arith.constant 40 : index
    %69 = vector.load %arg12[%c0_37, %c40] : memref<256x128xf32, #tpu.memory_space<vmem>>, vector<256x8xf32>
    tpu.vector_store %arg12[%c0_37, %c40], %68 {strides = array<i32>} : memref<256x128xf32, #tpu.memory_space<vmem>>, vector<256x8xf32>,
    %70 = vector.extract_strided_slice %24 {offsets = [39, 0], sizes = [256, 8], strides = [1, 1]} : vector<304x8xf32> to vector<256x8xf32>
    %c1_i32_38 = arith.constant 1 : i32
    %71 = vector.broadcast %c1_i32_38 : i32 to vector<256x8xi32>
    %72 = arith.cmpi sge, %41, %71 : vector<256x8xi32>
    %cst_39 = arith.constant 0.000000e+00 : f32
    %73 = vector.broadcast %cst_39 : f32 to vector<256x8xf32>
    %74 = arith.select %72, %70, %73 : vector<256x8xi1>, vector<256x8xf32>
    %c0_40 = arith.constant 0 : index
    %c48 = arith.constant 48 : index
    %75 = vector.load %arg12[%c0_40, %c48] : memref<256x128xf32, #tpu.memory_space<vmem>>, vector<256x8xf32>
    tpu.vector_store %arg12[%c0_40, %c48], %74 {strides = array<i32>} : memref<256x128xf32, #tpu.memory_space<vmem>>, vector<256x8xf32>,
    %76 = vector.extract_strided_slice %24 {offsets = [40, 0], sizes = [256, 8], strides = [1, 1]} : vector<304x8xf32> to vector<256x8xf32>
    %c0_41 = arith.constant 0 : index
    %c56 = arith.constant 56 : index
    %77 = vector.load %arg12[%c0_41, %c56] : memref<256x128xf32, #tpu.memory_space<vmem>>, vector<256x8xf32>
    tpu.vector_store %arg12[%c0_41, %c56], %76 {strides = array<i32>} : memref<256x128xf32, #tpu.memory_space<vmem>>, vector<256x8xf32>,
    %78 = vector.extract_strided_slice %24 {offsets = [41, 0], sizes = [256, 8], strides = [1, 1]} : vector<304x8xf32> to vector<256x8xf32>
    %c14_i32_42 = arith.constant 14 : i32
    %79 = vector.broadcast %c14_i32_42 : i32 to vector<256x8xi32>
    %80 = arith.cmpi sle, %41, %79 : vector<256x8xi32>
    %cst_43 = arith.constant 0.000000e+00 : f32
    %81 = vector.broadcast %cst_43 : f32 to vector<256x8xf32>
    %82 = arith.select %80, %78, %81 : vector<256x8xi1>, vector<256x8xf32>
    %c0_44 = arith.constant 0 : index
    %c64 = arith.constant 64 : index
    %83 = vector.load %arg12[%c0_44, %c64] : memref<256x128xf32, #tpu.memory_space<vmem>>, vector<256x8xf32>
    tpu.vector_store %arg12[%c0_44, %c64], %82 {strides = array<i32>} : memref<256x128xf32, #tpu.memory_space<vmem>>, vector<256x8xf32>,
    %c0_45 = arith.constant 0 : index
    %c0_46 = arith.constant 0 : index
    %84 = vector.load %arg12[%c0_45, %c0_46] : memref<256x128xf32, #tpu.memory_space<vmem>>, vector<256x128xf32>
    %85 = arith.truncf %84 : vector<256x128xf32> to vector<256x128xbf16>
    %c0_47 = arith.constant 0 : index
    %c0_48 = arith.constant 0 : index
    %86 = vector.load %arg6[%c0_47, %c0_48] : memref<128x128xbf16, #tpu.memory_space<vmem>>, vector<128x128xbf16>
    %cst_49 = arith.constant dense<0.000000e+00> : vector<256x128xf32>
    %87 = tpu.matmul %85, %86, %cst_49 {dimension_numbers = #tpu.dot_dimension_numbers<[1], [0], [0], [1], [0, 0, 1, 1], [], []>} : vector<256x128xbf16>, vector<128x128xbf16>, vector<256x128xf32> -> vector<256x128xf32>
    %c0_50 = arith.constant 0 : index
    %c0_51 = arith.constant 0 : index
    %88 = vector.load %arg7[%c0_50, %c0_51] : memref<1x128xf32, #tpu.memory_space<vmem>>, vector<1x128xf32>
    %89 = vector.broadcast %88 : vector<1x128xf32> to vector<256x128xf32>
    %90 = arith.addf %87, %89 : vector<256x128xf32>
    %cst_52 = arith.constant 0.000000e+00 : f32
    %91 = vector.broadcast %cst_52 : f32 to vector<256x128xf32>
    %92 = arith.maximumf %90, %91 : vector<256x128xf32>
    %cst_53 = arith.constant dense<0.000000e+00> : vector<128xf32>
    %93 = vector.multi_reduction <add>, %92, %cst_53 [0] : vector<256x128xf32> to vector<128xf32>
    %94 = vector.shape_cast %93 : vector<128xf32> to vector<1x128xf32>
    %cst_54 = arith.constant 3.906250e-03 : f32
    %95 = vector.broadcast %cst_54 : f32 to vector<1x128xf32>
    %96 = arith.mulf %94, %95 : vector<1x128xf32>
    %c0_55 = arith.constant 0 : index
    %c0_56 = arith.constant 0 : index
    %97 = vector.load %arg8[%c0_55, %c0_56] : memref<128x256xf32, #tpu.memory_space<vmem>>, vector<128x256xf32>
    %cst_57 = arith.constant dense<0.000000e+00> : vector<1x256xf32>
    %98 = tpu.matmul %96, %97, %cst_57 {dimension_numbers = #tpu.dot_dimension_numbers<[1], [0], [0], [1], [0, 0, 1, 1], [], []>} : vector<1x128xf32>, vector<128x256xf32>, vector<1x256xf32> -> vector<1x256xf32>
    %c0_58 = arith.constant 0 : index
    %c0_59 = arith.constant 0 : index
    %99 = vector.load %arg9[%c0_58, %c0_59] : memref<1x256xf32, #tpu.memory_space<vmem>>, vector<1x256xf32>
    %100 = arith.addf %98, %99 : vector<1x256xf32>
    %c0_60 = arith.constant 0 : index
    %c0_61 = arith.constant 0 : index
    %c0_62 = arith.constant 0 : index
    %101 = vector.load %arg11[%c0_60, %c0_61, %c0_62] : memref<1x1x256xf32, #tpu.memory_space<vmem>>, vector<1x1x256xf32>
    %102 = vector.shape_cast %101 : vector<1x1x256xf32> to vector<1x256xf32>
    %103 = vector.shape_cast %100 : vector<1x256xf32> to vector<1x1x256xf32>
    tpu.vector_store %arg11[%c0_60, %c0_61, %c0_62], %103 {strides = array<i32>} : memref<1x1x256xf32, #tpu.memory_space<vmem>>, vector<1x1x256xf32>,
    return
  }
  func.func @transform_0(%arg0: i32) -> (i32, i32, i32) {
    %c0_i32 = arith.constant 0 : i32
    %c0_i32_0 = arith.constant 0 : i32
    %c0_i32_1 = arith.constant 0 : i32
    return %arg0, %c0_i32, %c0_i32_0 : i32, i32, i32
  }
  func.func @transform_1(%arg0: i32) -> (i32, i32) {
    %c0_i32 = arith.constant 0 : i32
    %c0_i32_0 = arith.constant 0 : i32
    %c0_i32_1 = arith.constant 0 : i32
    return %c0_i32, %c0_i32_0 : i32, i32
  }
  func.func @transform_2(%arg0: i32) -> (i32, i32) {
    %c0_i32 = arith.constant 0 : i32
    %c0_i32_0 = arith.constant 0 : i32
    %c0_i32_1 = arith.constant 0 : i32
    return %c0_i32, %c0_i32_0 : i32, i32
  }
  func.func @transform_3(%arg0: i32) -> (i32, i32) {
    %c0_i32 = arith.constant 0 : i32
    %c0_i32_0 = arith.constant 0 : i32
    %c0_i32_1 = arith.constant 0 : i32
    return %c0_i32, %c0_i32_0 : i32, i32
  }
  func.func @transform_4(%arg0: i32) -> (i32, i32) {
    %c0_i32 = arith.constant 0 : i32
    %c0_i32_0 = arith.constant 0 : i32
    %c0_i32_1 = arith.constant 0 : i32
    return %c0_i32, %c0_i32_0 : i32, i32
  }
  func.func @transform_5(%arg0: i32) -> (i32, i32) {
    %c0_i32 = arith.constant 0 : i32
    %c0_i32_0 = arith.constant 0 : i32
    %c0_i32_1 = arith.constant 0 : i32
    return %c0_i32, %c0_i32_0 : i32, i32
  }
  func.func @transform_6(%arg0: i32) -> (i32, i32) {
    %c0_i32 = arith.constant 0 : i32
    %c0_i32_0 = arith.constant 0 : i32
    %c0_i32_1 = arith.constant 0 : i32
    return %c0_i32, %c0_i32_0 : i32, i32
  }
  func.func @transform_7(%arg0: i32) -> (i32, i32) {
    %c0_i32 = arith.constant 0 : i32
    %c0_i32_0 = arith.constant 0 : i32
    %c0_i32_1 = arith.constant 0 : i32
    return %c0_i32, %c0_i32_0 : i32, i32
  }
  func.func @transform_8(%arg0: i32) -> (i32, i32) {
    %c0_i32 = arith.constant 0 : i32
    %c0_i32_0 = arith.constant 0 : i32
    %c0_i32_1 = arith.constant 0 : i32
    return %c0_i32, %c0_i32_0 : i32, i32
  }
  func.func @transform_9(%arg0: i32) -> (i32, i32, i32) {
    %c0_i32 = arith.constant 0 : i32
    %c0_i32_0 = arith.constant 0 : i32
    %c0_i32_1 = arith.constant 0 : i32
    return %arg0, %c0_i32, %c0_i32_0 : i32, i32, i32
  }
  func.func @transform_10(%arg0: i32) -> (i32, i32, i32) {
    %c0_i32 = arith.constant 0 : i32
    %c0_i32_0 = arith.constant 0 : i32
    %c0_i32_1 = arith.constant 0 : i32
    return %arg0, %c0_i32, %c0_i32_0 : i32, i32, i32
  }
}

</mosaic_0001>

<bundles_post_ra>
// kernel: early_exit_forward.1
= control target key start
LH: loop header
LB: loop body
LE: loop exit
PB: predicated region body
PF: predicated region fallthrough
CT: control target
= control target key end

     0   :  { %s6330_s0 = inlined_call_operand.vmem [shape: bf16[2,256,128], index: 0, kind: input, shape index: {}]   ;;  %s6331_s1 = inlined_call_operand.vmem [shape: bf16[128,128], index: 1, kind: input, shape index: {}]   ;;  %s6332_s2 = inlined_call_operand.vmem [shape: f32[1,128], index: 2, kind: input, shape index: {}]   ;;  %s6333_s3 = inlined_call_operand.vmem [shape: f32[128,128], index: 3, kind: input, shape index: {}]   ;;  %s6334_s4 = inlined_call_operand.vmem [shape: f32[1,128], index: 4, kind: input, shape index: {}]   ;;  %s6335_s5 = inlined_call_operand.vmem [shape: bf16[128,128], index: 5, kind: input, shape index: {}]   ;;  %s6336_s6 = inlined_call_operand.vmem [shape: f32[1,128], index: 6, kind: input, shape index: {}]   ;;  %s6337_s7 = inlined_call_operand.vmem [shape: f32[128,256], index: 7, kind: input, shape index: {}]   ;;  %s6338_s8 = inlined_call_operand.vmem [shape: f32[1,256], index: 8, kind: input, shape index: {}]   ;;  %s6339_s9 = inlined_call_operand.hbm [shape: f32[2,1,128], index: 9, kind: output, shape index: {0}]   ;;  %s6340_s10 = inlined_call_operand.vmem [shape: f32[2,1,256], index: 10, kind: output, shape index: {1}]  }
   0x1   :  { %6377 = sst [smem:[#allocation10_spill]] %s6330_s0 }
   0x2   :  { %6378 = sst [smem:[#allocation11_spill]] %s6331_s1 }
   0x3   :  { %16 = vsyncpa [#allocation4], 0 }
   0x4   :  { %18 = vsyncpa [#allocation4 + $0x1], 0  ;;  %s4152_s13 = smov 0   ;;  %s4154_s14 = smov 0  }
   0x5   :  { %s4156_s15 = smov 0   ;;  %s4158_s16 = smov 0  }
   0x6 LB: > { %s4173_s17 = sadd.s32 4294967295, %s4082_s16   ;;  %s3635_s18 = sadd.s32 4294967294, %s4082_s16   ;;  %s4082_s16 = sphi %s4158_s16, %s6753_s16   ;;  %s4078_s15 = sphi %s4156_s15, %s6752_s15   ;;  %s4074_s14 = sphi %s4154_s14, %s6751_s14   ;;  %s4070_s13 = sphi %s4152_s13, %s6750_s13  }
   0x7   : > { %s4177_s19 = sadd.s32 1, %s4082_s16   ;;  %s225_s20 = sadd.s32 1, %s4078_s15 }
   0x8   : > { %s222_s21 = ssub.s32 %s4082_s16, %s4177_s19  ;;  %p235_p0 = scmp.ne.s32.totalorder %s4078_s15, %s4074_s14 }
   0x9   : > { %p223_p1 = scmp.eq.s32.totalorder %s222_s21, 0  ;;  %p236_p2 = scmp.eq.s32.totalorder %s4173_s17, 1 }
   0xa   : > { %p241_p3 = scmp.ne.s32.totalorder %s4074_s14, %s4070_s13  ;;  %p242_p4 = scmp.eq.s32.totalorder %s3635_s18, 1 }
   0xb   : > { %s4188_s22 = scalar_select %p223_p1, %s4078_s15, %s225_s20  }
   0xc   : > { %p4190_p5 = por %p236_p2, %p235_p0  ;;  %p4194_p6 = por %p242_p4, %p241_p3 }
   0xd   : > { %p3638_p7 = scmp.ge.s32.totalorder %s4082_s16, 1  ;;  %p318_p8 = scmp.lt.s32.totalorder %s4082_s16, 3 }
   0xf   : > { %p319_p9 = pnand %p3638_p7, %p318_p8 }
  0x11   : > { %322 = sbr.rel (%p319_p9) target bundleno = 1369 (0x559), region = 56 }
  0x18   : > { %s6381_s1 = sld [smem:[#allocation11_spill]]  ;;  %p359_p10 = scmp.lt.s32.totalorder %s4173_s17, 1  ;;  %v6346_v24 = vmov 0.0   ;;  %vm6364_vm0 = vcmask 64512   ;;  %v6345_v27 = vlaneseq  ;;  %v799_v32 = vld [vmem:[%s6333_s3] sm:$0xff]  ;;  %v800_v33 = vld [vmem:[%s6333_s3 + $0x8] sm:$0xff] }
  0x19   : > { %s6382_s0 = sld [smem:[#allocation10_spill]]  ;;  %v4251_v25 = vrot.slane %v6346_v24, 1  ;;  %887 = vst [vmem:[#allocation2] sm:$0xff] %v6346_v24  ;;  %888 = vst [vmem:[#allocation2 + $0x8] sm:$0xff] %v6346_v24  ;;  %s6343_s26 = smov 8   ;;  %v4291_v26 = vrot.slane %v6346_v24, 7  ;;  %v3877_v34 = vpack.c.bf16 %v800_v33, %v799_v32 }
  0x1a   : > { %s4208_s29 = scalar_select %p359_p10, %s4173_s17, 1  ;;  %889 = vst [vmem:[#allocation2 + $0x10] sm:$0xff] %v6346_v24  ;;  %890 = vst [vmem:[#allocation2 + $0x18] sm:$0xff] %v6346_v24  ;;  %1558 = vrot.lane.b32.xlu0 %v6346_v24, %s6343_s26  ;;  %v4296_v28 = vshrl.u32 %v6345_v27, 7  ;;  %v4087_v35 = vmov 0.0|0.0   ;;  %v801_v36 = vld [vmem:[%s6333_s3 + $0x10] sm:$0xff] }
  0x1b   : > { %6383 = vst [vmem:[#allocation6_spill] sm:$0xff] %v4251_v25  ;;  %891 = vst [vmem:[#allocation2 + $0x20] sm:$0xff] %v6346_v24  ;;  %3876 = vmatprep.subr.bf16.mxu1 %v4087_v35  ;;  %v802_v37 = vld [vmem:[%s6333_s3 + $0x18] sm:$0xff]  ;;  %v803_v39 = vld [vmem:[%s6333_s3 + $0x20] sm:$0xff]  ;;  %vm4088_vm2 = vmmov 0   ;;  %vm6361_vm3 = vcmask 130112  }
  0x1c   : > { %s3679_s12 = sshll.u32 %s4208_s29, 7  ;;  %892 = vst [vmem:[#allocation2 + $0x28] sm:$0xff] %v6346_v24  ;;  %893 = vst [vmem:[#allocation2 + $0x30] sm:$0xff] %v6346_v24  ;;  %v956_v29 = vand.u32 15, %v4296_v28  ;;  %3878 = vmatpush3.bf16.msra.mxu1 %v3877_v34  ;;  %v3880_v38 = vpack.c.bf16 %v802_v37, %v801_v36  ;;  %v804_v40 = vld [vmem:[%s6333_s3 + $0x28] sm:$0xff]  ;;  %v805_v41 = vld [vmem:[%s6333_s3 + $0x30] sm:$0xff]  ;;  %3825 = vmatprep.mubr.msk.f32.mxu1 %vm4088_vm2, %v6346_v24 }
  0x1d   : > { %894 = vst [vmem:[#allocation2 + $0x38] sm:$0xff] %v6346_v24  ;;  %895 = vst [vmem:[#allocation2 + $0x40] sm:$0xff] %v6346_v24  ;;  %3879 = vmatprep.subr.bf16.mxu1 %v4087_v35  ;;  %v3883_v42 = vpack.c.bf16 %v804_v40, %v803_v39  ;;  %v806_v43 = vld [vmem:[%s6333_s3 + $0x38] sm:$0xff]  ;;  %v807_v45 = vld [vmem:[%s6333_s3 + $0x40] sm:$0xff]  ;;  %v922_v59 = vadd.s32 16, %v4296_v28  ;;  %vm6360_vm4 = vcmask 1040384  }
  0x1e   : > { %v3988_v0 = vld [vmem:[%s6381_s1] sm:$0xff]   ;;  %v3989_v1 = vld [vmem:[%s6381_s1 + $0x8] sm:$0xff]   ;;  %v3990_v2 = vld [vmem:[%s6381_s1 + $0x10] sm:$0xff]   ;;  %896 = vst [vmem:[#allocation2 + $0x48] sm:$0xff] %v6346_v24  ;;  %vm4299_vm1 = vcmp.ge.s32.totalorder %v956_v29, 1  ;;  %v3886_v44 = vpack.c.bf16 %v806_v43, %v805_v41  ;;  %vm6365_vm5 = vcmask 195712  }
  0x1f   : > { %3745 = vmatprep.subr.bf16.mxu0 %v3988_v0  ;;  %s4217_s21 = scalar_lea.vmem %s6382_s0, %s3679_s12  ;;  %v3991_v3 = vld [vmem:[%s6381_s1 + $0x18] sm:$0xff]   ;;  %v3992_v5 = vld [vmem:[%s6381_s1 + $0x20] sm:$0xff]   ;;  %v3993_v6 = vld [vmem:[%s6381_s1 + $0x28] sm:$0xff]   ;;  %897 = vst [vmem:[#allocation2 + $0x50] sm:$0xff] %v6346_v24  ;;  %v1493_v31 = vsel %vm4299_vm1, %v4291_v26, 0.0  ;;  %s6358_s12 = smov 32  }
  0x20   : > { %3746 = vmatpush3.bf16.msra.mxu0 %v3988_v0  ;;  %v3996_v4 = vld [vmem:[%s4217_s21] sm:$0xff]   ;;  %v3994_v7 = vld [vmem:[%s6381_s1 + $0x30] sm:$0xff]   ;;  %v3995_v8 = vld [vmem:[%s6381_s1 + $0x38] sm:$0xff]   ;;  %898 = vst [vmem:[#allocation2 + $0x58] sm:$0xff] %v6346_v24  ;;  %3881 = vmatpush3.bf16.msra.mxu1 %v3880_v38  ;;  %s6387_s18 = smov 8   ;;  %vm6368_vm7 = vcmask 1046528  }
  0x21   : > { %3747 = vmatprep.subr.bf16.mxu0 %v3989_v1  ;;  %3761 = vmatprep.mubr.bf16.mxu0 %v3996_v4  ;;  %v3997_v9 = vld [vmem:[%s4217_s21 + $0x8] sm:$0xff]   ;;  %v3998_v10 = vld [vmem:[%s4217_s21 + $0x10] sm:$0xff]   ;;  %v3999_v11 = vld [vmem:[%s4217_s21 + $0x18] sm:$0xff]   ;;  %899 = vst [vmem:[#allocation2 + $0x60] sm:$0xff] %v6346_v24  ;;  %s6356_s20 = smov 56   ;;  %v926_v32 = vadd.s32 48, %v4296_v28 }
  0x22   : > { %v4000_v12 = vld [vmem:[%s4217_s21 + $0x20] sm:$0xff]   ;;  %v4001_v13 = vld [vmem:[%s4217_s21 + $0x28] sm:$0xff]   ;;  %v4002_v14 = vld [vmem:[%s4217_s21 + $0x30] sm:$0xff]   ;;  %900 = vst [vmem:[#allocation2 + $0x68] sm:$0xff] %v6346_v24  ;;  %3882 = vmatprep.subr.bf16.mxu1 %v4087_v35  ;;  %s6372_s25 = smov 24   ;;  %s6396_s27 = smov 16  }
  0x23   : > { %v4003_v15 = vld [vmem:[%s4217_s21 + $0x38] sm:$0xff]   ;;  %v4004_v16 = vld [vmem:[%s4217_s21 + $0x40] sm:$0xff]   ;;  %v4005_v17 = vld [vmem:[%s4217_s21 + $0x48] sm:$0xff]   ;;  %901 = vst [vmem:[#allocation2 + $0x70] sm:$0xff] %v6346_v24  ;;  %s4092_s28 = smov 40   ;;  %s6375_s26 = smov 48  }
  0x24   : > { %3748 = vmatpush3.bf16.msra.mxu0 %v3989_v1  ;;  %v4006_v18 = vld [vmem:[%s4217_s21 + $0x50] sm:$0xff]   ;;  %v4007_v19 = vld [vmem:[%s4217_s21 + $0x58] sm:$0xff]   ;;  %v4008_v20 = vld [vmem:[%s4217_s21 + $0x60] sm:$0xff]   ;;  %902 = vst [vmem:[#allocation2 + $0x78] sm:$0xff] %v6346_v24  ;;  %3884 = vmatpush3.bf16.msra.mxu1 %v3883_v42  ;;  %v970_v1 = vand.u32 15, %v922_v59  ;;  %v928_v59 = vadd.s32 64, %v4296_v28 }
  0x25   : > { %3749 = vmatprep.subr.bf16.mxu0 %v3990_v2  ;;  %v4009_v21 = vld [vmem:[%s4217_s21 + $0x68] sm:$0xff]   ;;  %v4010_v22 = vld [vmem:[%s4217_s21 + $0x70] sm:$0xff]   ;;  %v4011_v23 = vld [vmem:[%s4217_s21 + $0x78] sm:$0xff]   ;;  %903 = vst [vmem:[#allocation2 + $0x80] sm:$0xff] %v6346_v24  ;;  %s6341_s21 = smov 16   ;;  %3885 = vmatprep.subr.bf16.mxu1 %v4087_v35  ;;  %s6374_s30 = sand.u32 1, %s4074_s14  }
  0x26   : > { %904 = vst [vmem:[#allocation2 + $0x88] sm:$0xff] %v6346_v24  ;;  %905 = vst [vmem:[#allocation2 + $0x90] sm:$0xff] %v6346_v24  ;;  %1878 = vrot.lane.b32.xlu1 %v4251_v25, %s6341_s21  ;;  %v808_v46 = vld [vmem:[%s6333_s3 + $0x48] sm:$0xff]  ;;  %v809_v48 = vld [vmem:[%s6333_s3 + $0x50] sm:$0xff]  ;;  %vm4380_vm6 = vcmp.ge.s32.totalorder %v970_v1, 1  ;;  %s4093_s21 = smov 64  }
  0x27   : > { %906 = vst [vmem:[#allocation2 + $0x98] sm:$0xff] %v6346_v24  ;;  %907 = vst [vmem:[#allocation2 + $0xa0] sm:$0xff] %v6346_v24  ;;  %v3889_v47 = vpack.c.bf16 %v808_v46, %v807_v45  ;;  %v810_v49 = vld [vmem:[%s6333_s3 + $0x58] sm:$0xff]  ;;  %v811_v51 = vld [vmem:[%s6333_s3 + $0x60] sm:$0xff]  ;;  %s6565_s11 = smov 24   ;;  %s3676_s1 = sshll.u32 %s4173_s17, 4 }
  0x28   : > { %3750 = vmatpush3.bf16.msra.mxu0 %v3990_v2  ;;  %908 = vst [vmem:[#allocation2 + $0xa8] sm:$0xff] %v6346_v24  ;;  %909 = vst [vmem:[#allocation2 + $0xb0] sm:$0xff] %v6346_v24  ;;  %3887 = vmatpush3.bf16.msra.mxu1 %v3886_v44  ;;  %v3892_v50 = vpack.c.bf16 %v810_v49, %v809_v48  ;;  %v812_v52 = vld [vmem:[%s6333_s3 + $0x68] sm:$0xff]  ;;  %v813_v54 = vld [vmem:[%s6333_s3 + $0x70] sm:$0xff]  ;;  %v4367_v2 = vadd.s32 8, %v4296_v28 }
  0x29   : > { %3751 = vmatprep.subr.bf16.mxu0 %v3991_v3  ;;  %910 = vst [vmem:[#allocation2 + $0xb8] sm:$0xff] %v6346_v24  ;;  %911 = vst [vmem:[#allocation2 + $0xc0] sm:$0xff] %v6346_v24  ;;  %3888 = vmatprep.subr.bf16.mxu1 %v4087_v35  ;;  %v3895_v53 = vpack.c.bf16 %v812_v52, %v811_v51  ;;  %v814_v55 = vld [vmem:[%s6333_s3 + $0x78] sm:$0xff]  ;;  %v4361_v58 = vld [vmem:[%s6332_s2] ss:$0 sm:$0xff] }
  0x2a   : > { %912 = vst [vmem:[#allocation2 + $0xc8] sm:$0xff] %v6346_v24  ;;  %913 = vst [vmem:[#allocation2 + $0xd0] sm:$0xff] %v6346_v24  ;;  %v3898_v56 = vpack.c.bf16 %v814_v55, %v813_v54  ;;  %v998_v54 = vand.u32 15, %v926_v32 }
  0x2b   : > { %914 = vst [vmem:[#allocation2 + $0xd8] sm:$0xff] %v6346_v24  ;;  %915 = vst [vmem:[#allocation2 + $0xe0] sm:$0xff] %v6346_v24 }
  0x2c   : > { %3752 = vmatpush3.bf16.msra.mxu0 %v3991_v3  ;;  %916 = vst [vmem:[#allocation2 + $0xe8] sm:$0xff] %v6346_v24  ;;  %917 = vst [vmem:[#allocation2 + $0xf0] sm:$0xff] %v6346_v24  ;;  %3890 = vmatpush3.bf16.msra.mxu1 %v3889_v47  ;;  %vm4483_vm10 = vcmp.ge.s32.totalorder %v998_v54, 1 }
  0x2d   : > { %3753 = vmatprep.subr.bf16.mxu0 %v3992_v5  ;;  %918 = vst [vmem:[#allocation2 + $0xf8] sm:$0xff] %v6346_v24  ;;  %6384 = vst [vmem:[#allocation7_spill] sm:$0xff] %v4291_v26  ;;  %3891 = vmatprep.subr.bf16.mxu1 %v4087_v35 }
  0x2e   : > { %1527 = vst.msk [vmem:[#allocation2 + $0x8] sm:$0xff] %vm6364_vm0, %v4291_v26  ;;  %1526 = vst.msk [vmem:[#allocation2] sm:$0xff] %vm6364_vm0, %v1493_v31  ;;  %v924_v31 = vadd.s32 32, %v4296_v28 }
  0x30   : > { %3754 = vmatpush3.bf16.msra.mxu0 %v3992_v5  ;;  %3893 = vmatpush3.bf16.msra.mxu1 %v3892_v50  ;;  %v984_v50 = vand.u32 15, %v924_v31 }
  0x31   : > { %3755 = vmatprep.subr.bf16.mxu0 %v3993_v6  ;;  %3894 = vmatprep.subr.bf16.mxu1 %v4087_v35 }
  0x32   : > { %vm4474_vm9 = vcmp.ge.s32.totalorder %v984_v50, 1 }
  0x34   : > { %3756 = vmatpush3.bf16.msra.mxu0 %v3993_v6  ;;  %3896 = vmatpush3.bf16.msra.mxu1 %v3895_v53 }
  0x35   : > { %3757 = vmatprep.subr.bf16.mxu0 %v3994_v7  ;;  %3897 = vmatprep.subr.bf16.mxu1 %v4087_v35 }
  0x38   : > { %3758 = vmatpush3.bf16.msra.mxu0 %v3994_v7  ;;  %3899 = vmatpush3.bf16.msra.mxu1 %v3898_v56 }
  0x39   : > { %3759 = vmatprep.subr.bf16.mxu0 %v3995_v8 }
  0x3c   : > { %3760 = vmatpush3.bf16.msra.mxu0 %v3995_v8 }
  0x3f   : > { %3762 = vmatmul.mubr.bf16.vlgmr.msra.gmra.mrb[0].mxu0 %v3997_v9 }
  0x40   : > { %3765 = vmatprep.mubr.bf16.mxu0 %v3998_v10 }
  0x47   : > { %3766 = vmatmul.mubr.bf16.gmra.mrb[4].mxu0 %v3999_v11  ;;  %v4013_v11 = vld [vmem:[%s6335_s5 + $0x8] sm:$0xff]  }
  0x48   : > { %3769 = vmatprep.mubr.bf16.mxu0 %v4000_v12 }
  0x4f   : > { %3770 = vmatmul.mubr.bf16.gmra.mrb[8].mxu0 %v4001_v13  ;;  %v963_v13 = vand.u32 15, %v4367_v2  ;;  %v1012_v2 = vand.u32 15, %v928_v59 }
  0x50   : > { %3773 = vmatprep.mubr.bf16.mxu0 %v4002_v14 }
  0x51   : > { %vm4470_vm8 = vcmp.le.s32.totalorder %v963_v13, 14  ;;  %vm4552_vm11 = vcmp.ge.s32.totalorder %v1012_v2, 1  ;;  %v923_v2 = vadd.s32 24, %v4296_v28 }
  0x57   : > { %3774 = vmatmul.mubr.bf16.gmra.mrb[12].mxu0 %v4003_v15 }
  0x58   : > { %3777 = vmatprep.mubr.bf16.mxu0 %v4004_v16 }
  0x5f   : > { %3778 = vmatmul.mubr.bf16.gmra.mrb[16].mxu0 %v4005_v17 }
  0x60   : > { %3781 = vmatprep.mubr.bf16.mxu0 %v4006_v18 }
  0x67   : > { %3782 = vmatmul.mubr.bf16.gmra.mrb[20].mxu0 %v4007_v19 }
  0x68   : > { %3785 = vmatprep.mubr.bf16.mxu0 %v4008_v20 }
  0x6f   : > { %3786 = vmatmul.mubr.bf16.gmra.mrb[24].mxu0 %v4009_v21 }
  0x70   : > { %3789 = vmatprep.mubr.bf16.mxu0 %v4010_v22 }
  0x77   : > { %3790 = vmatmul.mubr.bf16.gmra.mrb[28].mxu0 %v4011_v23 }
  0x78   : > { %3506 = vmatprep.mubr.f32.mxu0 %v6346_v24 }
  0x8c   : > { %v1559_v57 = vpop.permute.xlu0 %1558 }
  0x8d   : > { %1652 = vst.msk [vmem:[#allocation2] sm:$0xff] %vm6361_vm3, %v1559_v57  ;;  %1653 = vst.msk [vmem:[#allocation2 + $0x8] sm:$0xff] %vm6361_vm3, %v1559_v57 }
  0x98   : > { %v1879_v9 = vpop.permute.xlu1 %1878 }
  0x99   : > { %1975 = vst.msk [vmem:[#allocation2] sm:$0xff] %vm6365_vm5, %v1879_v9 }
 0x112   : > { %v3763_v60 = vpop.f32.mrb[0].mxu0 }
 0x113   : > { %v611_v61 = vadd.f32 %v3763_v60, %v4361_v58  ;;  %v602_v62 = vpop.f32.mrb[1].mxu0 }
 0x114   : > { %v603_v63 = vadd.f32 %v4361_v58, %v602_v62  ;;  %v3764_v0 = vpop.f32.mrb[2].mxu0 }
 0x115   : > { %v731_v3 = vmax.f32 %v611_v61, 0.0  ;;  %v614_v4 = vadd.f32 %v3764_v0, %v4361_v58  ;;  %v605_v5 = vpop.f32.mrb[3].mxu0 }
 0x116   : > { %v4370_v6 = vmax.f32 %v603_v63, 0.0  ;;  %v606_v7 = vadd.f32 %v4361_v58, %v605_v5 }
 0x117   : > { %v4373_v8 = vmax.f32 %v614_v4, 0.0  ;;  %2211 = vrot.lane.b32.xlu1 %v731_v3, %s6358_s12  ;;  %v1724_v14 = vrot.slane %v731_v3, 1  ;;  %v1406_v20 = vrot.slane %v731_v3, 7 }
 0x118   : > { %v4376_v10 = vmax.f32 %v606_v7, 0.0  ;;  %1560 = vrot.lane.b32.xlu0 %v4370_v6, %s6387_s18  ;;  %v1402_v12 = vrot.slane %v4370_v6, 7  ;;  %v1720_v40 = vrot.slane %v4370_v6, 1 }
 0x119   : > { %v1726_v15 = vrot.slane %v4373_v8, 1  ;;  %v1408_v16 = vrot.slane %v4373_v8, 7 }
 0x11a   : > { %v761_v17 = vadd.f32 %v4376_v10, %v4370_v6  ;;  %v3767_v18 = vpop.f32.mrb[4].mxu0  ;;  %v4393_v19 = vsel %vm6360_vm4, %v4291_v26, %v1402_v12  ;;  %v1404_v21 = vrot.slane %v4376_v10, 7  ;;  %v1722_v42 = vrot.slane %v4376_v10, 1 }
 0x11b   : > { %v627_v22 = vadd.f32 %v3767_v18, %v4361_v58  ;;  %2729 = vrot.lane.b32.xlu1 %v731_v3, %s6356_s20  ;;  %v618_v23 = vpop.f32.mrb[5].mxu0  ;;  %v1495_v29 = vsel %vm4380_vm6, %v4393_v19, 0.0  ;;  %v4407_v36 = vsel %vm6368_vm7, %v1724_v14, %v1726_v15  ;;  %v4410_v37 = vsel %vm6360_vm4, %v1406_v20, %v1408_v16 }
 0x11c   : > { %v762_v33 = vadd.f32 %v761_v17, %v731_v3  ;;  %v619_v34 = vadd.f32 %v4361_v58, %v618_v23  ;;  %v3768_v35 = vpop.f32.mrb[6].mxu0  ;;  %2213 = vrot.lane.b32.xlu0 %v4373_v8, %s6358_s12  ;;  %1528 = vst.msk [vmem:[#allocation2 + $0x10] sm:$0xff] %vm6364_vm0, %v1495_v29  ;;  %v4416_v41 = vsel %vm6360_vm4, %v1402_v12, %v1404_v21  ;;  %1531 = vst.msk [vmem:[#allocation2 + $0x28] sm:$0xff] %vm6364_vm0, %v4410_v37 }
 0x11d   : > { %v630_v38 = vadd.f32 %v3768_v35, %v4361_v58  ;;  %v621_v39 = vpop.f32.mrb[7].mxu0  ;;  %v4426_v46 = vsel %vm6360_vm4, %v1404_v21, %v1406_v20  ;;  %1529 = vst.msk [vmem:[#allocation2 + $0x18] sm:$0xff] %vm6364_vm0, %v4416_v41  ;;  %v4430_v47 = vmax.f32 %v627_v22, 0.0  ;;  %v4434_v48 = vsel %vm6368_vm7, %v1720_v40, %v1722_v42 }
 0x11e   : > { %v763_v43 = vadd.f32 %v762_v33, %v4373_v8  ;;  %v4422_v44 = vmax.f32 %v619_v34, 0.0  ;;  %v622_v45 = vadd.f32 %v4361_v58, %v621_v39  ;;  %v4437_v49 = vsel %vm6368_vm7, %v1722_v42, %v1724_v14 }
 0x11f   : > { %1564 = vrot.lane.b32.xlu1 %v731_v3, %s6387_s18  ;;  %v4440_v52 = vmax.f32 %v630_v38, 0.0  ;;  %v1414_v57 = vrot.slane %v4430_v47, 7  ;;  %v1732_v63 = vrot.slane %v4430_v47, 1  ;;  %v1721_v17 = vsel %vm6368_vm7, %v4251_v25, %v1720_v40 }
 0x120   : > { %v764_v51 = vadd.f32 %v763_v43, %v4422_v44  ;;  %v4442_v53 = vmax.f32 %v622_v45, 0.0  ;;  %2731 = vrot.lane.b32.xlu0 %v4373_v8, %s6356_s20  ;;  %v1728_v55 = vrot.slane %v4422_v44, 1  ;;  %v1410_v56 = vrot.slane %v4422_v44, 7 }
 0x121   : > { %v1416_v62 = vrot.slane %v4440_v52, 7  ;;  %v6347_v0 = vrot.slane %v4440_v52, 1  ;;  %v2014_v39 = vsel %vm4299_vm1, %v4393_v19, 0.0  ;;  %v1497_v42 = vsel %vm4474_vm9, %v4426_v46, 0.0 }
 0x122   : > { %v765_v60 = vadd.f32 %v764_v51, %v4442_v53  ;;  %v3771_v61 = vpop.f32.mrb[8].mxu0  ;;  %v4458_v4 = vsel %vm6368_vm7, %v1726_v15, %v1728_v55  ;;  %v4461_v5 = vsel %vm6360_vm4, %v1408_v16, %v1410_v56  ;;  %v1412_v7 = vrot.slane %v4442_v53, 7  ;;  %1530 = vst.msk [vmem:[#allocation2 + $0x20] sm:$0xff] %vm6364_vm0, %v1497_v42 }
 0x123   : > { %v643_v1 = vadd.f32 %v3771_v61, %v4361_v58  ;;  %v634_v3 = vpop.f32.mrb[9].mxu0  ;;  %2207 = vrot.lane.b32.xlu1 %v4370_v6, %s6358_s12  ;;  %v4499_v29 = vsel %vm6360_vm4, %v1414_v57, %v1416_v62  ;;  %v4504_v31 = vsel %vm6368_vm7, %v1732_v63, %v6347_v0  ;;  %v1730_v35 = vrot.slane %v4442_v53, 1 }
 0x124   : > { %v766_v9 = vadd.f32 %v765_v60, %v4430_v47  ;;  %v635_v12 = vadd.f32 %v4361_v58, %v634_v3  ;;  %v3772_v14 = vpop.f32.mrb[10].mxu0  ;;  %1566 = vrot.lane.b32.xlu0 %v4373_v8, %s6387_s18  ;;  %v4507_v32 = vsel %vm6360_vm4, %v1410_v56, %v1412_v7  ;;  %v4516_v38 = vsel %vm6360_vm4, %v1412_v7, %v1414_v57 }
 0x125   : > { %v637_v16 = vpop.f32.mrb[11].mxu0  ;;  %v646_v21 = vadd.f32 %v3772_v14, %v4361_v58  ;;  %v4492_v23 = vmax.f32 %v643_v1, 0.0  ;;  %1533 = vst.msk [vmem:[#allocation2 + $0x38] sm:$0xff] %vm6364_vm0, %v4507_v32  ;;  %1535 = vst.msk [vmem:[#allocation2 + $0x48] sm:$0xff] %vm6364_vm0, %v4499_v29  ;;  %v4538_v51 = vsel %vm6368_vm7, %v1728_v55, %v1730_v35  ;;  %v4541_v19 = vsel %vm6368_vm7, %v1730_v35, %v1732_v63 }
 0x126   : > { %v4487_v13 = vmax.f32 %v635_v12, 0.0  ;;  %v767_v20 = vadd.f32 %v766_v9, %v4440_v52  ;;  %v638_v22 = vadd.f32 %v4361_v58, %v637_v16  ;;  %v1815_v57 = vsel %vm4470_vm8, %v1721_v17, 0.0 }
 0x127   : > { %1562 = vrot.lane.b32.xlu1 %v4376_v10, %s6387_s18  ;;  %v4534_v43 = vmax.f32 %v646_v21, 0.0  ;;  %v930_v7 = vadd.s32 80, %v4296_v28  ;;  %v938_v26 = vadd.s32 144, %v4296_v28 }
 0x128   : > { %v768_v33 = vadd.f32 %v767_v20, %v4487_v13  ;;  %v4510_v34 = vmax.f32 %v638_v22, 0.0  ;;  %2209 = vrot.lane.b32.xlu0 %v4376_v10, %s6358_s12  ;;  %v1418_v61 = vrot.slane %v4487_v13, 7 }
 0x129   : > { %v1424_v35 = vrot.slane %v4534_v43, 7  ;;  %v1026_v42 = vand.u32 15, %v930_v7 }
 0x12a   : > { %v769_v45 = vadd.f32 %v768_v33, %v4510_v34  ;;  %v3775_v50 = vpop.f32.mrb[12].mxu0  ;;  %v4565_v16 = vsel %vm6360_vm4, %v1416_v62, %v1418_v61  ;;  %v1422_v33 = vrot.slane %v4492_v23, 7 }
 0x12b   : > { %v659_v54 = vadd.f32 %v3775_v50, %v4361_v58  ;;  %v650_v56 = vpop.f32.mrb[13].mxu0  ;;  %2078 = vrot.lane.b32.xlu1 %v2014_v39, %s6372_s25  ;;  %v1420_v39 = vrot.slane %v4510_v34, 7  ;;  %vm4613_vm12 = vcmp.ge.s32.totalorder %v1026_v42, 1  ;;  %v934_v42 = vadd.s32 112, %v4296_v28 }
 0x12c   : > { %v770_v59 = vadd.f32 %v769_v45, %v4492_v23  ;;  %v651_v60 = vadd.f32 %v4361_v58, %v650_v56  ;;  %v3776_v55 = vpop.f32.mrb[14].mxu0  ;;  %1880 = vrot.lane.b32.xlu0 %v1815_v57, %s6396_s27  ;;  %v932_v45 = vadd.s32 96, %v4296_v28  ;;  %v4591_v57 = vsel %vm6360_vm4, %v1422_v33, %v1424_v35 }
 0x12d   : > { %v662_v1 = vadd.f32 %v3776_v55, %v4361_v58  ;;  %v653_v3 = vpop.f32.mrb[15].mxu0  ;;  %v4567_v17 = vmax.f32 %v659_v54, 0.0  ;;  %v977_v55 = vand.u32 15, %v923_v2  ;;  %1539 = vst.msk [vmem:[#allocation2 + $0x68] sm:$0xff] %vm6364_vm0, %v4591_v57  ;;  %v6432_v8 = vsel %vm4552_vm11, %v4565_v16, 0.0 }
 0x12e   : > { %v4558_v9 = vmax.f32 %v651_v60, 0.0  ;;  %v771_v12 = vadd.f32 %v770_v59, %v4534_v43  ;;  %v654_v14 = vadd.f32 %v4361_v58, %v653_v3 }
 0x12f   : > { %2409 = vrot.lane.b32.xlu1 %v4407_v36, %s4092_s28  ;;  %v4587_v50 = vmax.f32 %v662_v1, 0.0  ;;  %v4599_v1 = vsel %vm6360_vm4, %v1418_v61, %v1420_v39  ;;  %v1501_v61 = vsel %vm4552_vm11, %v4516_v38, 0.0  ;;  %vm4636_vm13 = vcmp.le.s32.totalorder %v977_v55, 14 }
 0x130   : > { %v772_v22 = vadd.f32 %v771_v12, %v4558_v9  ;;  %v4579_v62 = vmax.f32 %v654_v14, 0.0  ;;  %2084 = vrot.lane.b32.xlu0 %v4410_v37, %s6372_s25  ;;  %1537 = vst.msk [vmem:[#allocation2 + $0x58] sm:$0xff] %vm6364_vm0, %v4599_v1  ;;  %v4608_v14 = vsel %vm6360_vm4, %v1420_v39, %v1422_v33  ;;  %1534 = vst.msk [vmem:[#allocation2 + $0x40] sm:$0xff] %vm6364_vm0, %v1501_v61 }
 0x132   : > { %v773_v54 = vadd.f32 %v772_v22, %v4579_v62  ;;  %v3779_v56 = vpop.f32.mrb[16].mxu0 }
 0x133   : > { %v675_v59 = vadd.f32 %v3779_v56, %v4361_v58  ;;  %v666_v60 = vpop.f32.mrb[17].mxu0  ;;  %2919 = vrot.lane.b32.xlu1 %v4407_v36, %s4093_s21 }
 0x134   : > { %v774_v3 = vadd.f32 %v773_v54, %v4567_v17  ;;  %v667_v7 = vadd.f32 %v4361_v58, %v666_v60  ;;  %v3780_v12 = vpop.f32.mrb[18].mxu0  ;;  %2602 = vrot.lane.b32.xlu0 %v4410_v37, %s6375_s26  ;;  %v1040_v54 = vand.u32 15, %v932_v45 }
 0x135   : > { %v669_v2 = vpop.f32.mrb[19].mxu0  ;;  %v678_v60 = vadd.f32 %v3780_v12, %v4361_v58  ;;  %v4629_v27 = vmax.f32 %v675_v59, 0.0  ;;  %v1499_v59 = vsel %vm4483_vm10, %v4461_v5, 0.0  ;;  %v1426_v12 = vrot.slane %v4558_v9, 7 }
 0x136   : > { %v4618_v56 = vmax.f32 %v667_v7, 0.0  ;;  %v775_v37 = vadd.f32 %v774_v3, %v4587_v50  ;;  %v670_v33 = vadd.f32 %v4361_v58, %v669_v2  ;;  %1532 = vst.msk [vmem:[#allocation2 + $0x30] sm:$0xff] %vm6364_vm0, %v1499_v59  ;;  %vm4651_vm14 = vcmp.ge.s32.totalorder %v1040_v54, 1 }
 0x137   : > { %1886 = vrot.lane.b32.xlu1 %v4407_v36, %s6396_s27  ;;  %v4647_v61 = vmax.f32 %v678_v60, 0.0  ;;  %v4663_v60 = vsel %vm6360_vm4, %v1424_v35, %v1426_v12  ;;  %v1505_v54 = vsel %vm4651_vm14, %v4608_v14, 0.0 }
 0x138   : > { %v776_v45 = vadd.f32 %v775_v37, %v4618_v56  ;;  %v4632_v7 = vmax.f32 %v670_v33, 0.0  ;;  %2080 = vrot.lane.b32.xlu0 %v4416_v41, %s6372_s25  ;;  %v1817_v33 = vsel %vm4636_vm13, %v4437_v49, 0.0  ;;  %1538 = vst.msk [vmem:[#allocation2 + $0x60] sm:$0xff] %vm6364_vm0, %v1505_v54  ;;  %v6466_v22 = vsel %vm4651_vm14, %v4663_v60, 0.0 }
 0x13a   : > { %v777_v2 = vadd.f32 %v776_v45, %v4632_v7  ;;  %v3783_v37 = vpop.f32.mrb[20].mxu0  ;;  %v1054_v45 = vand.u32 15, %v934_v42 }
 0x13b   : > { %v682_v55 = vpop.f32.mrb[21].mxu0  ;;  %1882 = vrot.lane.b32.xlu1 %v4434_v48, %s6396_s27  ;;  %v691_v24 = vadd.f32 %v3783_v37, %v4361_v58 }
 0x13c   : > { %v778_v59 = vadd.f32 %v777_v2, %v4629_v27  ;;  %v683_v36 = vadd.f32 %v4361_v58, %v682_v55  ;;  %v3784_v39 = vpop.f32.mrb[22].mxu0  ;;  %1884 = vrot.lane.b32.xlu0 %v1817_v33, %s6396_s27  ;;  %vm4689_vm15 = vcmp.ge.s32.totalorder %v1054_v45, 1 }
 0x13d   : > { %v694_v21 = vadd.f32 %v3784_v39, %v4361_v58  ;;  %v685_v35 = vpop.f32.mrb[23].mxu0  ;;  %v2342_v39 = vsel %vm4470_vm8, %v4437_v49, 0.0  ;;  %v4696_v54 = vmax.f32 %v691_v24, 0.0 }
 0x13e   : > { %v4677_v20 = vmax.f32 %v683_v36, 0.0  ;;  %v779_v2 = vadd.f32 %v778_v59, %v4647_v61  ;;  %v686_v37 = vadd.f32 %v4361_v58, %v685_v35  ;;  %v1503_v36 = vsel %vm4613_vm12, %v4565_v16, 0.0 }
 0x13f   : > { %2405 = vrot.lane.b32.xlu1 %v4434_v48, %s4092_s28  ;;  %1536 = vst.msk [vmem:[#allocation2 + $0x50] sm:$0xff] %vm6364_vm0, %v1503_v36  ;;  %v1507_v48 = vsel %vm4689_vm15, %v4663_v60, 0.0  ;;  %v4707_v49 = vmax.f32 %v694_v21, 0.0 }
 0x140   : > { %v780_v59 = vadd.f32 %v779_v2, %v4677_v20  ;;  %v4699_v35 = vmax.f32 %v686_v37, 0.0  ;;  %2407 = vrot.lane.b32.xlu0 %v2342_v39, %s4092_s28  ;;  %1540 = vst.msk [vmem:[#allocation2 + $0x70] sm:$0xff] %vm6364_vm0, %v1507_v48  ;;  %v2016_v2 = vsel %vm4380_vm6, %v4426_v46, 0.0 }
 0x142   : > { %v781_v45 = vadd.f32 %v780_v59, %v4699_v35  ;;  %v3787_v24 = vpop.f32.mrb[24].mxu0  ;;  %v2536_v59 = vsel %vm4299_vm1, %v4426_v46, 0.0 }
 0x143   : > { %v698_v37 = vpop.f32.mrb[25].mxu0  ;;  %2082 = vrot.lane.b32.xlu1 %v2016_v2, %s6372_s25  ;;  %v707_v36 = vadd.f32 %v3787_v24, %v4361_v58 }
 0x144   : > { %v782_v39 = vadd.f32 %v781_v45, %v4696_v54  ;;  %v699_v55 = vadd.f32 %v4361_v58, %v698_v37  ;;  %v3788_v42 = vpop.f32.mrb[26].mxu0  ;;  %2221 = vrot.lane.b32.xlu0 %v4440_v52, %s6358_s12 }
 0x145   : > { %v701_v21 = vpop.f32.mrb[27].mxu0  ;;  %v710_v2 = vadd.f32 %v3788_v42, %v4361_v58  ;;  %v4728_v24 = vmax.f32 %v707_v36, 0.0 }
 0x146   : > { %v4722_v48 = vmax.f32 %v699_v55, 0.0  ;;  %v783_v0 = vadd.f32 %v782_v39, %v4707_v49  ;;  %v702_v45 = vadd.f32 %v4361_v58, %v701_v21 }
 0x147   : > { %2600 = vrot.lane.b32.xlu1 %v2536_v59, %s6375_s26  ;;  %v4735_v30 = vmax.f32 %v710_v2, 0.0 }
 0x148   : > { %v784_v37 = vadd.f32 %v783_v0, %v4722_v48  ;;  %v4731_v10 = vmax.f32 %v702_v45, 0.0  ;;  %2739 = vrot.lane.b32.xlu0 %v4440_v52, %s6356_s20 }
 0x14a   : > { %v785_v46 = vadd.f32 %v784_v37, %v4731_v10  ;;  %v3791_v55 = vpop.f32.mrb[28].mxu0 }
 0x14b   : > { %v714_v39 = vpop.f32.mrb[29].mxu0  ;;  %2219 = vrot.lane.b32.xlu1 %v4430_v47, %s6358_s12  ;;  %v723_v42 = vadd.f32 %v3791_v55, %v4361_v58 }
 0x14c   : > { %v715_v36 = vadd.f32 %v4361_v58, %v714_v39  ;;  %v3792_v21 = vpop.f32.mrb[30].mxu0  ;;  %1574 = vrot.lane.b32.xlu0 %v4440_v52, %s6387_s18  ;;  %v786_v0 = vadd.f32 %v785_v46, %v4728_v24 }
 0x14d   : > { %v717_v59 = vpop.f32.mrb[31].mxu0  ;;  %v726_v45 = vadd.f32 %v3792_v21, %v4361_v58  ;;  %v4752_v55 = vmax.f32 %v723_v42, 0.0  ;;  %v4012_v42 = vld [vmem:[%s6335_s5] sm:$0xff]  }
 0x14e   : > { %v4745_v2 = vmax.f32 %v715_v36, 0.0  ;;  %v718_v37 = vadd.f32 %v4361_v58, %v717_v59  ;;  %v787_v40 = vadd.f32 %v786_v0, %v4735_v30  ;;  %3828 = vmatprep.subr.bf16.mxu1 %v4012_v42  ;;  %v1430_v59 = vrot.slane %v4567_v17, 7 }
 0x14f   : > { %2737 = vrot.lane.b32.xlu1 %v4430_v47, %s6356_s20  ;;  %6407 = vst [vmem:[#allocation8_spill] sm:$0xff] %v4752_v55  ;;  %v4759_v36 = vmax.f32 %v726_v45, 0.0  ;;  %v1432_v45 = vrot.slane %v4587_v50, 7 }
 0x150   : > { %v4754_v39 = vmax.f32 %v718_v37, 0.0  ;;  %2735 = vrot.lane.b32.xlu0 %v4442_v53, %s6356_s20  ;;  %v788_v46 = vadd.f32 %v787_v40, %v4745_v2  ;;  %v1428_v37 = vrot.slane %v4579_v62, 7 }
 0x151   : > { %6408 = vst [vmem:[#allocation9_spill] sm:$0xff] %v4759_v36 }
 0x152   : > { %v789_v21 = vadd.f32 %v788_v46, %v4754_v39  ;;  %v4793_v18 = vsel %vm6360_vm4, %v1426_v12, %v1428_v37  ;;  %v4801_v25 = vsel %vm6360_vm4, %v1428_v37, %v1430_v59 }
 0x153   : > { %1572 = vrot.lane.b32.xlu1 %v4430_v47, %s6387_s18  ;;  %v925_v47 = vadd.s32 40, %v4296_v28  ;;  %1541 = vst.msk [vmem:[#allocation2 + $0x78] sm:$0xff] %vm6364_vm0, %v4793_v18 }
 0x154   : > { %1570 = vrot.lane.b32.xlu0 %v4442_v53, %s6387_s18  ;;  %v790_v58 = vadd.f32 %v789_v21, %v4752_v55  ;;  %v4780_v21 = vsel %vm6360_vm4, %v1430_v59, %v1432_v45  ;;  %v2856_v59 = vsel %vm4470_vm8, %v4458_v4, 0.0 }
 0x155   : > { %1543 = vst.msk [vmem:[#allocation2 + $0x88] sm:$0xff] %vm6364_vm0, %v4780_v21 }
 0x156   : > { %v791_v0 = vadd.f32 %v790_v58, %v4759_v36  ;;  %v6409_v36 = vrot.slane %v4618_v56, 7 }
 0x157   : > { %2733 = vrot.lane.b32.xlu1 %v4422_v44, %s6356_s20  ;;  %s6422_s20 = smov 56  }
 0x158   : > { %2217 = vrot.lane.b32.xlu0 %v4442_v53, %s6358_s12  ;;  %v792_v40 = vrot.slane %v791_v0, 4  ;;  %v2344_v53 = vsel %vm4636_vm13, %v4458_v4, 0.0  ;;  %v4806_v55 = vsel %vm6360_vm4, %v1432_v45, %v6409_v36 }
 0x15a   : > { %v793_v46 = vadd.f32 %v792_v40, %v791_v0  ;;  %v936_v0 = vadd.s32 128, %v4296_v28  ;;  %v991_v40 = vand.u32 15, %v925_v47 }
 0x15b   : > { %1568 = vrot.lane.b32.xlu1 %v4422_v44, %s6387_s18 }
 0x15c   : > { %2411 = vrot.lane.b32.xlu0 %v2344_v53, %s4092_s28  ;;  %v794_v58 = vrot.slane %v793_v46, 2  ;;  %v1068_v45 = vand.u32 15, %v936_v0  ;;  %vm4823_vm1 = vcmp.le.s32.totalorder %v991_v40, 14  ;;  %v6416_v0 = vsel %vm4380_vm6, %v4461_v5, 0.0 }
 0x15e   : > { %v795_v12 = vadd.f32 %v794_v58, %v793_v46  ;;  %v1082_v58 = vand.u32 15, %v938_v26  ;;  %vm4827_vm2 = vcmp.ge.s32.totalorder %v1068_v45, 1  ;;  %v1819_v26 = vsel %vm4823_vm1, %v4458_v4, 0.0  ;;  %v4014_v45 = vld [vmem:[%s6335_s5 + $0x10] sm:$0xff]  }
 0x15f   : > { %2215 = vrot.lane.b32.xlu1 %v4422_v44, %s6358_s12  ;;  %v1509_v40 = vsel %vm4827_vm2, %v4801_v25, 0.0  ;;  %v2018_v4 = vsel %vm4474_vm9, %v4461_v5, 0.0  ;;  %v4015_v5 = vld [vmem:[%s6335_s5 + $0x18] sm:$0xff]   ;;  %s6420_s12 = smov 32   ;;  %v6517_v33 = vsel %vm4827_vm2, %v4806_v55, 0.0 }
 0x160   : > { %2921 = vrot.lane.b32.xlu0 %v2856_v59, %s4093_s21  ;;  %v796_v46 = vrot.slane %v795_v12, 1  ;;  %vm4834_vm8 = vcmp.ge.s32.totalorder %v1082_v58, 1  ;;  %1542 = vst.msk [vmem:[#allocation2 + $0x80] sm:$0xff] %vm6364_vm0, %v1509_v40  ;;  %v4017_v58 = vld [vmem:[%s6335_s5 + $0x28] sm:$0xff]   ;;  %v6419_v40 = vsel %vm4483_vm10, %v4516_v38, 0.0 }
 0x162   : > { %v797_v44 = vadd.f32 %v796_v46, %v795_v12  ;;  %v1511_v12 = vsel %vm4834_vm8, %v4806_v55, 0.0  ;;  %v4016_v46 = vld [vmem:[%s6335_s5 + $0x20] sm:$0xff]  }
 0x163   : > { %2604 = vrot.lane.b32.xlu1 %v6416_v0, %s6375_s26  ;;  %1544 = vst.msk [vmem:[#allocation2 + $0x90] sm:$0xff] %vm6364_vm0, %v1511_v12  ;;  %v4019_v0 = vld [vmem:[%s6335_s5 + $0x38] sm:$0xff]  }
 0x164   : > { %1888 = vrot.lane.b32.xlu0 %v1819_v26, %s6396_s27  ;;  %v798_v59 = vmul.f32 0.00390625, %v797_v44  ;;  %v2858_v44 = vsel %vm4636_vm13, %v4541_v19, 0.0  ;;  %v2346_v26 = vsel %vm4823_vm1, %v4541_v19, 0.0  ;;  %vm6367_vm13 = vcmask 326912  }
 0x166   : > { %3826 = vmatmul.mubr.f32.vlgmr.msra.gmra.mrb[0].mxu1 %v798_v59 }
 0x167   : > { %2086 = vrot.lane.b32.xlu1 %v2018_v4, %s6372_s25  ;;  %3829 = vmatpush3.bf16.msra.mxu1 %v4012_v42  ;;  %v927_v42 = vadd.s32 56, %v4296_v28  ;;  %v1736_v4 = vrot.slane %v4487_v13, 1 }
 0x168   : > { %2092 = vrot.lane.b32.xlu0 %v4499_v29, %s6372_s25  ;;  %3830 = vmatprep.subr.bf16.mxu1 %v4013_v11 }
 0x16b   : > { %2417 = vrot.lane.b32.xlu1 %v4504_v31, %s4092_s28  ;;  %3831 = vmatpush3.bf16.msra.mxu1 %v4013_v11 }
 0x16c   : > { %2610 = vrot.lane.b32.xlu0 %v4499_v29, %s6375_s26  ;;  %3832 = vmatprep.subr.bf16.mxu1 %v4014_v45  ;;  %v1005_v29 = vand.u32 15, %v927_v42  ;;  %v6423_v42 = vrot.slane %v4440_v52, 1 }
 0x16e   : > { %vm4895_vm6 = vcmp.le.s32.totalorder %v1005_v29, 14  ;;  %v929_v29 = vadd.s32 72, %v4296_v28 }
 0x16f   : > { %2927 = vrot.lane.b32.xlu1 %v4504_v31, %s4093_s21  ;;  %3833 = vmatpush3.bf16.msra.mxu1 %v4014_v45  ;;  %v1821_v3 = vsel %vm4895_vm6, %v4541_v19, 0.0 }
 0x170   : > { %2606 = vrot.lane.b32.xlu0 %v4507_v32, %s6375_s26  ;;  %3834 = vmatprep.subr.bf16.mxu1 %v4015_v5 }
 0x173   : > { %1894 = vrot.lane.b32.xlu1 %v4504_v31, %s6396_s27  ;;  %3835 = vmatpush3.bf16.msra.mxu1 %v4015_v5 }
 0x174   : > { %2088 = vrot.lane.b32.xlu0 %v4507_v32, %s6372_s25  ;;  %3836 = vmatprep.subr.bf16.mxu1 %v4016_v46  ;;  %v4018_v32 = vld [vmem:[%s6335_s5 + $0x30] sm:$0xff]  }
 0x177   : > { %2923 = vrot.lane.b32.xlu1 %v4538_v51, %s4093_s21  ;;  %3837 = vmatpush3.bf16.msra.mxu1 %v4016_v46  ;;  %v1737_v46 = vsel %vm6368_vm7, %v6423_v42, %v1736_v4  ;;  %v1019_v42 = vand.u32 15, %v929_v29 }
 0x178   : > { %2925 = vrot.lane.b32.xlu0 %v2858_v44, %s4093_s21  ;;  %3838 = vmatprep.subr.bf16.mxu1 %v4017_v58  ;;  %v1440_v44 = vrot.slane %v4647_v61, 7  ;;  %v2348_v52 = vsel %vm4895_vm6, %v1737_v46, 0.0 }
 0x17b   : > { %1890 = vrot.lane.b32.xlu1 %v4538_v51, %s6396_s27  ;;  %3839 = vmatpush3.bf16.msra.mxu1 %v4017_v58  ;;  %v1438_v58 = vrot.slane %v4629_v27, 7 }
 0x17c   : > { %1892 = vrot.lane.b32.xlu0 %v1821_v3, %s6396_s27  ;;  %3840 = vmatprep.subr.bf16.mxu1 %v4018_v32  ;;  %v1436_v3 = vrot.slane %v4632_v7, 7 }
 0x17f   : > { %2413 = vrot.lane.b32.xlu1 %v4538_v51, %s4092_s28  ;;  %3841 = vmatpush3.bf16.msra.mxu1 %v4018_v32  ;;  %v6421_v51 = vsel %vm4474_vm9, %v4516_v38, 0.0  ;;  %vm6362_vm9 = vcmask 261312  }
 0x180   : > { %2415 = vrot.lane.b32.xlu0 %v2346_v26, %s4092_s28  ;;  %3842 = vmatprep.subr.bf16.mxu1 %v4019_v0 }
 0x183   : > { %2090 = vrot.lane.b32.xlu1 %v6419_v40, %s6372_s25  ;;  %3843 = vmatpush3.bf16.msra.mxu1 %v4019_v0  ;;  %v6363_v0 = vrot.slane %v4677_v20, 7  ;;  %v4971_v40 = vsel %vm6360_vm4, %v1438_v58, %v1440_v44 }
 0x184   : > { %2229 = vrot.lane.b32.xlu0 %v4534_v43, %s6420_s12  ;;  %1547 = vst.msk [vmem:[#allocation2 + $0xa8] sm:$0xff] %vm6364_vm0, %v4971_v40 }
 0x185   : > { %v5001_v29 = vsel %vm6360_vm4, %v1440_v44, %v6363_v0  ;;  %v1742_v0 = vrot.slane %v4534_v43, 1 }
 0x187   : > { %2608 = vrot.lane.b32.xlu1 %v6421_v51, %s6375_s26  ;;  %v6424_v51 = vrot.slane %v4618_v56, 7 }
 0x188   : > { %2747 = vrot.lane.b32.xlu0 %v4534_v43, %s6422_s20 }
 0x189   : > { %v4931_v19 = vpop.permute.xlu1 %2211 }
 0x18a   : > { %v1561_v12 = vpop.permute.xlu0 %1560 }
 0x18b   : > { %1654 = vst.msk [vmem:[#allocation2 + $0x10] sm:$0xff] %vm6361_vm3, %v1561_v12  ;;  %2227 = vrot.lane.b32.xlu1 %v4492_v23, %s6420_s12  ;;  %v4982_v12 = vsel %vm6360_vm4, %v6424_v51, %v1436_v3 }
 0x18c   : > { %1582 = vrot.lane.b32.xlu0 %v4534_v43, %s6387_s18  ;;  %1545 = vst.msk [vmem:[#allocation2 + $0x98] sm:$0xff] %vm6364_vm0, %v4982_v12 }
 0x18d   : > { %v4938_v59 = vpop.permute.xlu1 %2729 }
 0x18e   : > { %v4940_v15 = vpop.permute.xlu0 %2213 }
 0x18f   : > { %2745 = vrot.lane.b32.xlu1 %v4492_v23, %s6422_s20 }
 0x190   : > { %2743 = vrot.lane.b32.xlu0 %v4510_v34, %s6422_s20 }
 0x191   : > { %v1565_v38 = vpop.permute.xlu1 %1564 }
 0x192   : > { %1656 = vst.msk [vmem:[#allocation2 + $0x20] sm:$0xff] %vm6361_vm3, %v1565_v38  ;;  %v4947_v11 = vpop.permute.xlu0 %2731  ;;  %v940_v38 = vadd.s32 160, %v4296_v28 }
 0x193   : > { %1580 = vrot.lane.b32.xlu1 %v4492_v23, %s6387_s18 }
 0x194   : > { %1578 = vrot.lane.b32.xlu0 %v4510_v34, %s6387_s18  ;;  %v1096_v53 = vand.u32 15, %v940_v38 }
 0x195   : > { %v2208_v45 = vpop.permute.xlu1 %2207 }
 0x196   : > { %v1567_v5 = vpop.permute.xlu0 %1566 }
 0x197   : > { %1657 = vst.msk [vmem:[#allocation2 + $0x28] sm:$0xff] %vm6361_vm3, %v1567_v5  ;;  %2741 = vrot.lane.b32.xlu1 %v4487_v13, %s6422_s20  ;;  %v942_v5 = vadd.s32 176, %v4296_v28 }
 0x198   : > { %2225 = vrot.lane.b32.xlu0 %v4510_v34, %s6420_s12 }
 0x199   : > { %v1563_v32 = vpop.permute.xlu1 %1562  ;;  %v1110_v44 = vand.u32 15, %v942_v5  ;;  %v6431_v5 = vsel %vm4483_vm10, %v4565_v16, 0.0  ;;  %vm6433_vm10 = vcmask 261312  }
 0x19a   : > { %1655 = vst.msk [vmem:[#allocation2 + $0x18] sm:$0xff] %vm6361_vm3, %v1563_v32  ;;  %v2210_v26 = vpop.permute.xlu0 %2209  ;;  %v4990_v32 = vsel %vm6360_vm4, %v1436_v3, %v1438_v58  ;;  %v2860_v3 = vsel %vm4823_vm1, %v1737_v46, 0.0  ;;  %vm5014_vm4 = vcmp.le.s32.totalorder %v1019_v42, 14  ;;  %vm5018_vm3 = vcmp.ge.s32.totalorder %v1096_v53, 1 }
 0x19b   : > { %1576 = vrot.lane.b32.xlu1 %v4487_v13, %s6387_s18  ;;  %v1513_v38 = vsel %vm5018_vm3, %v4990_v32, 0.0  ;;  %v1823_v42 = vsel %vm5014_vm4, %v1737_v46, 0.0  ;;  %vm6369_vm1 = vcmask 392512  }
 0x19c   : > { %2419 = vrot.lane.b32.xlu0 %v2348_v52, %s4092_s28  ;;  %1546 = vst.msk [vmem:[#allocation2 + $0xa0] sm:$0xff] %vm6364_vm0, %v1513_v38 }
 0x19d   : > { %v2079_v6 = vpop.permute.xlu1 %2078 }
 0x19e   : > { %2175 = vst.msk [vmem:[#allocation2] sm:$0xff] %vm6362_vm9, %v2079_v6  ;;  %v1881_v52 = vpop.permute.xlu0 %1880  ;;  %vm5022_vm9 = vcmp.ge.s32.totalorder %v1110_v44, 1 }
 0x19f   : > { %1976 = vst.msk [vmem:[#allocation2 + $0x8] sm:$0xff] %vm6365_vm5, %v1881_v52  ;;  %2223 = vrot.lane.b32.xlu1 %v4487_v13, %s6420_s12  ;;  %v1515_v53 = vsel %vm5022_vm9, %v5001_v29, 0.0 }
 0x1a0   : > { %2304 = vst.msk [vmem:[#allocation2] sm:$0xff] %vm6367_vm13, %v2208_v45  ;;  %2929 = vrot.lane.b32.xlu0 %v2860_v3, %s4093_s21  ;;  %v1740_v45 = vrot.slane %v4492_v23, 1 }
 0x1a1   : > { %v2410_v51 = vpop.permute.xlu1 %2409  ;;  %1548 = vst.msk [vmem:[#allocation2 + $0xb0] sm:$0xff] %vm6364_vm0, %v1515_v53  ;;  %vm6434_vm0 = vmmov %vm6433_vm10 }
 0x1a2   : > { %v2085_v37 = vpop.permute.xlu0 %2084  ;;  %v1743_v53 = vsel %vm6368_vm7, %v1740_v45, %v1742_v0 }
 0x1a3   : > { %2612 = vrot.lane.b32.xlu1 %v6431_v5, %s6375_s26  ;;  %v1738_v5 = vrot.slane %v4510_v34, 1 }
 0x1a4   : > { %1896 = vrot.lane.b32.xlu0 %v1823_v42, %s6396_s27 }
 0x1a5   : > { %v2920_v3 = vpop.permute.xlu1 %2919  ;;  %v1741_v34 = vsel %vm6368_vm7, %v1738_v5, %v1740_v45 }
 0x1a6   : > { %v2603_v44 = vpop.permute.xlu0 %2602  ;;  %v2350_v45 = vsel %vm5014_vm4, %v1741_v34, 0.0 }
 0x1a7   : > { %2094 = vrot.lane.b32.xlu1 %v6432_v8, %s6372_s25 }
 0x1a8   : > { %2100 = vrot.lane.b32.xlu0 %v4591_v57, %s6372_s25 }
 0x1a9   : > { %v1887_v46 = vpop.permute.xlu1 %1886 }
 0x1aa   : > { %1979 = vst.msk [vmem:[#allocation2 + $0x20] sm:$0xff] %vm6365_vm5, %v1887_v46  ;;  %v2081_v38 = vpop.permute.xlu0 %2080  ;;  %v1739_v46 = vsel %vm6368_vm7, %v1736_v4, %v1738_v5  ;;  %vm6443_vm7 = vcmask 130112  }
 0x1ab   : > { %2176 = vst.msk [vmem:[#allocation2 + $0x8] sm:$0xff] %vm6433_vm10, %v2081_v38  ;;  %2425 = vrot.lane.b32.xlu1 %v1743_v53, %s4092_s28  ;;  %vm6371_vm10 = vcmask 458112  }
 0x1ac   : > { %2618 = vrot.lane.b32.xlu0 %v4591_v57, %s6375_s26  ;;  %2305 = vst.msk [vmem:[#allocation2 + $0x8] sm:$0xff] %vm6367_vm13, %v2210_v26  ;;  %v931_v57 = vadd.s32 88, %v4296_v28 }
 0x1ad   : > { %v1883_v23 = vpop.permute.xlu1 %1882 }
 0x1ae   : > { %1977 = vst.msk [vmem:[#allocation2 + $0x10] sm:$0xff] %vm6365_vm5, %v1883_v23  ;;  %v1885_v16 = vpop.permute.xlu0 %1884  ;;  %v6442_v23 = vsel %vm4613_vm12, %v4608_v14, 0.0 }
 0x1af   : > { %1978 = vst.msk [vmem:[#allocation2 + $0x18] sm:$0xff] %vm6365_vm5, %v1885_v16  ;;  %2935 = vrot.lane.b32.xlu1 %v1743_v53, %s4093_s21  ;;  %vm6366_vm5 = vcmask 523712  }
 0x1b0   : > { %2178 = vst.msk [vmem:[#allocation2 + $0x18] sm:$0xff] %vm6434_vm0, %v2085_v37  ;;  %2614 = vrot.lane.b32.xlu0 %v4599_v1, %s6375_s26  ;;  %v1033_v37 = vand.u32 15, %v931_v57  ;;  %v6445_v57 = vsel %vm4552_vm11, %v4608_v14, 0.0  ;;  %v1448_v14 = vrot.slane %v4707_v49, 7  ;;  %vm6446_vm11 = vcmask 1040384  }
 0x1b1   : > { %v2406_v42 = vpop.permute.xlu1 %2405  ;;  %2307 = vst.msk [vmem:[#allocation2 + $0x18] sm:$0xff] %vm6367_vm13, %v4940_v15 }
 0x1b2   : > { %2502 = vst.msk [vmem:[#allocation2] sm:$0xff] %vm6369_vm1, %v2406_v42  ;;  %v2408_v26 = vpop.permute.xlu0 %2407 }
 0x1b3   : > { %2503 = vst.msk [vmem:[#allocation2 + $0x8] sm:$0xff] %vm6369_vm1, %v2408_v26  ;;  %1902 = vrot.lane.b32.xlu1 %v1743_v53, %s6396_s27 }
 0x1b4   : > { %2698 = vst.msk [vmem:[#allocation2 + $0x8] sm:$0xff] %vm6371_vm10, %v2603_v44  ;;  %2096 = vrot.lane.b32.xlu0 %v4599_v1, %s6372_s25  ;;  %v2862_v1 = vsel %vm4895_vm6, %v1741_v34, 0.0  ;;  %vm6438_vm6 = vcmask 130112  }
 0x1b5   : > { %v2083_v8 = vpop.permute.xlu1 %2082  ;;  %2824 = vst.msk [vmem:[#allocation2 + $0x8] sm:$0xff] %vm6366_vm5, %v4947_v11  ;;  %vm5095_vm5 = vcmp.le.s32.totalorder %v1033_v37, 14  ;;  %v1446_v37 = vrot.slane %v4696_v54, 7 }
 0x1b6   : > { %2177 = vst.msk [vmem:[#allocation2 + $0x10] sm:$0xff] %vm6434_vm0, %v2083_v8  ;;  %v5083_v15 = vpop.permute.xlu0 %2221  ;;  %vm6370_vm0 = vcmask 589312   ;;  %v1825_v31 = vsel %vm5095_vm5, %v1741_v34, 0.0  ;;  %v1450_v8 = vrot.slane %v4722_v48, 7 }
 0x1b7   : > { %2306 = vst.msk [vmem:[#allocation2 + $0x10] sm:$0xff] %vm6367_vm13, %v4931_v19  ;;  %2931 = vrot.lane.b32.xlu1 %v1739_v46, %s4093_s21  ;;  %vm6437_vm13 = vcmask 523712  }
 0x1b8   : > { %2504 = vst.msk [vmem:[#allocation2 + $0x10] sm:$0xff] %vm6369_vm1, %v2410_v51  ;;  %2933 = vrot.lane.b32.xlu0 %v2862_v1, %s4093_s21  ;;  %v944_v1 = vadd.s32 192, %v4296_v28 }
 0x1b9   : > { %v2601_v13 = vpop.permute.xlu1 %2600 }
 0x1ba   : > { %2697 = vst.msk [vmem:[#allocation2] sm:$0xff] %vm6371_vm10, %v2601_v13  ;;  %v5100_v4 = vpop.permute.xlu0 %2739  ;;  %v946_v13 = vadd.s32 208, %v4296_v28 }
 0x1bb   : > { %2823 = vst.msk [vmem:[#allocation2] sm:$0xff] %vm6437_vm13, %v4938_v59  ;;  %1898 = vrot.lane.b32.xlu1 %v1739_v46, %s6396_s27  ;;  %v1444_v59 = vrot.slane %v4699_v35, 7  ;;  %vm6440_vm13 = vcmask 1040384  }
 0x1bc   : > { %3016 = vst.msk [vmem:[#allocation2] sm:$0xff] %vm6370_vm0, %v2920_v3  ;;  %1900 = vrot.lane.b32.xlu0 %v1825_v31, %s6396_s27  ;;  %v6439_v3 = vrot.slane %v4677_v20, 7 }
 0x1bd   : > { %v5109_v19 = vpop.permute.xlu1 %2219 }
 0x1be   : > { %v1575_v51 = vpop.permute.xlu0 %1574  ;;  %v5122_v38 = vsel %vm6440_vm13, %v6439_v3, %v1444_v59  ;;  %vm6444_vm13 = vmmov %vm6443_vm7 }
 0x1bf   : > { %1661 = vst.msk [vmem:[#allocation2 + $0x48] sm:$0xff] %vm6438_vm6, %v1575_v51  ;;  %2421 = vrot.lane.b32.xlu1 %v1739_v46, %s4092_s28  ;;  %vm6441_vm6 = vcmask 64512   ;;  %v5158_v46 = vsel %vm6446_vm11, %v1444_v59, %v1446_v37 }
 0x1c0   : > { %2423 = vrot.lane.b32.xlu0 %v2350_v45, %s4092_s28  ;;  %1549 = vst.msk [vmem:[#allocation2 + $0xb8] sm:$0xff] %vm6441_vm6, %v5122_v38  ;;  %vm6447_vm6 = vmmov %vm6446_vm11 }
 0x1c1   : > { %v5117_v44 = vpop.permute.xlu1 %2737  ;;  %v5168_v51 = vsel %vm6447_vm6, %v1446_v37, %v1448_v14 }
 0x1c2   : > { %v5124_v53 = vpop.permute.xlu0 %2735 }
 0x1c3   : > { %2098 = vrot.lane.b32.xlu1 %v6442_v23, %s6372_s25 }
 0x1c4   : > { %2237 = vrot.lane.b32.xlu0 %v4587_v50, %s6420_s12 }
 0x1c5   : > { %v1573_v16 = vpop.permute.xlu1 %1572 }
 0x1c6   : > { %1660 = vst.msk [vmem:[#allocation2 + $0x40] sm:$0xff] %vm6443_vm7, %v1573_v16  ;;  %v1571_v5 = vpop.permute.xlu0 %1570 }
 0x1c7   : > { %1659 = vst.msk [vmem:[#allocation2 + $0x38] sm:$0xff] %vm6444_vm13, %v1571_v5  ;;  %2616 = vrot.lane.b32.xlu1 %v6445_v57, %s6375_s26  ;;  %vm6448_vm13 = vcmask 64512   ;;  %v1124_v5 = vand.u32 15, %v944_v1  ;;  %v1138_v57 = vand.u32 15, %v946_v13  ;;  %v3048_v1 = vld [vmem:[#allocation2] sm:$0xff] }
 0x1c8   : > { %2755 = vrot.lane.b32.xlu0 %v4587_v50, %s6422_s20  ;;  %1551 = vst.msk [vmem:[#allocation2 + $0xc8] sm:$0xff] %vm6448_vm13, %v5168_v51  ;;  %vm6454_vm13 = vcmask 523712  }
 0x1c9   : > { %v2734_v42 = vpop.permute.xlu1 %2733  ;;  %vm5189_vm11 = vcmp.ge.s32.totalorder %v1124_v5, 1 }
 0x1ca   : > { %v5144_v26 = vpop.permute.xlu0 %2217  ;;  %v1517_v13 = vsel %vm5189_vm11, %v5158_v46, 0.0 }
 0x1cb   : > { %2235 = vrot.lane.b32.xlu1 %v4567_v17, %s6420_s12 }
 0x1cc   : > { %1590 = vrot.lane.b32.xlu0 %v4587_v50, %s6387_s18 }
 0x1cd   : > { %v1569_v34 = vpop.permute.xlu1 %1568 }
 0x1ce   : > { %1658 = vst.msk [vmem:[#allocation2 + $0x30] sm:$0xff] %vm6443_vm7, %v1569_v34  ;;  %v2412_v63 = vpop.permute.xlu0 %2411  ;;  %vm6449_vm7 = vmmov %vm6447_vm6  ;;  %v1744_v34 = vrot.slane %v4558_v9, 1  ;;  %vm5193_vm6 = vcmp.ge.s32.totalorder %v1138_v57, 1 }
 0x1cf   : > { %2505 = vst.msk [vmem:[#allocation2 + $0x18] sm:$0xff] %vm6369_vm1, %v2412_v63  ;;  %2753 = vrot.lane.b32.xlu1 %v4567_v17, %s6422_s20  ;;  %v5178_v23 = vsel %vm6449_vm7, %v1448_v14, %v1450_v8  ;;  %vm6455_vm7 = vcmask 195712   ;;  %vm6456_vm1 = vcmask 64512  }
 0x1d0   : > { %2751 = vrot.lane.b32.xlu0 %v4579_v62, %s6422_s20  ;;  %v1519_v5 = vsel %vm5193_vm6, %v5178_v23, 0.0  ;;  %1550 = vst.msk [vmem:[#allocation2 + $0xc0] sm:$0xff] %vm6456_vm1, %v1517_v13  ;;  %v6589_v58 = vsel %vm5022_vm9, %v5178_v23, 0.0 }
 0x1d1   : > { %v2216_v45 = vpop.permute.xlu1 %2215 }
 0x1d2   : > { %v2922_v3 = vpop.permute.xlu0 %2921 }
 0x1d3   : > { %3017 = vst.msk [vmem:[#allocation2 + $0x8] sm:$0xff] %vm6370_vm0, %v2922_v3  ;;  %1588 = vrot.lane.b32.xlu1 %v4567_v17, %s6387_s18  ;;  %vm6457_vm0 = vmmov %vm6456_vm1  ;;  %vm6460_vm1 = vcmask 326912  }
 0x1d4   : > { %1586 = vrot.lane.b32.xlu0 %v4579_v62, %s6387_s18  ;;  %1552 = vst.msk [vmem:[#allocation2 + $0xd0] sm:$0xff] %vm6457_vm0, %v1519_v5  ;;  %vm6463_vm0 = vcmask 458112  }
 0x1d5   : > { %v2605_v37 = vpop.permute.xlu1 %2604 }
 0x1d6   : > { %2699 = vst.msk [vmem:[#allocation2 + $0x10] sm:$0xff] %vm6371_vm10, %v2605_v37  ;;  %v1889_v3 = vpop.permute.xlu0 %1888  ;;  %vm6458_vm10 = vcmask 1046528  }
 0x1d7   : > { %2825 = vst.msk [vmem:[#allocation2 + $0x10] sm:$0xff] %vm6454_vm13, %v2734_v42  ;;  %2749 = vrot.lane.b32.xlu1 %v4558_v9, %s6422_s20  ;;  %v1745_v57 = vsel %vm6458_vm10, %v1742_v0, %v1744_v34  ;;  %v933_v42 = vadd.s32 104, %v4296_v28  ;;  %vm6459_vm13 = vcmask 261312  }
 0x1d8   : > { %1980 = vst.msk [vmem:[#allocation2 + $0x28] sm:$0xff] %vm6455_vm7, %v1889_v3  ;;  %2233 = vrot.lane.b32.xlu0 %v4579_v62, %s6420_s12  ;;  %v2352_v13 = vsel %vm5095_vm5, %v1745_v57, 0.0 }
 0x1d9   : > { %v2087_v37 = vpop.permute.xlu1 %2086  ;;  %v1047_v43 = vand.u32 15, %v933_v42 }
 0x1da   : > { %2179 = vst.msk [vmem:[#allocation2 + $0x20] sm:$0xff] %vm6459_vm13, %v2087_v37  ;;  %v2093_v3 = vpop.permute.xlu0 %2092  ;;  %v3049_v16 = vld [vmem:[#allocation2 + $0x8] sm:$0xff]  ;;  %v2864_v37 = vsel %vm5014_vm4, %v1745_v57, 0.0  ;;  %vm6465_vm4 = vcmask 523712  }
 0x1db   : > { %2308 = vst.msk [vmem:[#allocation2 + $0x20] sm:$0xff] %vm6460_vm1, %v2216_v45  ;;  %1584 = vrot.lane.b32.xlu1 %v4558_v9, %s6387_s18  ;;  %v3080_v5 = vpack.c.bf16 %v3049_v16, %v3048_v1  ;;  %vm5233_vm10 = vcmp.le.s32.totalorder %v1047_v43, 14  ;;  %v6464_v1 = vsel %vm4613_vm12, %v4663_v60, 0.0  ;;  %v1750_v43 = vrot.slane %v4587_v50, 1  ;;  %vm6467_vm12 = vmmov %vm6460_vm1 }
 0x1dc   : > { %2427 = vrot.lane.b32.xlu0 %v2352_v13, %s4092_s28  ;;  %v1827_v6 = vsel %vm5233_vm10, %v1745_v57, 0.0  ;;  %vm6468_vm1 = vcmask 589312   ;;  %v6516_v45 = vsel %vm4689_vm15, %v4806_v55, 0.0  ;;  %v939_v55 = vadd.s32 152, %v4296_v28 }
 0x1dd   : > { %v2418_v0 = vpop.permute.xlu1 %2417  ;;  %3844 = vmatprep.mubr.bf16.mxu1 %v3080_v5  ;;  %v1748_v5 = vrot.slane %v4567_v17, 1 }
 0x1de   : > { %v2611_v59 = vpop.permute.xlu0 %2610 }
 0x1df   : > { %2231 = vrot.lane.b32.xlu1 %v4558_v9, %s6420_s12 }
 0x1e0   : > { %2937 = vrot.lane.b32.xlu0 %v2864_v37, %s4093_s21  ;;  %v1746_v37 = vrot.slane %v4579_v62, 1 }
 0x1e1   : > { %v5237_v31 = vpop.permute.xlu1 %2927 }
 0x1e2   : > { %v2607_v16 = vpop.permute.xlu0 %2606 }
 0x1e3   : > { %2700 = vst.msk [vmem:[#allocation2 + $0x18] sm:$0xff] %vm6463_vm0, %v2607_v16  ;;  %2620 = vrot.lane.b32.xlu1 %v6464_v1, %s6375_s26  ;;  %vm6469_vm0 = vcmask 1046528   ;;  %v935_v16 = vadd.s32 120, %v4296_v28 }
 0x1e4   : > { %2826 = vst.msk [vmem:[#allocation2 + $0x18] sm:$0xff] %vm6465_vm4, %v5124_v53  ;;  %1904 = vrot.lane.b32.xlu0 %v1827_v6, %s6396_s27  ;;  %v1751_v57 = vsel %vm6469_vm0, %v1748_v5, %v1750_v43  ;;  %vm6470_vm4 = vmmov %vm6468_vm1  ;;  %vm6474_vm0 = vcmask 392512  }
 0x1e5   : > { %v1895_v42 = vpop.permute.xlu1 %1894 }
 0x1e6   : > { %1983 = vst.msk [vmem:[#allocation2 + $0x40] sm:$0xff] %vm6455_vm7, %v1895_v42  ;;  %v2089_v13 = vpop.permute.xlu0 %2088 }
 0x1e7   : > { %2180 = vst.msk [vmem:[#allocation2 + $0x28] sm:$0xff] %vm6459_vm13, %v2089_v13  ;;  %2102 = vrot.lane.b32.xlu1 %v6466_v22, %s6372_s25  ;;  %vm6471_vm13 = vmmov %vm6455_vm7  ;;  %v1061_v13 = vand.u32 15, %v935_v16  ;;  %v1454_v16 = vrot.slane %v4728_v24, 7 }
 0x1e8   : > { %2309 = vst.msk [vmem:[#allocation2 + $0x28] sm:$0xff] %vm6467_vm12, %v5144_v26  ;;  %2108 = vrot.lane.b32.xlu0 %v4780_v21, %s6372_s25  ;;  %vm6472_vm12 = vcmask 261312  }
 0x1e9   : > { %v2924_v53 = vpop.permute.xlu1 %2923 }
 0x1ea   : > { %3018 = vst.msk [vmem:[#allocation2 + $0x10] sm:$0xff] %vm6468_vm1, %v2924_v53  ;;  %v2926_v17 = vpop.permute.xlu0 %2925  ;;  %vm6473_vm1 = vcmask 326912  }
 0x1eb   : > { %3019 = vst.msk [vmem:[#allocation2 + $0x18] sm:$0xff] %vm6470_vm4, %v2926_v17  ;;  %2433 = vrot.lane.b32.xlu1 %v1751_v57, %s4092_s28  ;;  %vm6475_vm4 = vmmov %vm6474_vm0 }
 0x1ec   : > { %2626 = vrot.lane.b32.xlu0 %v4780_v21, %s6375_s26 }
 0x1ed   : > { %v1891_v60 = vpop.permute.xlu1 %1890 }
 0x1ee   : > { %1981 = vst.msk [vmem:[#allocation2 + $0x30] sm:$0xff] %vm6455_vm7, %v1891_v60  ;;  %v1893_v26 = vpop.permute.xlu0 %1892  ;;  %vm6476_vm7 = vcmask 458112  }
 0x1ef   : > { %1982 = vst.msk [vmem:[#allocation2 + $0x38] sm:$0xff] %vm6471_vm13, %v1893_v26  ;;  %2943 = vrot.lane.b32.xlu1 %v1751_v57, %s4093_s21  ;;  %vm6477_vm13 = vcmask 1046528  }
 0x1f0   : > { %2182 = vst.msk [vmem:[#allocation2 + $0x38] sm:$0xff] %vm6472_vm12, %v2093_v3  ;;  %2622 = vrot.lane.b32.xlu0 %v4793_v18, %s6375_s26  ;;  %v1749_v62 = vsel %vm6477_vm13, %v1746_v37, %v1748_v5  ;;  %vm6478_vm12 = vcmask 523712  }
 0x1f1   : > { %2311 = vst.msk [vmem:[#allocation2 + $0x38] sm:$0xff] %vm6473_vm1, %v5083_v15  ;;  %v2414_v21 = vpop.permute.xlu1 %2413  ;;  %v3050_v1 = vld [vmem:[#allocation2 + $0x10] sm:$0xff]  ;;  %vm6479_vm1 = vcmask 261312  }
 0x1f2   : > { %2506 = vst.msk [vmem:[#allocation2 + $0x20] sm:$0xff] %vm6474_vm0, %v2414_v21  ;;  %v2416_v6 = vpop.permute.xlu0 %2415  ;;  %v3051_v42 = vld [vmem:[#allocation2 + $0x18] sm:$0xff]  ;;  %vm6480_vm0 = vmmov %vm6477_vm13  ;;  %vm5303_vm13 = vcmp.le.s32.totalorder %v1061_v13, 14 }
 0x1f3   : > { %2507 = vst.msk [vmem:[#allocation2 + $0x28] sm:$0xff] %vm6475_vm4, %v2416_v6  ;;  %1910 = vrot.lane.b32.xlu1 %v1751_v57, %s6396_s27  ;;  %v3081_v3 = vpack.c.bf16 %v3051_v42, %v3050_v1  ;;  %v1747_v53 = vsel %vm6480_vm0, %v1744_v34, %v1746_v37  ;;  %vm6481_vm4 = vcmask 326912   ;;  %v1829_v11 = vsel %vm5303_vm13, %v1749_v62, 0.0 }
 0x1f4   : > { %2702 = vst.msk [vmem:[#allocation2 + $0x28] sm:$0xff] %vm6476_vm7, %v2611_v59  ;;  %2104 = vrot.lane.b32.xlu0 %v4793_v18, %s6372_s25  ;;  %v2866_v18 = vsel %vm5095_vm5, %v1749_v62, 0.0  ;;  %vm6482_vm7 = vcmask 392512   ;;  %vm6487_vm5 = vcmask 589312   ;;  %vm6488_vm0 = vcmask 130112  }
 0x1f5   : > { %2828 = vst.msk [vmem:[#allocation2 + $0x28] sm:$0xff] %vm6478_vm12, %v5100_v4  ;;  %v2091_v15 = vpop.permute.xlu1 %2090  ;;  %3845 = vmatmul.mubr.bf16.vlgmr.msra.gmra.mrb[4].mxu1 %v3081_v3  ;;  %vm6485_vm12 = vcmask 458112   ;;  %v6491_v57 = vsel %vm4689_vm15, %v4801_v25, 0.0  ;;  %v1456_v1 = vrot.slane %v4735_v30, 7  ;;  %v1458_v6 = vrot.slane %v4745_v2, 7 }
 0x1f6   : > { %2181 = vst.msk [vmem:[#allocation2 + $0x30] sm:$0xff] %vm6479_vm1, %v2091_v15  ;;  %v5291_v22 = vpop.permute.xlu0 %2229  ;;  %vm6486_vm1 = vcmask 523712   ;;  %v950_v42 = vadd.s32 240, %v4296_v28  ;;  %v1752_v3 = vrot.slane %v4618_v56, 1  ;;  %vm6518_vm15 = vcmask 1046528  }
 0x1f7   : > { %2310 = vst.msk [vmem:[#allocation2 + $0x30] sm:$0xff] %vm6481_vm4, %v5109_v19  ;;  %2939 = vrot.lane.b32.xlu1 %v1747_v53, %s4093_s21  ;;  %vm6489_vm4 = vcmask 1040384  }
 0x1f8   : > { %2508 = vst.msk [vmem:[#allocation2 + $0x30] sm:$0xff] %vm6482_vm7, %v2418_v0  ;;  %2941 = vrot.lane.b32.xlu0 %v2866_v18, %s4093_s21  ;;  %v1452_v0 = vrot.slane %v4731_v10, 7  ;;  %vm6490_vm7 = vcmask 64512  }
 0x1f9   : > { %v2609_v59 = vpop.permute.xlu1 %2608 }
 0x1fa   : > { %2701 = vst.msk [vmem:[#allocation2 + $0x20] sm:$0xff] %vm6485_vm12, %v2609_v59  ;;  %v5308_v9 = vpop.permute.xlu0 %2747  ;;  %vm6492_vm12 = vmmov %vm6488_vm0 }
 0x1fb   : > { %2827 = vst.msk [vmem:[#allocation2 + $0x20] sm:$0xff] %vm6486_vm1, %v5117_v44  ;;  %1906 = vrot.lane.b32.xlu1 %v1747_v53, %s6396_s27  ;;  %v2354_v44 = vsel %vm5233_vm10, %v1749_v62, 0.0  ;;  %vm6493_vm1 = vmmov %vm6488_vm0 }
 0x1fc   : > { %3020 = vst.msk [vmem:[#allocation2 + $0x20] sm:$0xff] %vm6487_vm5, %v5237_v31  ;;  %1908 = vrot.lane.b32.xlu0 %v1829_v11, %s6396_s27  ;;  %v5331_v31 = vsel %vm6489_vm4, %v1450_v8, %v1452_v0  ;;  %v6494_v8 = vsel %vm4651_vm14, %v4801_v25, 0.0  ;;  %vm6495_vm5 = vmmov %vm6489_vm4  ;;  %v948_v25 = vadd.s32 224, %v4296_v28 }
 0x1fd   : > { %v5318_v19 = vpop.permute.xlu1 %2227  ;;  %1553 = vst.msk [vmem:[#allocation2 + $0xd8] sm:$0xff] %vm6490_vm7, %v5331_v31  ;;  %v5361_v41 = vsel %vm6495_vm5, %v1452_v0, %v1454_v16  ;;  %vm6496_vm14 = vmmov %vm6489_vm4 }
 0x1fe   : > { %v1583_v34 = vpop.permute.xlu0 %1582  ;;  %v2040_v62 = vsel %vm5193_vm6, %v5361_v41, 0.0  ;;  %v5372_v13 = vsel %vm6496_vm14, %v1454_v16, %v1456_v1  ;;  %vm6498_vm4 = vmmov %vm6493_vm1 }
 0x1ff   : > { %1665 = vst.msk [vmem:[#allocation2 + $0x68] sm:$0xff] %vm6488_vm0, %v1583_v34  ;;  %2429 = vrot.lane.b32.xlu1 %v1747_v53, %s4092_s28  ;;  %vm6497_vm0 = vmmov %vm6490_vm7  ;;  %v2560_v53 = vsel %vm5189_vm11, %v5361_v41, 0.0  ;;  %v1152_v34 = vand.u32 15, %v948_v25 }
 0x200   : > { %2431 = vrot.lane.b32.xlu0 %v2354_v44, %s4092_s28  ;;  %1555 = vst.msk [vmem:[#allocation2 + $0xe8] sm:$0xff] %vm6497_vm0, %v5372_v13  ;;  %vm6499_vm7 = vmmov %vm6495_vm5  ;;  %v1166_v44 = vand.u32 15, %v950_v42  ;;  %vm6506_vm0 = vcmask 589312  }
 0x201   : > { %v5326_v5 = vpop.permute.xlu1 %2745  ;;  %v5383_v59 = vsel %vm6499_vm7, %v1456_v1, %v1458_v6  ;;  %vm5399_vm5 = vcmp.ge.s32.totalorder %v1152_v34, 1 }
 0x202   : > { %v5333_v17 = vpop.permute.xlu0 %2743  ;;  %v2562_v11 = vsel %vm5193_vm6, %v5383_v59, 0.0  ;;  %vm5403_vm14 = vcmp.ge.s32.totalorder %v1166_v44, 1  ;;  %v2042_v1 = vsel %vm5399_vm5, %v5383_v59, 0.0  ;;  %v1521_v50 = vsel %vm5399_vm5, %v5361_v41, 0.0 }
 0x203   : > { %2106 = vrot.lane.b32.xlu1 %v6491_v57, %s6372_s25  ;;  %v937_v57 = vadd.s32 136, %v4296_v28 }
 0x204   : > { %2245 = vrot.lane.b32.xlu0 %v4647_v61, %s6420_s12 }
 0x205   : > { %v1581_v60 = vpop.permute.xlu1 %1580  ;;  %v1075_v42 = vand.u32 15, %v937_v57 }
 0x206   : > { %1664 = vst.msk [vmem:[#allocation2 + $0x60] sm:$0xff] %vm6492_vm12, %v1581_v60  ;;  %v1579_v26 = vpop.permute.xlu0 %1578  ;;  %vm6500_vm12 = vcmask 392512  }
 0x207   : > { %1663 = vst.msk [vmem:[#allocation2 + $0x58] sm:$0xff] %vm6493_vm1, %v1579_v26  ;;  %2624 = vrot.lane.b32.xlu1 %v6494_v8, %s6375_s26  ;;  %vm6501_vm1 = vcmask 1046528  }
 0x208   : > { %2759 = vrot.lane.b32.xlu0 %v4632_v7, %s6422_s20  ;;  %v1753_v0 = vsel %vm6501_vm1, %v1750_v43, %v1752_v3  ;;  %v1523_v43 = vsel %vm5403_vm14, %v5383_v59, 0.0  ;;  %vm6510_vm1 = vcmask 523712   ;;  %v6660_v59 = vld [vmem:[#allocation9_spill] sm:$0xff] }
 0x209   : > { %v2742_v37 = vpop.permute.xlu1 %2741  ;;  %v2356_v25 = vsel %vm5303_vm13, %v1753_v0, 0.0  ;;  %v2868_v34 = vsel %vm5233_vm10, %v1753_v0, 0.0  ;;  %vm6519_vm10 = vcmask 458112  }
 0x20a   : > { %v5354_v21 = vpop.permute.xlu0 %2225 }
 0x20b   : > { %2243 = vrot.lane.b32.xlu1 %v4629_v27, %s6420_s12 }
 0x20c   : > { %1594 = vrot.lane.b32.xlu0 %v4632_v7, %s6387_s18 }
 0x20d   : > { %v1577_v15 = vpop.permute.xlu1 %1576 }
 0x20e   : > { %1662 = vst.msk [vmem:[#allocation2 + $0x50] sm:$0xff] %vm6498_vm4, %v1577_v15  ;;  %v2420_v18 = vpop.permute.xlu0 %2419  ;;  %vm6507_vm4 = vcmask 64512  }
 0x20f   : > { %2509 = vst.msk [vmem:[#allocation2 + $0x38] sm:$0xff] %vm6500_vm12, %v2420_v18  ;;  %2757 = vrot.lane.b32.xlu1 %v4618_v56, %s6422_s20  ;;  %vm6508_vm7 = vmmov %vm6507_vm4  ;;  %vm6509_vm12 = vcmask 458112  }
 0x210   : > { %2241 = vrot.lane.b32.xlu0 %v4632_v7, %s6420_s12  ;;  %1554 = vst.msk [vmem:[#allocation2 + $0xe0] sm:$0xff] %vm6507_vm4, %v1521_v50  ;;  %vm5432_vm4 = vcmp.le.s32.totalorder %v1075_v42, 14  ;;  %v3052_v50 = vld [vmem:[#allocation2 + $0x20] sm:$0xff] }
 0x211   : > { %v2224_v60 = vpop.permute.xlu1 %2223  ;;  %1556 = vst.msk [vmem:[#allocation2 + $0xf0] sm:$0xff] %vm6508_vm7, %v1523_v43  ;;  %vm6514_vm7 = vcmask 261312   ;;  %v1831_v43 = vsel %vm5432_vm4, %v1753_v0, 0.0 }
 0x212   : > { %v2930_v16 = vpop.permute.xlu0 %2929 }
 0x213   : > { %3021 = vst.msk [vmem:[#allocation2 + $0x28] sm:$0xff] %vm6506_vm0, %v2930_v16  ;;  %1592 = vrot.lane.b32.xlu1 %v4618_v56, %s6387_s18  ;;  %vm6511_vm0 = vcmask 195712  }
 0x214   : > { %2435 = vrot.lane.b32.xlu0 %v2356_v25, %s4092_s28 }
 0x215   : > { %v2613_v15 = vpop.permute.xlu1 %2612 }
 0x216   : > { %2703 = vst.msk [vmem:[#allocation2 + $0x30] sm:$0xff] %vm6509_vm12, %v2613_v15  ;;  %v1897_v18 = vpop.permute.xlu0 %1896  ;;  %vm6515_vm12 = vcmask 326912  }
 0x217   : > { %2829 = vst.msk [vmem:[#allocation2 + $0x30] sm:$0xff] %vm6510_vm1, %v2742_v37  ;;  %2239 = vrot.lane.b32.xlu1 %v4618_v56, %s6420_s12 }
 0x218   : > { %1984 = vst.msk [vmem:[#allocation2 + $0x48] sm:$0xff] %vm6511_vm0, %v1897_v18  ;;  %2945 = vrot.lane.b32.xlu0 %v2868_v34, %s4093_s21  ;;  %v1756_v18 = vrot.slane %v4629_v27, 1 }
 0x219   : > { %v2095_v57 = vpop.permute.xlu1 %2094 }
 0x21a   : > { %2183 = vst.msk [vmem:[#allocation2 + $0x40] sm:$0xff] %vm6514_vm7, %v2095_v57  ;;  %v2101_v16 = vpop.permute.xlu0 %2100  ;;  %v3053_v37 = vld [vmem:[#allocation2 + $0x28] sm:$0xff]  ;;  %vm6520_vm7 = vmmov %vm6518_vm15 }
 0x21b   : > { %2312 = vst.msk [vmem:[#allocation2 + $0x40] sm:$0xff] %vm6515_vm12, %v2224_v60  ;;  %2628 = vrot.lane.b32.xlu1 %v6516_v45, %s6375_s26  ;;  %v3082_v25 = vpack.c.bf16 %v3053_v37, %v3052_v50  ;;  %v1758_v60 = vrot.slane %v4647_v61, 1  ;;  %v1754_v50 = vrot.slane %v4632_v7, 1  ;;  %vm6521_vm12 = vcmask 261312  }
 0x21c   : > { %1912 = vrot.lane.b32.xlu0 %v1831_v43, %s6396_s27  ;;  %v1089_v43 = vand.u32 15, %v939_v55 }
 0x21d   : > { %v5446_v42 = vpop.permute.xlu1 %2425  ;;  %3848 = vmatprep.mubr.bf16.mxu1 %v3082_v25  ;;  %v5462_v57 = vsel %vm6518_vm15, %v1756_v18, %v1758_v60  ;;  %v1755_v7 = vsel %vm6520_vm7, %v1752_v3, %v1754_v50  ;;  %vm6522_vm15 = vcmask 326912  }
 0x21e   : > { %v2619_v15 = vpop.permute.xlu0 %2618 }
 0x21f   : > { %2110 = vrot.lane.b32.xlu1 %v6517_v33, %s6372_s25 }
 0x220   : > { %2116 = vrot.lane.b32.xlu0 %v4971_v40, %s6372_s25 }
 0x221   : > { %v5457_v0 = vpop.permute.xlu1 %2935 }
 0x222   : > { %v2615_v34 = vpop.permute.xlu0 %2614 }
 0x223   : > { %2704 = vst.msk [vmem:[#allocation2 + $0x38] sm:$0xff] %vm6519_vm10, %v2615_v34  ;;  %2441 = vrot.lane.b32.xlu1 %v5462_v57, %s4092_s28  ;;  %vm6523_vm10 = vmmov %vm6520_vm7  ;;  %vm5490_vm7 = vcmp.le.s32.totalorder %v1089_v43, 14 }
 0x224   : > { %2830 = vst.msk [vmem:[#allocation2 + $0x38] sm:$0xff] %vm6510_vm1, %v5333_v17  ;;  %2630 = vrot.lane.b32.xlu0 %v4982_v12, %s6375_s26  ;;  %v1757_v17 = vsel %vm6523_vm10, %v1754_v50, %v1756_v18  ;;  %vm6524_vm1 = vcmask 589312   ;;  %vm6530_vm10 = vcmask 261312  }
 0x225   : > { %v1903_v37 = vpop.permute.xlu1 %1902  ;;  %v2870_v56 = vsel %vm5303_vm13, %v1757_v17, 0.0  ;;  %v1833_v18 = vsel %vm5490_vm7, %v1757_v17, 0.0  ;;  %vm6531_vm13 = vcmask 326912  }
 0x226   : > { %1987 = vst.msk [vmem:[#allocation2 + $0x60] sm:$0xff] %vm6511_vm0, %v1903_v37  ;;  %v2097_v45 = vpop.permute.xlu0 %2096  ;;  %vm6525_vm0 = vmmov %vm6524_vm1  ;;  %v6534_v37 = vsel %vm4834_vm8, %v4990_v32, 0.0 }
 0x227   : > { %2184 = vst.msk [vmem:[#allocation2 + $0x48] sm:$0xff] %vm6521_vm12, %v2097_v45  ;;  %2947 = vrot.lane.b32.xlu1 %v1755_v7, %s4093_s21  ;;  %vm6528_vm12 = vcmask 195712  }
 0x228   : > { %2313 = vst.msk [vmem:[#allocation2 + $0x48] sm:$0xff] %vm6522_vm15, %v5354_v21  ;;  %2112 = vrot.lane.b32.xlu0 %v4982_v12, %s6372_s25  ;;  %vm6529_vm15 = vmmov %vm6528_vm12  ;;  %v945_v21 = vadd.s32 200, %v4296_v28 }
 0x229   : > { %v2932_v25 = vpop.permute.xlu1 %2931 }
 0x22a   : > { %3022 = vst.msk [vmem:[#allocation2 + $0x30] sm:$0xff] %vm6524_vm1, %v2932_v25  ;;  %v2934_v33 = vpop.permute.xlu0 %2933  ;;  %vm6532_vm1 = vcmask 392512  }
 0x22b   : > { %3023 = vst.msk [vmem:[#allocation2 + $0x38] sm:$0xff] %vm6525_vm0, %v2934_v33  ;;  %1914 = vrot.lane.b32.xlu1 %v1755_v7, %s6396_s27  ;;  %vm6533_vm0 = vmmov %vm6532_vm1 }
 0x22c   : > { %2949 = vrot.lane.b32.xlu0 %v2870_v56, %s4093_s21 }
 0x22d   : > { %v1899_v12 = vpop.permute.xlu1 %1898 }
 0x22e   : > { %1985 = vst.msk [vmem:[#allocation2 + $0x50] sm:$0xff] %vm6528_vm12, %v1899_v12  ;;  %v1901_v3 = vpop.permute.xlu0 %1900  ;;  %vm6535_vm12 = vcmask 458112  }
 0x22f   : > { %1986 = vst.msk [vmem:[#allocation2 + $0x58] sm:$0xff] %vm6529_vm15, %v1901_v3  ;;  %2437 = vrot.lane.b32.xlu1 %v1755_v7, %s4092_s28  ;;  %vm6536_vm15 = vcmask 523712  }
 0x230   : > { %2186 = vst.msk [vmem:[#allocation2 + $0x58] sm:$0xff] %vm6530_vm10, %v2101_v16  ;;  %1916 = vrot.lane.b32.xlu0 %v1833_v18, %s6396_s27  ;;  %v2358_v16 = vsel %vm5432_vm4, %v1757_v17, 0.0 }
 0x231   : > { %2315 = vst.msk [vmem:[#allocation2 + $0x58] sm:$0xff] %vm6531_vm13, %v5291_v22  ;;  %v2422_v4 = vpop.permute.xlu1 %2421  ;;  %v3054_v34 = vld [vmem:[#allocation2 + $0x30] sm:$0xff]  ;;  %v1760_v22 = vrot.slane %v4677_v20, 1 }
 0x232   : > { %2510 = vst.msk [vmem:[#allocation2 + $0x40] sm:$0xff] %vm6532_vm1, %v2422_v4  ;;  %v2424_v50 = vpop.permute.xlu0 %2423  ;;  %v3055_v55 = vld [vmem:[#allocation2 + $0x38] sm:$0xff]  ;;  %vm6538_vm1 = vmmov %vm6533_vm0 }
 0x233   : > { %2511 = vst.msk [vmem:[#allocation2 + $0x48] sm:$0xff] %vm6533_vm0, %v2424_v50  ;;  %2114 = vrot.lane.b32.xlu1 %v6534_v37, %s6372_s25  ;;  %v3083_v45 = vpack.c.bf16 %v3055_v55, %v3054_v34  ;;  %vm6539_vm0 = vcmask 1046528   ;;  %s5557_s25 = scalar_lea.vmem [#allocation3], %s6374_s30  ;;  %v6549_v4 = vld [vmem:[#allocation8_spill] sm:$0xff]  ;;  %v1762_v55 = vrot.slane %v4699_v35, 1  ;;  %s4095_s30 = smov [#allocation3]  }
 0x234   : > { %2706 = vst.msk [vmem:[#allocation2 + $0x48] sm:$0xff] %vm6535_vm12, %v2619_v15  ;;  %2439 = vrot.lane.b32.xlu0 %v2358_v16, %s4092_s28  ;;  %v6537_v15 = vsel %vm4827_vm2, %v4990_v32, 0.0  ;;  %vm6540_vm2 = vmmov %vm6535_vm12  ;;  %v2008_v34 = vrot.slane %v6549_v4, 7  ;;  %s4024_s0 = sshll.u32 %s4095_s30, 4  ;;  %s4025_s0 = int_to_ptr.vmem [resolvable:$false] %s4024_s0 }
 0x235   : > { %2832 = vst.msk [vmem:[#allocation2 + $0x48] sm:$0xff] %vm6536_vm15, %v5308_v9  ;;  %v2099_v7 = vpop.permute.xlu1 %2098  ;;  %3849 = vmatmul.mubr.bf16.gmra.mrb[8].mxu1 %v3083_v45  ;;  %v815_v9 = vld [vmem:[%s6334_s4] sm:$0x1]  ;;  %vm6541_vm12 = vmmov %vm6536_vm15  ;;  %vm6543_vm15 = vcmask 589312   ;;  %v1764_v45 = vrot.slane %v4696_v54, 1 }
 0x236   : > { %2185 = vst.msk [vmem:[#allocation2 + $0x50] sm:$0xff] %vm6530_vm10, %v2099_v7  ;;  %v5518_v43 = vpop.permute.xlu0 %2237  ;;  %vm6544_vm10 = vcmask 130112  }
 0x237   : > { %2314 = vst.msk [vmem:[#allocation2 + $0x50] sm:$0xff] %vm6531_vm13, %v5318_v19  ;;  %2632 = vrot.lane.b32.xlu1 %v6537_v15, %s6375_s26  ;;  %v5538_v19 = vsel %vm6539_vm0, %v1758_v60, %v1760_v22  ;;  %v1460_v60 = vrot.slane %v4754_v39, 7  ;;  %vm6546_vm13 = vcmask 64512  }
 0x238   : > { %2512 = vst.msk [vmem:[#allocation2 + $0x50] sm:$0xff] %vm6538_vm1, %v5446_v42  ;;  %2634 = vrot.lane.b32.xlu0 %v4971_v40, %s6375_s26  ;;  %v6542_v40 = vsel %vm4834_vm8, %v5001_v29, 0.0  ;;  %v2360_v42 = vsel %vm5490_vm7, %v5538_v19, 0.0  ;;  %vm6545_vm8 = vcmask 1040384   ;;  %vm6547_vm1 = vmmov %vm6544_vm10  ;;  %v2872_v37 = vsel %vm5432_vm4, %v5538_v19, 0.0 }
 0x239   : > { %v2617_v47 = vpop.permute.xlu1 %2616  ;;  %v882_v17 = vpop.f32.mrb[0].mxu1  ;;  %v5574_v56 = vsel %vm6545_vm8, %v1458_v6, %v1460_v60  ;;  %vm6548_vm0 = vmmov %vm6547_vm1  ;;  %vm6552_vm4 = vcmask 1046528  }
 0x23a   : > { %2705 = vst.msk [vmem:[#allocation2 + $0x40] sm:$0xff] %vm6540_vm2, %v2617_v47  ;;  %v883_v32 = vadd.f32 %v882_v17, %v815_v9  ;;  %v5541_v25 = vpop.permute.xlu0 %2755  ;;  %v3827_v33 = vpop.f32.mrb[1].mxu1  ;;  %vm6550_vm2 = vmmov %vm6545_vm8  ;;  %v5614_v9 = vsel %vm6552_vm4, %v1760_v22, %v1762_v55  ;;  %v941_v17 = vadd.s32 168, %v4296_v28  ;;  %vm6555_vm8 = vcmask 589312  }
 0x23b   : > { %2831 = vst.msk [vmem:[#allocation2 + $0x40] sm:$0xff] %vm6541_vm12, %v5326_v5  ;;  %2636 = vrot.lane.b32.xlu1 %v6542_v40, %s6375_s26  ;;  %v5602_v16 = vsel %vm6550_vm2, %v1460_v60, %v2008_v34  ;;  %vm6551_vm12 = vmmov %vm6548_vm0  ;;  %v943_v40 = vadd.s32 184, %v4296_v28  ;;  %vm6561_vm2 = vcmask 261312  }
 0x23c   : > { %3024 = vst.msk [vmem:[#allocation2 + $0x40] sm:$0xff] %vm6543_vm15, %v5457_v0  ;;  %886 = vst [vmem:[%s5557_s25] sm:$0x1] %v883_v32  ;;  %2443 = vrot.lane.b32.xlu0 %v2360_v42, %s4092_s28  ;;  %v2044_v7 = vsel %vm5403_vm14, %v5602_v16, 0.0  ;;  %vm6553_vm15 = vcmask 392512  }
 0x23d   : > { %v5561_v5 = vpop.permute.xlu1 %2235  ;;  %1557 = vst.msk [vmem:[#allocation2 + $0xf8] sm:$0xff] %vm6546_vm13, %v5574_v56  ;;  %vm6556_vm13 = vcmask 458112   ;;  %v1117_v60 = vand.u32 15, %v943_v40 }
 0x23e   : > { %v1591_v36 = vpop.permute.xlu0 %1590 }
 0x23f   : > { %1669 = vst.msk [vmem:[#allocation2 + $0x88] sm:$0xff] %vm6544_vm10, %v1591_v36  ;;  %2761 = vrot.lane.b32.xlu1 %v4629_v27, %s6422_s20  ;;  %vm6554_vm10 = vmmov %vm6552_vm4  ;;  %vm5654_vm4 = vcmp.le.s32.totalorder %v1117_v60, 14 }
 0x240   : > { %2638 = vrot.lane.b32.xlu0 %v5122_v38, %s6375_s26  ;;  %v5624_v47 = vsel %vm6554_vm10, %v1762_v55, %v1764_v45 }
 0x241   : > { %v5569_v0 = vpop.permute.xlu1 %2753  ;;  %v2874_v22 = vsel %vm5490_vm7, %v5624_v47, 0.0 }
 0x242   : > { %v5576_v12 = vpop.permute.xlu0 %2751 }
 0x243   : > { %2765 = vrot.lane.b32.xlu1 %v4677_v20, %s6422_s20  ;;  %v3056_v55 = vld [vmem:[#allocation2 + $0x40] sm:$0xff] }
 0x244   : > { %2763 = vrot.lane.b32.xlu0 %v4647_v61, %s6422_s20 }
 0x245   : > { %v1589_v3 = vpop.permute.xlu1 %1588 }
 0x246   : > { %1668 = vst.msk [vmem:[#allocation2 + $0x80] sm:$0xff] %vm6547_vm1, %v1589_v3  ;;  %v1587_v18 = vpop.permute.xlu0 %1586  ;;  %vm6557_vm1 = vcmask 523712  }
 0x247   : > { %1667 = vst.msk [vmem:[#allocation2 + $0x78] sm:$0xff] %vm6548_vm0, %v1587_v18  ;;  %2951 = vrot.lane.b32.xlu1 %v5462_v57, %s4093_s21  ;;  %vm6558_vm0 = vcmask 195712   ;;  %vm6569_vm10 = vmmov %vm6557_vm1 }
 0x248   : > { %2767 = vrot.lane.b32.xlu0 %v4699_v35, %s6422_s20 }
 0x249   : > { %v2750_v6 = vpop.permute.xlu1 %2749 }
 0x24a   : > { %v5591_v50 = vpop.permute.xlu0 %2233 }
 0x24b   : > { %1596 = vrot.lane.b32.xlu1 %v4629_v27, %s6387_s18  ;;  %v2564_v27 = vsel %vm5399_vm5, %v5602_v16, 0.0  ;;  %vm6680_vm5 = vcmask 130112  }
 0x24c   : > { %2953 = vrot.lane.b32.xlu0 %v2872_v37, %s4093_s21 }
 0x24d   : > { %v1585_v15 = vpop.permute.xlu1 %1584 }
 0x24e   : > { %1666 = vst.msk [vmem:[#allocation2 + $0x70] sm:$0xff] %vm6551_vm12, %v1585_v15  ;;  %v2428_v44 = vpop.permute.xlu0 %2427  ;;  %vm6562_vm12 = vcmask 326912  }
 0x24f   : > { %2513 = vst.msk [vmem:[#allocation2 + $0x58] sm:$0xff] %vm6553_vm15, %v2428_v44  ;;  %2955 = vrot.lane.b32.xlu1 %v5614_v9, %s4093_s21  ;;  %vm6567_vm15 = vmmov %vm6556_vm13 }
 0x250   : > { %1598 = vrot.lane.b32.xlu0 %v4647_v61, %s6387_s18  ;;  %v1103_v61 = vand.u32 15, %v941_v17 }
 0x251   : > { %v2232_v32 = vpop.permute.xlu1 %2231 }
 0x252   : > { %v2938_v33 = vpop.permute.xlu0 %2937  ;;  %vm5642_vm7 = vcmp.le.s32.totalorder %v1103_v61, 14  ;;  %v6568_v61 = vsel %vm5022_vm9, %v5158_v46, 0.0 }
 0x253   : > { %3025 = vst.msk [vmem:[#allocation2 + $0x48] sm:$0xff] %vm6555_vm8, %v2938_v33  ;;  %1600 = vrot.lane.b32.xlu1 %v4677_v20, %s6387_s18  ;;  %vm6570_vm8 = vmmov %vm6558_vm0 }
 0x254   : > { %2957 = vrot.lane.b32.xlu0 %v2874_v22, %s4093_s21 }
 0x255   : > { %v2621_v42 = vpop.permute.xlu1 %2620 }
 0x256   : > { %2707 = vst.msk [vmem:[#allocation2 + $0x50] sm:$0xff] %vm6556_vm13, %v2621_v42  ;;  %v1905_v36 = vpop.permute.xlu0 %1904  ;;  %vm6571_vm13 = vmmov %vm6561_vm2 }
 0x257   : > { %2833 = vst.msk [vmem:[#allocation2 + $0x50] sm:$0xff] %vm6557_vm1, %v2750_v6  ;;  %1918 = vrot.lane.b32.xlu1 %v5462_v57, %s6396_s27  ;;  %v1835_v57 = vsel %vm5642_vm7, %v5538_v19, 0.0  ;;  %v1837_v19 = vsel %vm5654_vm4, %v5624_v47, 0.0  ;;  %vm6572_vm1 = vmmov %vm6562_vm12 }
 0x258   : > { %1988 = vst.msk [vmem:[#allocation2 + $0x68] sm:$0xff] %vm6558_vm0, %v1905_v36  ;;  %1602 = vrot.lane.b32.xlu0 %v4699_v35, %s6387_s18  ;;  %vm6573_vm0 = vcmask 589312   ;;  %v1768_v36 = vrot.slane %v4722_v48, 1 }
 0x259   : > { %v2103_v3 = vpop.permute.xlu1 %2102 }
 0x25a   : > { %2187 = vst.msk [vmem:[#allocation2 + $0x60] sm:$0xff] %vm6561_vm2, %v2103_v3  ;;  %v2109_v18 = vpop.permute.xlu0 %2108  ;;  %v3057_v37 = vld [vmem:[#allocation2 + $0x48] sm:$0xff]  ;;  %vm6574_vm2 = vmmov %vm6573_vm0 }
 0x25b   : > { %2316 = vst.msk [vmem:[#allocation2 + $0x60] sm:$0xff] %vm6562_vm12, %v2232_v32  ;;  %1922 = vrot.lane.b32.xlu1 %v5614_v9, %s6396_s27  ;;  %v3084_v6 = vpack.c.bf16 %v3057_v37, %v3056_v55  ;;  %v6566_v32 = vsel %vm5018_vm3, %v5001_v29, 0.0  ;;  %vm6575_vm12 = vmmov %vm6570_vm8 }
 0x25c   : > { %1920 = vrot.lane.b32.xlu0 %v1835_v57, %s6396_s27 }
 0x25d   : > { %v2434_v44 = vpop.permute.xlu1 %2433  ;;  %3852 = vmatprep.mubr.bf16.mxu1 %v3084_v6 }
 0x25e   : > { %v2627_v17 = vpop.permute.xlu0 %2626 }
 0x25f   : > { %2118 = vrot.lane.b32.xlu1 %v6566_v32, %s6565_s11 }
 0x260   : > { %1924 = vrot.lane.b32.xlu0 %v1837_v19, %s6396_s27 }
 0x261   : > { %v2944_v33 = vpop.permute.xlu1 %2943 }
 0x262   : > { %v2623_v22 = vpop.permute.xlu0 %2622 }
 0x263   : > { %2708 = vst.msk [vmem:[#allocation2 + $0x58] sm:$0xff] %vm6567_vm15, %v2623_v22  ;;  %2122 = vrot.lane.b32.xlu1 %v6568_v61, %s6565_s11  ;;  %vm6576_vm15 = vmmov %vm6570_vm8  ;;  %v1772_v61 = vrot.slane %v4728_v24, 1 }
 0x264   : > { %2834 = vst.msk [vmem:[#allocation2 + $0x58] sm:$0xff] %vm6569_vm10, %v5576_v12  ;;  %2120 = vrot.lane.b32.xlu0 %v5122_v38, %s6565_s11  ;;  %vm6577_vm10 = vmmov %vm6571_vm13 }
 0x265   : > { %v1911_v29 = vpop.permute.xlu1 %1910 }
 0x266   : > { %1991 = vst.msk [vmem:[#allocation2 + $0x80] sm:$0xff] %vm6570_vm8, %v1911_v29  ;;  %v2105_v40 = vpop.permute.xlu0 %2104  ;;  %vm6578_vm8 = vmmov %vm6572_vm1 }
 0x267   : > { %2188 = vst.msk [vmem:[#allocation2 + $0x68] sm:$0xff] %vm6571_vm13, %v2105_v40  ;;  %2247 = vrot.lane.b32.xlu1 %v4677_v20, %s6420_s12  ;;  %vm6579_vm13 = vcmask 392512  }
 0x268   : > { %2317 = vst.msk [vmem:[#allocation2 + $0x68] sm:$0xff] %vm6572_vm1, %v5591_v50  ;;  %2124 = vrot.lane.b32.xlu0 %v5168_v51, %s6565_s11  ;;  %v1766_v50 = vrot.slane %v4707_v49, 1  ;;  %vm6580_vm1 = vcmask 1046528  }
 0x269   : > { %v2940_v42 = vpop.permute.xlu1 %2939 }
 0x26a   : > { %3026 = vst.msk [vmem:[#allocation2 + $0x50] sm:$0xff] %vm6573_vm0, %v2940_v42  ;;  %v2942_v12 = vpop.permute.xlu0 %2941  ;;  %v5706_v55 = vsel %vm6580_vm1, %v1764_v45, %v1766_v50  ;;  %vm6581_vm0 = vmmov %vm6579_vm13 }
 0x26b   : > { %3027 = vst.msk [vmem:[#allocation2 + $0x58] sm:$0xff] %vm6574_vm2, %v2942_v12  ;;  %2251 = vrot.lane.b32.xlu1 %v4696_v54, %s6420_s12  ;;  %vm6582_vm2 = vcmask 458112  }
 0x26c   : > { %2249 = vrot.lane.b32.xlu0 %v4699_v35, %s6420_s12 }
 0x26d   : > { %v1907_v38 = vpop.permute.xlu1 %1906 }
 0x26e   : > { %1989 = vst.msk [vmem:[#allocation2 + $0x70] sm:$0xff] %vm6575_vm12, %v1907_v38  ;;  %v1909_v20 = vpop.permute.xlu0 %1908  ;;  %vm6583_vm12 = vmmov %vm6580_vm1 }
 0x26f   : > { %1990 = vst.msk [vmem:[#allocation2 + $0x78] sm:$0xff] %vm6576_vm15, %v1909_v20  ;;  %2445 = vrot.lane.b32.xlu1 %v5614_v9, %s4092_s28  ;;  %v5717_v37 = vsel %vm6583_vm12, %v1766_v50, %v1768_v36  ;;  %vm6584_vm15 = vcmask 523712   ;;  %vm6587_vm1 = vmmov %vm6582_vm2 }
 0x270   : > { %2190 = vst.msk [vmem:[#allocation2 + $0x78] sm:$0xff] %vm6577_vm10, %v2109_v18  ;;  %2253 = vrot.lane.b32.xlu0 %v4707_v49, %s6420_s12  ;;  %v2364_v6 = vsel %vm5654_vm4, %v5717_v37, 0.0  ;;  %v2876_v22 = vsel %vm5642_vm7, %v5717_v37, 0.0 }
 0x271   : > { %2319 = vst.msk [vmem:[#allocation2 + $0x78] sm:$0xff] %vm6578_vm8, %v5518_v43  ;;  %v2430_v35 = vpop.permute.xlu1 %2429  ;;  %v3058_v60 = vld [vmem:[#allocation2 + $0x50] sm:$0xff]  ;;  %v2362_v43 = vsel %vm5642_vm7, %v5624_v47, 0.0  ;;  %v6585_v47 = vsel %vm5018_vm3, %v5158_v46, 0.0  ;;  %vm6590_vm3 = vcmask 589312  }
 0x272   : > { %2514 = vst.msk [vmem:[#allocation2 + $0x60] sm:$0xff] %vm6579_vm13, %v2430_v35  ;;  %v2432_v3 = vpop.permute.xlu0 %2431  ;;  %v3059_v9 = vld [vmem:[#allocation2 + $0x58] sm:$0xff]  ;;  %vm6586_vm13 = vmmov %vm6581_vm0  ;;  %v1131_v35 = vand.u32 15, %v945_v21 }
 0x273   : > { %2515 = vst.msk [vmem:[#allocation2 + $0x68] sm:$0xff] %vm6581_vm0, %v2432_v3  ;;  %2449 = vrot.lane.b32.xlu1 %v5706_v55, %s4092_s28  ;;  %v3085_v18 = vpack.c.bf16 %v3059_v9, %v3058_v60  ;;  %vm6588_vm0 = vmmov %vm6584_vm15  ;;  %v947_v60 = vadd.s32 216, %v4296_v28 }
 0x274   : > { %2710 = vst.msk [vmem:[#allocation2 + $0x68] sm:$0xff] %vm6582_vm2, %v2627_v17  ;;  %2447 = vrot.lane.b32.xlu0 %v2362_v43, %s4092_s28  ;;  %vm6591_vm2 = vcmask 130112   ;;  %vm6593_vm12 = vmmov %vm6586_vm13 }
 0x275   : > { %2836 = vst.msk [vmem:[#allocation2 + $0x68] sm:$0xff] %vm6584_vm15, %v5541_v25  ;;  %v2107_v45 = vpop.permute.xlu1 %2106  ;;  %3853 = vmatmul.mubr.bf16.gmra.mrb[12].mxu1 %v3085_v18  ;;  %vm6592_vm9 = vmmov %vm6591_vm2  ;;  %v1145_v43 = vand.u32 15, %v947_v60 }
 0x276   : > { %2189 = vst.msk [vmem:[#allocation2 + $0x70] sm:$0xff] %vm6577_vm10, %v2107_v45  ;;  %v5722_v57 = vpop.permute.xlu0 %2245  ;;  %vm6594_vm15 = vmmov %vm6590_vm3 }
 0x277   : > { %2318 = vst.msk [vmem:[#allocation2 + $0x70] sm:$0xff] %vm6578_vm8, %v5561_v5  ;;  %2640 = vrot.lane.b32.xlu1 %v6585_v47, %s6375_s26  ;;  %vm6595_vm10 = vmmov %vm6587_vm1  ;;  %vm6596_vm8 = vcmask 1046528  }
 0x278   : > { %2516 = vst.msk [vmem:[#allocation2 + $0x70] sm:$0xff] %vm6586_vm13, %v2434_v44  ;;  %2451 = vrot.lane.b32.xlu0 %v2364_v6, %s4092_s28  ;;  %vm6597_vm13 = vmmov %vm6588_vm0 }
 0x279   : > { %v2625_v25 = vpop.permute.xlu1 %2624  ;;  %vm6599_vm7 = vmmov %vm6596_vm8 }
 0x27a   : > { %2709 = vst.msk [vmem:[#allocation2 + $0x60] sm:$0xff] %vm6587_vm1, %v2625_v25  ;;  %v2760_v17 = vpop.permute.xlu0 %2759  ;;  %vm6598_vm1 = vcmask 195712  }
 0x27b   : > { %2835 = vst.msk [vmem:[#allocation2 + $0x60] sm:$0xff] %vm6588_vm0, %v5569_v0  ;;  %2644 = vrot.lane.b32.xlu1 %v6589_v58, %s6375_s26  ;;  %vm6600_vm0 = vcmask 261312  }
 0x27c   : > { %3028 = vst.msk [vmem:[#allocation2 + $0x60] sm:$0xff] %vm6590_vm3, %v2944_v33  ;;  %2642 = vrot.lane.b32.xlu0 %v5168_v51, %s6375_s26  ;;  %v1770_v33 = vrot.slane %v4731_v10, 1  ;;  %vm6601_vm3 = vcmask 326912  }
 0x27d   : > { %v5747_v46 = vpop.permute.xlu1 %2243 }
 0x27e   : > { %v1595_v5 = vpop.permute.xlu0 %1594  ;;  %v5775_v42 = vsel %vm6596_vm8, %v1768_v36, %v1770_v33  ;;  %vm5817_vm8 = vcmp.le.s32.totalorder %v1145_v43, 14  ;;  %v1778_v43 = vrot.slane %v4754_v39, 1 }
 0x27f   : > { %1671 = vst.msk [vmem:[#allocation2 + $0x98] sm:$0xff] %vm6591_vm2, %v1595_v5  ;;  %2769 = vrot.lane.b32.xlu1 %v4696_v54, %s6422_s20  ;;  %vm6602_vm2 = vmmov %vm6595_vm10 }
 0x280   : > { %2646 = vrot.lane.b32.xlu0 %v5331_v31, %s6375_s26 }
 0x281   : > { %v2758_v52 = vpop.permute.xlu1 %2757 }
 0x282   : > { %v2242_v0 = vpop.permute.xlu0 %2241 }
 0x283   : > { %2773 = vrot.lane.b32.xlu1 %v4722_v48, %s6422_s20  ;;  %v3060_v20 = vld [vmem:[#allocation2 + $0x60] sm:$0xff] }
 0x284   : > { %2771 = vrot.lane.b32.xlu0 %v4707_v49, %s6422_s20 }
 0x285   : > { %v1593_v51 = vpop.permute.xlu1 %1592 }
 0x286   : > { %1670 = vst.msk [vmem:[#allocation2 + $0x90] sm:$0xff] %vm6592_vm9, %v1593_v51  ;;  %v2436_v44 = vpop.permute.xlu0 %2435  ;;  %vm6603_vm9 = vmmov %vm6597_vm13 }
 0x287   : > { %2517 = vst.msk [vmem:[#allocation2 + $0x78] sm:$0xff] %vm6593_vm12, %v2436_v44  ;;  %2959 = vrot.lane.b32.xlu1 %v5706_v55, %s4093_s21  ;;  %vm6606_vm12 = vmmov %vm6594_vm15  ;;  %v1774_v44 = vrot.slane %v4735_v30, 1 }
 0x288   : > { %2775 = vrot.lane.b32.xlu0 %v4731_v10, %s6422_s20 }
 0x289   : > { %v2240_v32 = vpop.permute.xlu1 %2239 }
 0x28a   : > { %v2946_v19 = vpop.permute.xlu0 %2945 }
 0x28b   : > { %3029 = vst.msk [vmem:[#allocation2 + $0x68] sm:$0xff] %vm6594_vm15, %v2946_v19  ;;  %1604 = vrot.lane.b32.xlu1 %v4696_v54, %s6387_s18  ;;  %v5786_v54 = vsel %vm6599_vm7, %v1770_v33, %v1772_v61  ;;  %vm6607_vm15 = vmmov %vm6600_vm0  ;;  %vm6614_vm7 = vcmask 392512  }
 0x28c   : > { %2961 = vrot.lane.b32.xlu0 %v2876_v22, %s4093_s21 }
 0x28d   : > { %v2629_v29 = vpop.permute.xlu1 %2628 }
 0x28e   : > { %2711 = vst.msk [vmem:[#allocation2 + $0x70] sm:$0xff] %vm6595_vm10, %v2629_v29  ;;  %v1913_v40 = vpop.permute.xlu0 %1912  ;;  %vm6608_vm10 = vmmov %vm6601_vm3 }
 0x28f   : > { %2837 = vst.msk [vmem:[#allocation2 + $0x70] sm:$0xff] %vm6597_vm13, %v2758_v52  ;;  %2963 = vrot.lane.b32.xlu1 %v5775_v42, %s4093_s21  ;;  %vm6611_vm13 = vmmov %vm6598_vm1 }
 0x290   : > { %1992 = vst.msk [vmem:[#allocation2 + $0x88] sm:$0xff] %vm6598_vm1, %v1913_v40  ;;  %1606 = vrot.lane.b32.xlu0 %v4707_v49, %s6387_s18  ;;  %v2878_v49 = vsel %vm5654_vm4, %v5786_v54, 0.0  ;;  %vm5804_vm4 = vcmp.le.s32.totalorder %v1131_v35, 14  ;;  %vm6612_vm1 = vmmov %vm6606_vm12 }
 0x291   : > { %v2111_v12 = vpop.permute.xlu1 %2110  ;;  %v2366_v22 = vsel %vm5804_vm4, %v5786_v54, 0.0 }
 0x292   : > { %2191 = vst.msk [vmem:[#allocation2 + $0x80] sm:$0xff] %vm6600_vm0, %v2111_v12  ;;  %v2117_v38 = vpop.permute.xlu0 %2116  ;;  %v3061_v50 = vld [vmem:[#allocation2 + $0x68] sm:$0xff]  ;;  %vm6615_vm0 = vmmov %vm6611_vm13 }
 0x293   : > { %2320 = vst.msk [vmem:[#allocation2 + $0x80] sm:$0xff] %vm6601_vm3, %v2240_v32  ;;  %1608 = vrot.lane.b32.xlu1 %v4722_v48, %s6387_s18  ;;  %v3086_v36 = vpack.c.bf16 %v3061_v50, %v3060_v20  ;;  %vm6616_vm3 = vmmov %vm6607_vm15  ;;  %v1776_v32 = vrot.slane %v4745_v2, 1  ;;  %v5924_v20 = vld [vmem:[%s6336_s6] ss:$0 sm:$0xff] }
 0x294   : > { %2965 = vrot.lane.b32.xlu0 %v2878_v49, %s4093_s21 }
 0x295   : > { %v2442_v3 = vpop.permute.xlu1 %2441  ;;  %3856 = vmatprep.mubr.bf16.mxu1 %v3086_v36 }
 0x296   : > { %v2631_v9 = vpop.permute.xlu0 %2630 }
 0x297   : > { %2712 = vst.msk [vmem:[#allocation2 + $0x78] sm:$0xff] %vm6602_vm2, %v2631_v9  ;;  %1926 = vrot.lane.b32.xlu1 %v5706_v55, %s6396_s27  ;;  %v1839_v55 = vsel %vm5804_vm4, %v5717_v37, 0.0  ;;  %v1841_v37 = vsel %vm5817_vm8, %v5786_v54, 0.0  ;;  %vm6617_vm2 = vmmov %vm6608_vm10 }
 0x298   : > { %2838 = vst.msk [vmem:[#allocation2 + $0x78] sm:$0xff] %vm6603_vm9, %v2760_v17  ;;  %1610 = vrot.lane.b32.xlu0 %v4731_v10, %s6387_s18  ;;  %v6613_v17 = vsel %vm5189_vm11, %v5178_v23, 0.0  ;;  %vm6618_vm9 = vmmov %vm6616_vm3  ;;  %vm6634_vm11 = vcmask 130112  }
 0x299   : > { %v2948_v18 = vpop.permute.xlu1 %2947  ;;  %vm6637_vm6 = vmmov %vm6634_vm11 }
 0x29a   : > { %3030 = vst.msk [vmem:[#allocation2 + $0x70] sm:$0xff] %vm6606_vm12, %v2948_v18  ;;  %v2113_v45 = vpop.permute.xlu0 %2112  ;;  %vm6619_vm12 = vmmov %vm6617_vm2 }
 0x29b   : > { %2192 = vst.msk [vmem:[#allocation2 + $0x88] sm:$0xff] %vm6607_vm15, %v2113_v45  ;;  %1930 = vrot.lane.b32.xlu1 %v5775_v42, %s6396_s27  ;;  %vm6620_vm15 = vmmov %vm6614_vm7 }
 0x29c   : > { %2321 = vst.msk [vmem:[#allocation2 + $0x88] sm:$0xff] %vm6608_vm10, %v2242_v0  ;;  %1928 = vrot.lane.b32.xlu0 %v1839_v55, %s6396_s27  ;;  %vm6621_vm10 = vmmov %vm6614_vm7 }
 0x29d   : > { %v1915_v6 = vpop.permute.xlu1 %1914 }
 0x29e   : > { %1993 = vst.msk [vmem:[#allocation2 + $0x90] sm:$0xff] %vm6611_vm13, %v1915_v6  ;;  %v2950_v25 = vpop.permute.xlu0 %2949  ;;  %vm6622_vm13 = vcmask 458112  }
 0x29f   : > { %3031 = vst.msk [vmem:[#allocation2 + $0x78] sm:$0xff] %vm6612_vm1, %v2950_v25  ;;  %2126 = vrot.lane.b32.xlu1 %v6613_v17, %s6565_s11  ;;  %vm6623_vm1 = vmmov %vm6622_vm13  ;;  %v1780_v25 = vrot.slane %v6549_v4, 1 }
 0x2a0   : > { %1932 = vrot.lane.b32.xlu0 %v1841_v37, %s6396_s27 }
 0x2a1   : > { %v2438_v58 = vpop.permute.xlu1 %2437  ;;  %v3062_v0 = vld [vmem:[#allocation2 + $0x70] sm:$0xff] }
 0x2a2   : > { %2518 = vst.msk [vmem:[#allocation2 + $0x80] sm:$0xff] %vm6614_vm7, %v2438_v58  ;;  %v1917_v5 = vpop.permute.xlu0 %1916  ;;  %vm6624_vm7 = vmmov %vm6623_vm1 }
 0x2a3   : > { %1994 = vst.msk [vmem:[#allocation2 + $0x98] sm:$0xff] %vm6615_vm0, %v1917_v5  ;;  %2130 = vrot.lane.b32.xlu1 %v2040_v62, %s6565_s11  ;;  %vm6625_vm0 = vmmov %vm6621_vm10 }
 0x2a4   : > { %2194 = vst.msk [vmem:[#allocation2 + $0x98] sm:$0xff] %vm6616_vm3, %v2117_v38  ;;  %2128 = vrot.lane.b32.xlu0 %v5331_v31, %s6565_s11  ;;  %vm6626_vm3 = vcmask 523712  }
 0x2a5   : > { %2323 = vst.msk [vmem:[#allocation2 + $0x98] sm:$0xff] %vm6617_vm2, %v5722_v57  ;;  %v2115_v23 = vpop.permute.xlu1 %2114  ;;  %vm6627_vm2 = vcmask 1046528  }
 0x2a6   : > { %2193 = vst.msk [vmem:[#allocation2 + $0x90] sm:$0xff] %vm6618_vm9, %v2115_v23  ;;  %v2440_v52 = vpop.permute.xlu0 %2439  ;;  %v3063_v51 = vld [vmem:[#allocation2 + $0x78] sm:$0xff]  ;;  %v5871_v33 = vsel %vm6627_vm2, %v1772_v61, %v1774_v44  ;;  %vm6628_vm9 = vmmov %vm6623_vm1 }
 0x2a7   : > { %2322 = vst.msk [vmem:[#allocation2 + $0x90] sm:$0xff] %vm6619_vm12, %v5747_v46  ;;  %2255 = vrot.lane.b32.xlu1 %v4722_v48, %s6420_s12  ;;  %v3087_v62 = vpack.c.bf16 %v3063_v51, %v3062_v0  ;;  %vm6629_vm12 = vmmov %vm6627_vm2 }
 0x2a8   : > { %2519 = vst.msk [vmem:[#allocation2 + $0x88] sm:$0xff] %vm6620_vm15, %v2440_v52  ;;  %2132 = vrot.lane.b32.xlu0 %v5372_v13, %s6565_s11  ;;  %v5883_v29 = vsel %vm6629_vm12, %v1774_v44, %v1776_v32  ;;  %vm6630_vm15 = vmmov %vm6626_vm3 }
 0x2a9   : > { %2520 = vst.msk [vmem:[#allocation2 + $0x90] sm:$0xff] %vm6621_vm10, %v2442_v3  ;;  %v2633_v31 = vpop.permute.xlu1 %2632  ;;  %3857 = vmatmul.mubr.bf16.gmra.mrb[16].mxu1 %v3087_v62  ;;  %vm6631_vm10 = vmmov %vm6626_vm3  ;;  %v2880_v45 = vsel %vm5804_vm4, %v5883_v29, 0.0 }
 0x2aa   : > { %2713 = vst.msk [vmem:[#allocation2 + $0x80] sm:$0xff] %vm6622_vm13, %v2633_v31  ;;  %v2635_v57 = vpop.permute.xlu0 %2634  ;;  %vm6632_vm13 = vcmask 589312  }
 0x2ab   : > { %2714 = vst.msk [vmem:[#allocation2 + $0x88] sm:$0xff] %vm6623_vm1, %v2635_v57  ;;  %2259 = vrot.lane.b32.xlu1 %v4728_v24, %s6420_s12  ;;  %vm6633_vm1 = vmmov %vm6626_vm3  ;;  %v949_v57 = vadd.s32 232, %v4296_v28 }
 0x2ac   : > { %2257 = vrot.lane.b32.xlu0 %v4731_v10, %s6420_s12 }
 0x2ad   : > { %v2637_v48 = vpop.permute.xlu1 %2636 }
 0x2ae   : > { %2715 = vst.msk [vmem:[#allocation2 + $0x90] sm:$0xff] %vm6624_vm7, %v2637_v48  ;;  %v2444_v46 = vpop.permute.xlu0 %2443  ;;  %vm6635_vm7 = vmmov %vm6632_vm13 }
 0x2af   : > { %2521 = vst.msk [vmem:[#allocation2 + $0x98] sm:$0xff] %vm6625_vm0, %v2444_v46  ;;  %2453 = vrot.lane.b32.xlu1 %v5775_v42, %s4092_s28  ;;  %v2368_v42 = vsel %vm5817_vm8, %v5883_v29, 0.0  ;;  %vm6636_vm0 = vmmov %vm6635_vm7 }
 0x2b0   : > { %2261 = vrot.lane.b32.xlu0 %v4735_v30, %s6420_s12  ;;  %vm6639_vm2 = vmmov %vm6636_vm0 }
 0x2b1   : > { %v2762_v19 = vpop.permute.xlu1 %2761 }
 0x2b2   : > { %2839 = vst.msk [vmem:[#allocation2 + $0x80] sm:$0xff] %vm6626_vm3, %v2762_v19  ;;  %v2639_v10 = vpop.permute.xlu0 %2638  ;;  %vm6638_vm3 = vmmov %vm6637_vm6  ;;  %v1159_v19 = vand.u32 15, %v949_v57 }
 0x2b3   : > { %2716 = vst.msk [vmem:[#allocation2 + $0x98] sm:$0xff] %vm6628_vm9, %v2639_v10  ;;  %2457 = vrot.lane.b32.xlu1 %v5871_v33, %s4092_s28  ;;  %vm6640_vm9 = vcmask 195712   ;;  %vm6641_vm12 = vmmov %vm6638_vm3  ;;  %v951_v10 = vadd.s32 248, %v4296_v28 }
 0x2b4   : > { %2455 = vrot.lane.b32.xlu0 %v2366_v22, %s4092_s28  ;;  %vm6644_vm4 = vmmov %vm6640_vm9 }
 0x2b5   : > { %v2766_v40 = vpop.permute.xlu1 %2765 }
 0x2b6   : > { %2841 = vst.msk [vmem:[#allocation2 + $0x90] sm:$0xff] %vm6630_vm15, %v2766_v40  ;;  %v2764_v61 = vpop.permute.xlu0 %2763  ;;  %vm6642_vm15 = vmmov %vm6640_vm9 }
 0x2b7   : > { %2840 = vst.msk [vmem:[#allocation2 + $0x88] sm:$0xff] %vm6631_vm10, %v2764_v61  ;;  %2648 = vrot.lane.b32.xlu1 %v2560_v53, %s6375_s26  ;;  %vm6643_vm10 = vcmask 1046528  }
 0x2b8   : > { %2459 = vrot.lane.b32.xlu0 %v2368_v42, %s4092_s28  ;;  %v5946_v15 = vsel %vm6643_vm10, %v1776_v32, %v1778_v43  ;;  %v1173_v42 = vand.u32 15, %v951_v10 }
 0x2b9   : > { %v2952_v54 = vpop.permute.xlu1 %2951 }
 0x2ba   : > { %3032 = vst.msk [vmem:[#allocation2 + $0x80] sm:$0xff] %vm6632_vm13, %v2952_v54  ;;  %v2768_v21 = vpop.permute.xlu0 %2767  ;;  %vm6645_vm13 = vmmov %vm6643_vm10 }
 0x2bb   : > { %2842 = vst.msk [vmem:[#allocation2 + $0x98] sm:$0xff] %vm6633_vm1, %v2768_v21  ;;  %2652 = vrot.lane.b32.xlu1 %v2562_v11, %s6375_s26  ;;  %v5956_v31 = vsel %vm6645_vm13, %v1778_v43, %v1780_v25  ;;  %vm6646_vm1 = vcmask 261312  }
 0x2bc   : > { %2650 = vrot.lane.b32.xlu0 %v5372_v13, %s6375_s26 }
 0x2bd   : > { %v1597_v63 = vpop.permute.xlu1 %1596 }
 0x2be   : > { %1672 = vst.msk [vmem:[#allocation2 + $0xa0] sm:$0xff] %vm6634_vm11, %v1597_v63  ;;  %v2954_v41 = vpop.permute.xlu0 %2953  ;;  %vm6647_vm11 = vmmov %vm6644_vm4 }
 0x2bf   : > { %3033 = vst.msk [vmem:[#allocation2 + $0x88] sm:$0xff] %vm6635_vm7, %v2954_v41  ;;  %2777 = vrot.lane.b32.xlu1 %v4728_v24, %s6422_s20  ;;  %vm6648_vm7 = vmmov %vm6646_vm1 }
 0x2c0   : > { %2654 = vrot.lane.b32.xlu0 %v5574_v56, %s6375_s26  ;;  %s6748_s26 = sand.u32 1, %s4074_s14  }
 0x2c1   : > { %v2956_v53 = vpop.permute.xlu1 %2955  ;;  %v3064_v12 = vld [vmem:[#allocation2 + $0x80] sm:$0xff] }
 0x2c2   : > { %3034 = vst.msk [vmem:[#allocation2 + $0x90] sm:$0xff] %vm6636_vm0, %v2956_v53  ;;  %v1599_v14 = vpop.permute.xlu0 %1598  ;;  %vm6649_vm0 = vmmov %vm6646_vm1 }
 0x2c3   : > { %1673 = vst.msk [vmem:[#allocation2 + $0xa8] sm:$0xff] %vm6637_vm6, %v1599_v14  ;;  %2781 = vrot.lane.b32.xlu1 %v4745_v2, %s6422_s20  ;;  %vm6652_vm6 = vcmask 326912  }
 0x2c4   : > { %2779 = vrot.lane.b32.xlu0 %v4735_v30, %s6422_s20  ;;  %vm6659_vm10 = vmmov %vm6652_vm6 }
 0x2c5   : > { %v1601_v13 = vpop.permute.xlu1 %1600 }
 0x2c6   : > { %1674 = vst.msk [vmem:[#allocation2 + $0xb0] sm:$0xff] %vm6638_vm3, %v1601_v13  ;;  %v2958_v11 = vpop.permute.xlu0 %2957  ;;  %v3065_v38 = vld [vmem:[#allocation2 + $0x88] sm:$0xff]  ;;  %vm6653_vm3 = vmmov %vm6649_vm0 }
 0x2c7   : > { %3035 = vst.msk [vmem:[#allocation2 + $0x98] sm:$0xff] %vm6639_vm2, %v2958_v11  ;;  %2967 = vrot.lane.b32.xlu1 %v5871_v33, %s4093_s21  ;;  %v3088_v50 = vpack.c.bf16 %v3065_v38, %v3064_v12  ;;  %vm5988_vm2 = vcmp.le.s32.totalorder %v1173_v42, 14 }
 0x2c8   : > { %2783 = vrot.lane.b32.xlu0 %v4754_v39, %s6422_s20  ;;  %v3846_v49 = vpop.f32.mrb[4].mxu1 }
 0x2c9   : > { %v1919_v36 = vpop.permute.xlu1 %1918  ;;  %v3201_v35 = vpop.f32.mrb[5].mxu1  ;;  %3860 = vmatprep.mubr.bf16.mxu1 %v3088_v50  ;;  %v3210_v55 = vadd.f32 %v3846_v49, %v5924_v20  ;;  %v3066_v23 = vld [vmem:[#allocation2 + $0x90] sm:$0xff] }
 0x2ca   : > { %1995 = vst.msk [vmem:[#allocation2 + $0xa0] sm:$0xff] %vm6640_vm9, %v1919_v36  ;;  %v3202_v60 = vadd.f32 %v5924_v20, %v3201_v35  ;;  %v1603_v3 = vpop.permute.xlu0 %1602  ;;  %v3847_v9 = vpop.f32.mrb[6].mxu1  ;;  %vm6656_vm9 = vmmov %vm6652_vm6 }
 0x2cb   : > { %1675 = vst.msk [vmem:[#allocation2 + $0xb8] sm:$0xff] %vm6641_vm12, %v1603_v3  ;;  %1612 = vrot.lane.b32.xlu1 %v4728_v24, %s6387_s18  ;;  %v3204_v18 = vpop.f32.mrb[7].mxu1  ;;  %v3213_v58 = vadd.f32 %v3847_v9, %v5924_v20  ;;  %v3330_v51 = vmax.f32 %v3210_v55, 0.0  ;;  %vm6657_vm12 = vmmov %vm6652_vm6 }
 0x2cc   : > { %v3205_v6 = vadd.f32 %v5924_v20, %v3204_v18  ;;  %2969 = vrot.lane.b32.xlu0 %v2880_v45, %s4093_s21  ;;  %v3328_v37 = vmax.f32 %v3202_v60, 0.0  ;;  %v6671_v60 = vld [vmem:[#allocation6_spill] sm:$0xff]  ;;  %v6676_v45 = vld [vmem:[#allocation7_spill] sm:$0xff] }
 0x2cd   : > { %v1923_v17 = vpop.permute.xlu1 %1922  ;;  %v3331_v46 = vmax.f32 %v3213_v58, 0.0  ;;  %v2886_v58 = vsel %vm5988_vm2, %v6671_v60, 0.0 }
 0x2ce   : > { %v3329_v5 = vmax.f32 %v3205_v6, 0.0  ;;  %1997 = vst.msk [vmem:[#allocation2 + $0xb0] sm:$0xff] %vm6642_vm15, %v1923_v17  ;;  %v1921_v24 = vpop.permute.xlu0 %1920  ;;  %v3067_v52 = vld [vmem:[#allocation2 + $0x98] sm:$0xff]  ;;  %vm6658_vm15 = vcmask 392512  }
 0x2cf   : > { %1996 = vst.msk [vmem:[#allocation2 + $0xa8] sm:$0xff] %vm6644_vm4, %v1921_v24  ;;  %2971 = vrot.lane.b32.xlu1 %v5946_v15, %s4093_s21  ;;  %v3089_v0 = vpack.c.bf16 %v3067_v52, %v3066_v23  ;;  %vm6661_vm4 = vmmov %vm6658_vm15 }
 0x2d0   : > { %v3360_v62 = vadd.f32 %v3329_v5, %v3328_v37  ;;  %1614 = vrot.lane.b32.xlu0 %v4735_v30, %s6387_s18  ;;  %v2882_v30 = vsel %vm5817_vm8, %v5956_v31, 0.0  ;;  %vm5976_vm8 = vcmp.le.s32.totalorder %v1159_v19, 14  ;;  %vm6662_vm13 = vmmov %vm6661_vm4  ;;  %v6684_v37 = vmov 0.0  }
 0x2d1   : > { %v2119_v48 = vpop.permute.xlu1 %2118  ;;  %3861 = vmatmul.mubr.bf16.gmra.mrb[20].mxu1 %v3089_v0  ;;  %v2370_v35 = vsel %vm5976_vm8, %v5956_v31, 0.0 }
 0x2d2   : > { %v3361_v44 = vadd.f32 %v3360_v62, %v3330_v51  ;;  %2195 = vst.msk [vmem:[#allocation2 + $0xa0] sm:$0xff] %vm6646_vm1, %v2119_v48  ;;  %v1925_v32 = vpop.permute.xlu0 %1924  ;;  %vm6663_vm1 = vcmask 1040384   ;;  %v3983_v51 = vpack.i.bf16 %v2886_v58, %v6671_v60 }
 0x2d3   : > { %1998 = vst.msk [vmem:[#allocation2 + $0xb8] sm:$0xff] %vm6647_vm11, %v1925_v32  ;;  %1616 = vrot.lane.b32.xlu1 %v4745_v2, %s6387_s18  ;;  %vm6664_vm11 = vcmask 458112  }
 0x2d4   : > { %2973 = vrot.lane.b32.xlu0 %v2882_v30, %s4093_s21  ;;  %v5968_v22 = vadd.f32 %v3361_v44, %v3331_v46 }
 0x2d5   : > { %v2123_v40 = vpop.permute.xlu1 %2122 }
 0x2d6   : > { %2197 = vst.msk [vmem:[#allocation2 + $0xb0] sm:$0xff] %vm6648_vm7, %v2123_v40  ;;  %v2121_v61 = vpop.permute.xlu0 %2120  ;;  %vm6665_vm7 = vmmov %vm6661_vm4 }
 0x2d7   : > { %2196 = vst.msk [vmem:[#allocation2 + $0xa8] sm:$0xff] %vm6649_vm0, %v2121_v61  ;;  %1934 = vrot.lane.b32.xlu1 %v5871_v33, %s6396_s27  ;;  %v1843_v33 = vsel %vm5976_vm8, %v5883_v29, 0.0  ;;  %v1845_v29 = vsel %vm5988_vm2, %v5956_v31, 0.0  ;;  %vm6666_vm0 = vmmov %vm6664_vm11 }
 0x2d8   : > { %1618 = vrot.lane.b32.xlu0 %v4754_v39, %s6387_s18  ;;  %s6675_s18 = smov 48  }
 0x2d9   : > { %v2248_v54 = vpop.permute.xlu1 %2247 }
 0x2da   : > { %2324 = vst.msk [vmem:[#allocation2 + $0xa0] sm:$0xff] %vm6652_vm6, %v2248_v54  ;;  %v2125_v21 = vpop.permute.xlu0 %2124  ;;  %vm6667_vm6 = vmmov %vm6666_vm0 }
 0x2db   : > { %2198 = vst.msk [vmem:[#allocation2 + $0xb8] sm:$0xff] %vm6653_vm3, %v2125_v21  ;;  %1938 = vrot.lane.b32.xlu1 %v5946_v15, %s6396_s27  ;;  %vm6668_vm3 = vcmask 523712  }
 0x2dc   : > { %1936 = vrot.lane.b32.xlu0 %v1843_v33, %s6396_s27 }
 0x2dd   : > { %v2252_v41 = vpop.permute.xlu1 %2251 }
 0x2de   : > { %2326 = vst.msk [vmem:[#allocation2 + $0xb0] sm:$0xff] %vm6656_vm9, %v2252_v41  ;;  %v2250_v53 = vpop.permute.xlu0 %2249  ;;  %vm6669_vm9 = vcmask 1046528  }
 0x2df   : > { %2325 = vst.msk [vmem:[#allocation2 + $0xa8] sm:$0xff] %vm6657_vm12, %v2250_v53  ;;  %2134 = vrot.lane.b32.xlu1 %v2042_v1, %s6565_s11  ;;  %v2010_v1 = vrot.slane %v6660_v59, 7  ;;  %vm6670_vm12 = vmmov %vm6666_vm0 }
 0x2e0   : > { %1940 = vrot.lane.b32.xlu0 %v1845_v29, %s6396_s27 }
 0x2e1   : > { %v2446_v14 = vpop.permute.xlu1 %2445  ;;  %v2011_v38 = vsel %vm6663_vm1, %v2008_v34, %v2010_v1  ;;  %v2336_v34 = vrot.slane %v6660_v59, 1 }
 0x2e2   : > { %2522 = vst.msk [vmem:[#allocation2 + $0xa0] sm:$0xff] %vm6658_vm15, %v2446_v14  ;;  %v2254_v13 = vpop.permute.xlu0 %2253  ;;  %vm6672_vm15 = vmmov %vm6669_vm9 }
 0x2e3   : > { %2327 = vst.msk [vmem:[#allocation2 + $0xb8] sm:$0xff] %vm6659_vm10, %v2254_v13  ;;  %2138 = vrot.lane.b32.xlu1 %v2044_v7, %s6565_s11  ;;  %v2338_v3 = vsel %vm6672_vm15, %v2336_v34, %v6671_v60  ;;  %vm6673_vm10 = vmmov %vm6668_vm3  ;;  %vm6691_vm15 = vcmask 261312  }
 0x2e4   : > { %2136 = vrot.lane.b32.xlu0 %v5574_v56, %s6565_s11  ;;  %v2372_v18 = vsel %vm5988_vm2, %v2338_v3, 0.0  ;;  %v2884_v24 = vsel %vm5976_vm8, %v2338_v3, 0.0  ;;  %vm6687_vm2 = vcmask 195712  }
 0x2e5   : > { %v2450_v11 = vpop.permute.xlu1 %2449 }
 0x2e6   : > { %2524 = vst.msk [vmem:[#allocation2 + $0xb0] sm:$0xff] %vm6661_vm4, %v2450_v11  ;;  %v2448_v12 = vpop.permute.xlu0 %2447  ;;  %vm6674_vm4 = vmmov %vm6668_vm3 }
 0x2e7   : > { %2523 = vst.msk [vmem:[#allocation2 + $0xa8] sm:$0xff] %vm6662_vm13, %v2448_v12  ;;  %2263 = vrot.lane.b32.xlu1 %v4745_v2, %s6420_s12  ;;  %vm6677_vm13 = vmmov %vm6663_vm1  ;;  %vm6678_vm1 = vcmask 589312  }
 0x2e8   : > { %2140 = vrot.lane.b32.xlu0 %v2011_v38, %s6565_s11  ;;  %v2534_v55 = vsel %vm6677_vm13, %v2010_v1, %v6676_v45  ;;  %s4026_s11 = scalar_lea.vmem %s4025_s0, 32 }
 0x2e9   : > { %v2641_v7 = vpop.permute.xlu1 %2640  ;;  %v2566_v17 = vsel %vm5403_vm14, %v2534_v55, 0.0  ;;  %vm6682_vm14 = vmmov %vm6678_vm1 }
 0x2ea   : > { %2717 = vst.msk [vmem:[#allocation2 + $0xa0] sm:$0xff] %vm6664_vm11, %v2641_v7  ;;  %v2452_v50 = vpop.permute.xlu0 %2451  ;;  %vm6679_vm11 = vmmov %vm6668_vm3 }
 0x2eb   : > { %2525 = vst.msk [vmem:[#allocation2 + $0xb8] sm:$0xff] %vm6665_vm7, %v2452_v50  ;;  %2267 = vrot.lane.b32.xlu1 %v6549_v4, %s6420_s12  ;;  %vm6681_vm7 = vmmov %vm6678_vm1 }
 0x2ec   : > { %2265 = vrot.lane.b32.xlu0 %v4754_v39, %s6420_s12  ;;  %v2337_v39 = vsel %vm6669_vm9, %v1780_v25, %v2336_v34  ;;  %vm6689_vm9 = vmmov %vm6687_vm2 }
 0x2ed   : > { %v2645_v56 = vpop.permute.xlu1 %2644 }
 0x2ee   : > { %2719 = vst.msk [vmem:[#allocation2 + $0xb0] sm:$0xff] %vm6666_vm0, %v2645_v56  ;;  %v2643_v2 = vpop.permute.xlu0 %2642  ;;  %vm6683_vm0 = vmmov %vm6680_vm5 }
 0x2ef   : > { %2718 = vst.msk [vmem:[#allocation2 + $0xa8] sm:$0xff] %vm6667_vm6, %v2643_v2  ;;  %2461 = vrot.lane.b32.xlu1 %v5946_v15, %s4092_s28  ;;  %vm6685_vm6 = vmmov %vm6683_vm0 }
 0x2f0   : > { %2269 = vrot.lane.b32.xlu0 %v6660_v59, %s6420_s12  ;;  %vm6688_vm8 = vmmov %vm6683_vm0  ;;  %s3537_s12 = scalar_lea.sflag [#allocation4], %s6748_s26 }
 0x2f1   : > { %v2770_v49 = vpop.permute.xlu1 %2769 }
 0x2f2   : > { %2843 = vst.msk [vmem:[#allocation2 + $0xa0] sm:$0xff] %vm6668_vm3, %v2770_v49  ;;  %v2647_v36 = vpop.permute.xlu0 %2646  ;;  %vm6686_vm3 = vmmov %vm6678_vm1 }
 0x2f3   : > { %2720 = vst.msk [vmem:[#allocation2 + $0xb8] sm:$0xff] %vm6670_vm12, %v2647_v36  ;;  %2465 = vrot.lane.b32.xlu1 %v2337_v39, %s4092_s28  ;;  %vm6690_vm12 = vmmov %vm6687_vm2 }
 0x2f4   : > { %2463 = vrot.lane.b32.xlu0 %v2370_v35, %s4092_s28 }
 0x2f5   : > { %v2774_v9 = vpop.permute.xlu1 %2773 }
 0x2f6   : > { %2845 = vst.msk [vmem:[#allocation2 + $0xb0] sm:$0xff] %vm6673_vm10, %v2774_v9  ;;  %v2772_v43 = vpop.permute.xlu0 %2771  ;;  %vm6692_vm10 = vmmov %vm6687_vm2 }
 0x2f7   : > { %2844 = vst.msk [vmem:[#allocation2 + $0xa8] sm:$0xff] %vm6674_vm4, %v2772_v43  ;;  %2656 = vrot.lane.b32.xlu1 %v2564_v27, %s6675_s18  ;;  %vm6693_vm4 = vmmov %vm6691_vm15 }
 0x2f8   : > { %2467 = vrot.lane.b32.xlu0 %v2372_v18, %s4092_s28  ;;  %vm6694_vm13 = vmmov %vm6693_vm4  ;;  %s6280_s28 = scalar_lea.hbm %s6339_s9, %s3676_s1 }
 0x2f9   : > { %v2960_v6 = vpop.permute.xlu1 %2959 }
 0x2fa   : > { %3036 = vst.msk [vmem:[#allocation2 + $0xa0] sm:$0xff] %vm6678_vm1, %v2960_v6  ;;  %v2776_v25 = vpop.permute.xlu0 %2775  ;;  %vm6695_vm1 = vcmask 326912  }
 0x2fb   : > { %2846 = vst.msk [vmem:[#allocation2 + $0xb8] sm:$0xff] %vm6679_vm11, %v2776_v25  ;;  %2660 = vrot.lane.b32.xlu1 %v2566_v17, %s6675_s18  ;;  %vm6696_vm11 = vmmov %vm6693_vm4 }
 0x2fc   : > { %2658 = vrot.lane.b32.xlu0 %v2011_v38, %s6675_s18 }
 0x2fd   : > { %v1605_v26 = vpop.permute.xlu1 %1604 }
 0x2fe   : > { %1676 = vst.msk [vmem:[#allocation2 + $0xc0] sm:$0xff] %vm6680_vm5, %v1605_v26  ;;  %v2962_v16 = vpop.permute.xlu0 %2961  ;;  %vm6697_vm5 = vmmov %vm6695_vm1 }
 0x2ff   : > { %3037 = vst.msk [vmem:[#allocation2 + $0xa8] sm:$0xff] %vm6681_vm7, %v2962_v16  ;;  %2785 = vrot.lane.b32.xlu1 %v6549_v4, %s6422_s20  ;;  %vm6698_vm7 = vmmov %vm6695_vm1 }
 0x300   : > { %2662 = vrot.lane.b32.xlu0 %v6676_v45, %s6675_s18 }
 0x301   : > { %v2964_v8 = vpop.permute.xlu1 %2963  ;;  %v3068_v15 = vld [vmem:[#allocation2 + $0xa0] sm:$0xff] }
 0x302   : > { %3038 = vst.msk [vmem:[#allocation2 + $0xb0] sm:$0xff] %vm6682_vm14, %v2964_v8  ;;  %v1607_v27 = vpop.permute.xlu0 %1606  ;;  %vm6699_vm14 = vcmask 392512  }
 0x303   : > { %1677 = vst.msk [vmem:[#allocation2 + $0xc8] sm:$0xff] %vm6683_vm0, %v1607_v27  ;;  %2789 = vrot.lane.b32.xlu1 %v6684_v37, %s6422_s20  ;;  %vm6700_vm0 = vmmov %vm6695_vm1 }
 0x304   : > { %2787 = vrot.lane.b32.xlu0 %v6660_v59, %s6422_s20 }
 0x305   : > { %v1609_v4 = vpop.permute.xlu1 %1608 }
 0x306   : > { %1678 = vst.msk [vmem:[#allocation2 + $0xd0] sm:$0xff] %vm6685_vm6, %v1609_v4  ;;  %v2966_v5 = vpop.permute.xlu0 %2965  ;;  %v3069_v23 = vld [vmem:[#allocation2 + $0xa8] sm:$0xff]  ;;  %vm6701_vm6 = vmmov %vm6699_vm14 }
 0x307   : > { %3039 = vst.msk [vmem:[#allocation2 + $0xb8] sm:$0xff] %vm6686_vm3, %v2966_v5  ;;  %2977 = vrot.lane.b32.xlu1 %v2884_v24, %s4093_s21  ;;  %v3090_v52 = vpack.c.bf16 %v3069_v23, %v3068_v15  ;;  %vm6702_vm3 = vmmov %vm6701_vm6 }
 0x308   : > { %2975 = vrot.lane.b32.xlu0 %v2337_v39, %s4093_s21  ;;  %v3850_v0 = vpop.f32.mrb[8].mxu1 }
 0x309   : > { %v1927_v62 = vpop.permute.xlu1 %1926  ;;  %v3217_v31 = vpop.f32.mrb[9].mxu1  ;;  %3864 = vmatprep.mubr.bf16.mxu1 %v3090_v52  ;;  %v3226_v32 = vadd.f32 %v3850_v0, %v5924_v20  ;;  %v3070_v54 = vld [vmem:[#allocation2 + $0xb0] sm:$0xff] }
 0x30a   : > { %1999 = vst.msk [vmem:[#allocation2 + $0xc0] sm:$0xff] %vm6687_vm2, %v1927_v62  ;;  %v3218_v57 = vadd.f32 %v5924_v20, %v3217_v31  ;;  %v1611_v48 = vpop.permute.xlu0 %1610  ;;  %v3851_v46 = vpop.f32.mrb[10].mxu1  ;;  %vm6703_vm2 = vcmask 458112  }
 0x30b   : > { %1679 = vst.msk [vmem:[#allocation2 + $0xd8] sm:$0xff] %vm6688_vm8, %v1611_v48  ;;  %v3220_v44 = vpop.f32.mrb[11].mxu1  ;;  %v3229_v61 = vadd.f32 %v3851_v46, %v5924_v20  ;;  %v3334_v63 = vmax.f32 %v3226_v32, 0.0  ;;  %vm6704_vm8 = vmmov %vm6702_vm3 }
 0x30c   : > { %v3332_v30 = vmax.f32 %v3218_v57, 0.0  ;;  %v3221_v19 = vadd.f32 %v5924_v20, %v3220_v44  ;;  %3984 = vrot.lane.b32.xlu0 %v3983_v51, %s4093_s21  ;;  %s3553_s21 = sshll.u32 %s5557_s25, 4  ;;  %s3554_s21 = int_to_ptr.vmem [resolvable:$true] %s3553_s21 }
 0x30d   : > { %v1931_v10 = vpop.permute.xlu1 %1930  ;;  %v3335_v29 = vmax.f32 %v3229_v61, 0.0  ;;  %s4020_s20 = scalar_lea.vmem %s3554_s21, 16  ;;  %p4027_p0 = scmp.lt.s32.totalorder %s3554_s21, %s4025_s0 }
 0x30e   : > { %v3363_v40 = vadd.f32 %v5968_v22, %v3332_v30  ;;  %v3333_v47 = vmax.f32 %v3221_v19, 0.0  ;;  %2001 = vst.msk [vmem:[#allocation2 + $0xd0] sm:$0xff] %vm6689_vm9, %v1931_v10  ;;  %v1929_v42 = vpop.permute.xlu0 %1928  ;;  %v3071_v21 = vld [vmem:[#allocation2 + $0xb8] sm:$0xff]  ;;  %vm6705_vm9 = vmmov %vm6703_vm2  ;;  %p4021_p11 = scmp.ne.s32.totalorder %s3554_s21, %s4020_s20  ;;  %p4028_p1 = scmp.lt.s32.totalorder %s4026_s11, %s4020_s20 }
 0x30f   : > { %2000 = vst.msk [vmem:[#allocation2 + $0xc8] sm:$0xff] %vm6690_vm12, %v1929_v42  ;;  %v3091_v33 = vpack.c.bf16 %v3071_v21, %v3070_v54  ;;  %vm6706_vm12 = vmmov %vm6703_vm2 }
 0x310   : > { %v3364_v41 = vadd.f32 %v3363_v40, %v3333_v47  ;;  %p4022_p12 = pnand %p4021_p11, %p4190_p5  ;;  %p4029_p2 = por %p4028_p1, %p4027_p0 }
 0x311   : > { %v2127_v53 = vpop.permute.xlu1 %2126  ;;  %3865 = vmatmul.mubr.bf16.gmra.mrb[24].mxu1 %v3091_v33 }
 0x312   : > { %v3365_v14 = vadd.f32 %v3364_v41, %v3334_v63  ;;  %2199 = vst.msk [vmem:[#allocation2 + $0xc0] sm:$0xff] %vm6691_vm15, %v2127_v53  ;;  %v1933_v22 = vpop.permute.xlu0 %1932  ;;  %vm6707_vm15 = vcmask 523712   ;;  %p4023_p13 = pneg %p4022_p12 }
 0x313   : > { %2002 = vst.msk [vmem:[#allocation2 + $0xd8] sm:$0xff] %vm6692_vm10, %v1933_v22  ;;  %vm6708_vm10 = vmmov %vm6703_vm2 }
 0x314   : > { %v6098_v13 = vadd.f32 %v3365_v14, %v3335_v29  ;;  %p4030_p3 = pnand %p4029_p2, %p4023_p13 }
 0x315   : > { %v2131_v59 = vpop.permute.xlu1 %2130 }
 0x316   : > { %2201 = vst.msk [vmem:[#allocation2 + $0xd0] sm:$0xff] %vm6693_vm4, %v2131_v59  ;;  %v2129_v1 = vpop.permute.xlu0 %2128  ;;  %vm6709_vm4 = vmmov %vm6707_vm15 }
 0x317   : > { %2200 = vst.msk [vmem:[#allocation2 + $0xc8] sm:$0xff] %vm6694_vm13, %v2129_v1  ;;  %vm6710_vm13 = vmmov %vm6709_vm4 }
 0x319   : > { %v2256_v11 = vpop.permute.xlu1 %2255 }
 0x31a   : > { %2328 = vst.msk [vmem:[#allocation2 + $0xc0] sm:$0xff] %vm6695_vm1, %v2256_v11  ;;  %v2133_v12 = vpop.permute.xlu0 %2132  ;;  %vm6711_vm1 = vcmask 589312  }
 0x31b   : > { %2202 = vst.msk [vmem:[#allocation2 + $0xd8] sm:$0xff] %vm6696_vm11, %v2133_v12  ;;  %vm6712_vm11 = vmmov %vm6709_vm4 }
 0x31d   : > { %v2260_v38 = vpop.permute.xlu1 %2259 }
 0x31e   : > { %2330 = vst.msk [vmem:[#allocation2 + $0xd0] sm:$0xff] %vm6697_vm5, %v2260_v38  ;;  %v2258_v7 = vpop.permute.xlu0 %2257  ;;  %vm6713_vm5 = vcmask 130112  }
 0x31f   : > { %2329 = vst.msk [vmem:[#allocation2 + $0xc8] sm:$0xff] %vm6698_vm7, %v2258_v7  ;;  %vm6714_vm7 = vmmov %vm6711_vm1 }
 0x321   : > { %v2454_v50 = vpop.permute.xlu1 %2453 }
 0x322   : > { %2526 = vst.msk [vmem:[#allocation2 + $0xc0] sm:$0xff] %vm6699_vm14, %v2454_v50  ;;  %v2262_v56 = vpop.permute.xlu0 %2261  ;;  %vm6715_vm14 = vmmov %vm6711_vm1 }
 0x323   : > { %2331 = vst.msk [vmem:[#allocation2 + $0xd8] sm:$0xff] %vm6700_vm0, %v2262_v56  ;;  %vm6716_vm0 = vmmov %vm6713_vm5 }
 0x325   : > { %v2458_v2 = vpop.permute.xlu1 %2457 }
 0x326   : > { %2528 = vst.msk [vmem:[#allocation2 + $0xd0] sm:$0xff] %vm6701_vm6, %v2458_v2  ;;  %v2456_v34 = vpop.permute.xlu0 %2455  ;;  %vm6717_vm6 = vmmov %vm6716_vm0 }
 0x327   : > { %2527 = vst.msk [vmem:[#allocation2 + $0xc8] sm:$0xff] %vm6702_vm3, %v2456_v34  ;;  %vm6718_vm3 = vmmov %vm6711_vm1 }
 0x329   : > { %v2649_v49 = vpop.permute.xlu1 %2648 }
 0x32a   : > { %2721 = vst.msk [vmem:[#allocation2 + $0xc0] sm:$0xff] %vm6703_vm2, %v2649_v49  ;;  %v2460_v36 = vpop.permute.xlu0 %2459  ;;  %vm6719_vm2 = vcmask 195712  }
 0x32b   : > { %2529 = vst.msk [vmem:[#allocation2 + $0xd8] sm:$0xff] %vm6704_vm8, %v2460_v36  ;;  %vm6720_vm8 = vmmov %vm6716_vm0 }
 0x32d   : > { %v2653_v39 = vpop.permute.xlu1 %2652 }
 0x32e   : > { %2723 = vst.msk [vmem:[#allocation2 + $0xd0] sm:$0xff] %vm6705_vm9, %v2653_v39  ;;  %v2651_v35 = vpop.permute.xlu0 %2650  ;;  %vm6721_vm9 = vmmov %vm6719_vm2 }
 0x32f   : > { %2722 = vst.msk [vmem:[#allocation2 + $0xc8] sm:$0xff] %vm6706_vm12, %v2651_v35  ;;  %vm6722_vm12 = vmmov %vm6719_vm2 }
 0x331   : > { %v2778_v60 = vpop.permute.xlu1 %2777 }
 0x332   : > { %2847 = vst.msk [vmem:[#allocation2 + $0xc0] sm:$0xff] %vm6707_vm15, %v2778_v60  ;;  %v2655_v3 = vpop.permute.xlu0 %2654  ;;  %vm6723_vm15 = vcmask 261312  }
 0x333   : > { %2724 = vst.msk [vmem:[#allocation2 + $0xd8] sm:$0xff] %vm6708_vm10, %v2655_v3  ;;  %vm6724_vm10 = vmmov %vm6719_vm2 }
 0x335   : > { %v2782_v9 = vpop.permute.xlu1 %2781 }
 0x336   : > { %2849 = vst.msk [vmem:[#allocation2 + $0xd0] sm:$0xff] %vm6709_vm4, %v2782_v9  ;;  %v2780_v43 = vpop.permute.xlu0 %2779  ;;  %vm6725_vm4 = vmmov %vm6723_vm15 }
 0x337   : > { %2848 = vst.msk [vmem:[#allocation2 + $0xc8] sm:$0xff] %vm6710_vm13, %v2780_v43  ;;  %vm6726_vm13 = vmmov %vm6725_vm4 }
 0x339   : > { %v2968_v18 = vpop.permute.xlu1 %2967 }
 0x33a   : > { %3040 = vst.msk [vmem:[#allocation2 + $0xc0] sm:$0xff] %vm6711_vm1, %v2968_v18  ;;  %v2784_v45 = vpop.permute.xlu0 %2783  ;;  %vm6727_vm1 = vcmask 326912  }
 0x33b   : > { %2850 = vst.msk [vmem:[#allocation2 + $0xd8] sm:$0xff] %vm6712_vm11, %v2784_v45  ;;  %vm6728_vm11 = vmmov %vm6725_vm4 }
 0x33d   : > { %v1613_v55 = vpop.permute.xlu1 %1612 }
 0x33e   : > { %1680 = vst.msk [vmem:[#allocation2 + $0xe0] sm:$0xff] %vm6713_vm5, %v1613_v55  ;;  %v2970_v6 = vpop.permute.xlu0 %2969  ;;  %vm6729_vm5 = vmmov %vm6727_vm1 }
 0x33f   : > { %3041 = vst.msk [vmem:[#allocation2 + $0xc8] sm:$0xff] %vm6714_vm7, %v2970_v6  ;;  %vm6730_vm7 = vmmov %vm6727_vm1 }
 0x341   : > { %v2972_v25 = vpop.permute.xlu1 %2971  ;;  %v3072_v8 = vld [vmem:[#allocation2 + $0xc0] sm:$0xff] }
 0x342   : > { %3042 = vst.msk [vmem:[#allocation2 + $0xd0] sm:$0xff] %vm6715_vm14, %v2972_v25  ;;  %v1615_v17 = vpop.permute.xlu0 %1614  ;;  %vm6731_vm14 = vcmask 392512  }
 0x343   : > { %1681 = vst.msk [vmem:[#allocation2 + $0xe8] sm:$0xff] %vm6716_vm0, %v1615_v17  ;;  %vm6732_vm0 = vmmov %vm6727_vm1 }
 0x345   : > { %v1617_v26 = vpop.permute.xlu1 %1616 }
 0x346   : > { %1682 = vst.msk [vmem:[#allocation2 + $0xf0] sm:$0xff] %vm6717_vm6, %v1617_v26  ;;  %v2974_v16 = vpop.permute.xlu0 %2973  ;;  %v3073_v27 = vld [vmem:[#allocation2 + $0xc8] sm:$0xff]  ;;  %vm6733_vm6 = vmmov %vm6731_vm14 }
 0x347   : > { %3043 = vst.msk [vmem:[#allocation2 + $0xd8] sm:$0xff] %vm6718_vm3, %v2974_v16  ;;  %v3092_v37 = vpack.c.bf16 %v3073_v27, %v3072_v8  ;;  %vm6734_vm3 = vmmov %vm6733_vm6 }
 0x348   : > { %v3854_v58 = vpop.f32.mrb[12].mxu1 }
 0x349   : > { %v1935_v4 = vpop.permute.xlu1 %1934  ;;  %v3233_v5 = vpop.f32.mrb[13].mxu1  ;;  %3868 = vmatprep.mubr.bf16.mxu1 %v3092_v37  ;;  %v3242_v0 = vadd.f32 %v3854_v58, %v5924_v20  ;;  %v3074_v32 = vld [vmem:[#allocation2 + $0xd0] sm:$0xff] }
 0x34a   : > { %2003 = vst.msk [vmem:[#allocation2 + $0xe0] sm:$0xff] %vm6719_vm2, %v1935_v4  ;;  %v3234_v24 = vadd.f32 %v5924_v20, %v3233_v5  ;;  %v1619_v15 = vpop.permute.xlu0 %1618  ;;  %v3855_v23 = vpop.f32.mrb[14].mxu1  ;;  %vm6735_vm2 = vcmask 458112  }
 0x34b   : > { %1683 = vst.msk [vmem:[#allocation2 + $0xf8] sm:$0xff] %vm6720_vm8, %v1619_v15  ;;  %v3236_v52 = vpop.f32.mrb[15].mxu1  ;;  %v3245_v48 = vadd.f32 %v3855_v23, %v5924_v20  ;;  %v3338_v10 = vmax.f32 %v3242_v0, 0.0  ;;  %vm6736_vm8 = vmmov %vm6734_vm3 }
 0x34c   : > { %v3336_v51 = vmax.f32 %v3234_v24, 0.0  ;;  %v3237_v62 = vadd.f32 %v5924_v20, %v3236_v52 }
 0x34d   : > { %v1939_v31 = vpop.permute.xlu1 %1938  ;;  %v3339_v47 = vmax.f32 %v3245_v48, 0.0 }
 0x34e   : > { %v3367_v57 = vadd.f32 %v6098_v13, %v3336_v51  ;;  %v3337_v46 = vmax.f32 %v3237_v62, 0.0  ;;  %2005 = vst.msk [vmem:[#allocation2 + $0xf0] sm:$0xff] %vm6721_vm9, %v1939_v31  ;;  %v1937_v44 = vpop.permute.xlu0 %1936  ;;  %v3075_v30 = vld [vmem:[#allocation2 + $0xd8] sm:$0xff]  ;;  %vm6737_vm9 = vmmov %vm6735_vm2 }
 0x34f   : > { %2004 = vst.msk [vmem:[#allocation2 + $0xe8] sm:$0xff] %vm6722_vm12, %v1937_v44  ;;  %v3093_v19 = vpack.c.bf16 %v3075_v30, %v3074_v32  ;;  %vm6738_vm12 = vmmov %vm6735_vm2 }
 0x350   : > { %v3368_v40 = vadd.f32 %v3367_v57, %v3337_v46 }
 0x351   : > { %v2135_v61 = vpop.permute.xlu1 %2134  ;;  %3869 = vmatmul.mubr.bf16.gmra.mrb[28].mxu1 %v3093_v19 }
 0x352   : > { %v3369_v42 = vadd.f32 %v3368_v40, %v3338_v10  ;;  %2203 = vst.msk [vmem:[#allocation2 + $0xe0] sm:$0xff] %vm6723_vm15, %v2135_v61  ;;  %v1941_v54 = vpop.permute.xlu0 %1940  ;;  %vm6739_vm15 = vcmask 523712  }
 0x353   : > { %2006 = vst.msk [vmem:[#allocation2 + $0xf8] sm:$0xff] %vm6724_vm10, %v1941_v54  ;;  %vm6740_vm10 = vmmov %vm6735_vm2  ;;  %v3399_v54 = vld [vmem:[%s6337_s7 + $0x8] sm:$0xff] }
 0x354   : > { %v3370_v21 = vadd.f32 %v3369_v42, %v3339_v47 }
 0x355   : > { %v2139_v33 = vpop.permute.xlu1 %2138 }
 0x356   : > { %2205 = vst.msk [vmem:[#allocation2 + $0xf0] sm:$0xff] %vm6725_vm4, %v2139_v33  ;;  %v2137_v63 = vpop.permute.xlu0 %2136  ;;  %vm6741_vm4 = vmmov %vm6739_vm15  ;;  %v3398_v33 = vld [vmem:[%s6337_s7] sm:$0xff] }
 0x357   : > { %2204 = vst.msk [vmem:[#allocation2 + $0xe8] sm:$0xff] %vm6726_vm13, %v2137_v63  ;;  %vm6742_vm13 = vmmov %vm6741_vm4 }
 0x359   : > { %v2264_v41 = vpop.permute.xlu1 %2263 }
 0x35a   : > { %2332 = vst.msk [vmem:[#allocation2 + $0xe0] sm:$0xff] %vm6727_vm1, %v2264_v41  ;;  %v2141_v53 = vpop.permute.xlu0 %2140  ;;  %vm6743_vm1 = vmmov %vm6741_vm4  ;;  %v3400_v41 = vld [vmem:[%s6337_s7 + $0x10] sm:$0xff] }
 0x35b   : > { %2206 = vst.msk [vmem:[#allocation2 + $0xf8] sm:$0xff] %vm6728_vm11, %v2141_v53  ;;  %vm6744_vm11 = vcmask 589312   ;;  %v3403_v53 = vld [vmem:[%s6337_s7 + $0x28] sm:$0xff] }
 0x35d   : > { %v2268_v29 = vpop.permute.xlu1 %2267 }
 0x35e   : > { %2334 = vst.msk [vmem:[#allocation2 + $0xf0] sm:$0xff] %vm6729_vm5, %v2268_v29  ;;  %v2266_v14 = vpop.permute.xlu0 %2265  ;;  %vm6745_vm5 = vmmov %vm6744_vm11  ;;  %v3405_v29 = vld [vmem:[%s6337_s7 + $0x38] sm:$0xff] }
 0x35f   : > { %2333 = vst.msk [vmem:[#allocation2 + $0xe8] sm:$0xff] %vm6730_vm7, %v2266_v14  ;;  %vm6746_vm7 = vmmov %vm6745_vm5 }
 0x361   : > { %v2462_v22 = vpop.permute.xlu1 %2461 }
 0x362   : > { %2530 = vst.msk [vmem:[#allocation2 + $0xe0] sm:$0xff] %vm6731_vm14, %v2462_v22  ;;  %v2270_v13 = vpop.permute.xlu0 %2269  ;;  %vm6747_vm14 = vmmov %vm6745_vm5  ;;  %v3902_v22 = vpack.c.bf16 %v3400_v41, %v3398_v33 }
 0x363   : > { %2335 = vst.msk [vmem:[#allocation2 + $0xf8] sm:$0xff] %vm6732_vm0, %v2270_v13  ;;  %v3904_v13 = vpack.c.bf16 %v3405_v29, %v3403_v53 }
 0x365   : > { %v2466_v59 = vpop.permute.xlu1 %2465 }
 0x366   : > { %2532 = vst.msk [vmem:[#allocation2 + $0xf0] sm:$0xff] %vm6733_vm6, %v2466_v59  ;;  %v2464_v1 = vpop.permute.xlu0 %2463  ;;  %v3402_v59 = vld [vmem:[%s6337_s7 + $0x20] sm:$0xff] }
 0x367   : > { %2531 = vst.msk [vmem:[#allocation2 + $0xe8] sm:$0xff] %vm6734_vm3, %v2464_v1  ;;  %v3404_v1 = vld [vmem:[%s6337_s7 + $0x30] sm:$0xff] }
 0x369   : > { %v2657_v11 = vpop.permute.xlu1 %2656 }
 0x36a   : > { %2725 = vst.msk [vmem:[#allocation2 + $0xe0] sm:$0xff] %vm6735_vm2, %v2657_v11  ;;  %v2468_v12 = vpop.permute.xlu0 %2467  ;;  %v3407_v11 = vld [vmem:[%s6337_s7 + $0x48] sm:$0xff] }
 0x36b   : > { %2533 = vst.msk [vmem:[#allocation2 + $0xf8] sm:$0xff] %vm6736_vm8, %v2468_v12  ;;  %v3409_v12 = vld [vmem:[%s6337_s7 + $0x58] sm:$0xff] }
 0x36d   : > { %v2661_v38 = vpop.permute.xlu1 %2660 }
 0x36e   : > { %2727 = vst.msk [vmem:[#allocation2 + $0xf0] sm:$0xff] %vm6737_vm9, %v2661_v38  ;;  %v2659_v7 = vpop.permute.xlu0 %2658  ;;  %v3906_v38 = vpack.c.bf16 %v3404_v1, %v3402_v59 }
 0x36f   : > { %2726 = vst.msk [vmem:[#allocation2 + $0xe8] sm:$0xff] %vm6738_vm12, %v2659_v7  ;;  %v3908_v7 = vpack.c.bf16 %v3409_v12, %v3407_v11 }
 0x371   : > { %v2786_v50 = vpop.permute.xlu1 %2785 }
 0x372   : > { %2851 = vst.msk [vmem:[#allocation2 + $0xe0] sm:$0xff] %vm6739_vm15, %v2786_v50  ;;  %v2663_v56 = vpop.permute.xlu0 %2662  ;;  %v3406_v50 = vld [vmem:[%s6337_s7 + $0x40] sm:$0xff] }
 0x373   : > { %2728 = vst.msk [vmem:[#allocation2 + $0xf8] sm:$0xff] %vm6740_vm10, %v2663_v56  ;;  %v3408_v56 = vld [vmem:[%s6337_s7 + $0x50] sm:$0xff] }
 0x375   : > { %v2790_v2 = vpop.permute.xlu1 %2789 }
 0x376   : > { %2853 = vst.msk [vmem:[#allocation2 + $0xf0] sm:$0xff] %vm6741_vm4, %v2790_v2  ;;  %v2788_v34 = vpop.permute.xlu0 %2787 }
 0x377   : > { %2854 = vst.msk [vmem:[#allocation2 + $0xf8] sm:$0xff] %vm6742_vm13, %v2790_v2  ;;  %v3411_v2 = vld [vmem:[%s6337_s7 + $0x68] sm:$0xff] }
 0x378   : > { %2852 = vst.msk [vmem:[#allocation2 + $0xe8] sm:$0xff] %vm6743_vm1, %v2788_v34  ;;  %v3413_v34 = vld [vmem:[%s6337_s7 + $0x78] sm:$0xff] }
 0x379   : > { %v2978_v49 = vpop.permute.xlu1 %2977 }
 0x37a   : > { %3045 = vst.msk [vmem:[#allocation2 + $0xe8] sm:$0xff] %vm6744_vm11, %v2978_v49  ;;  %v2976_v36 = vpop.permute.xlu0 %2975  ;;  %v3910_v49 = vpack.c.bf16 %v3408_v56, %v3406_v50 }
 0x37b   : > { %3044 = vst.msk [vmem:[#allocation2 + $0xe0] sm:$0xff] %vm6745_vm5, %v2976_v36  ;;  %v3912_v36 = vpack.c.bf16 %v3413_v34, %v3411_v2 }
 0x37c   : > { %v3858_v39 = vpop.f32.mrb[16].mxu1 }
 0x37d   : > { %v3249_v35 = vpop.f32.mrb[17].mxu1  ;;  %v3258_v55 = vadd.f32 %v3858_v39, %v5924_v20  ;;  %v3410_v39 = vld [vmem:[%s6337_s7 + $0x60] sm:$0xff] }
 0x37e   : > { %v3250_v60 = vadd.f32 %v5924_v20, %v3249_v35  ;;  %v3985_v3 = vpop.permute.xlu0 %3984  ;;  %v3859_v9 = vpop.f32.mrb[18].mxu1  ;;  %v3412_v35 = vld [vmem:[%s6337_s7 + $0x70] sm:$0xff] }
 0x37f   : > { %v3987_v43 = vunpack.i.h.bf16 %v3985_v3  ;;  %v3986_v18 = vunpack.i.l.bf16 %v3985_v3  ;;  %v3252_v45 = vpop.f32.mrb[19].mxu1  ;;  %v3261_v16 = vadd.f32 %v3859_v9, %v5924_v20  ;;  %v3342_v58 = vmax.f32 %v3258_v55, 0.0  ;;  %v3417_v3 = vld [vmem:[%s6337_s7 + $0x98] sm:$0xff] }
 0x380   : > { %v3340_v6 = vmax.f32 %v3250_v60, 0.0  ;;  %v3253_v25 = vadd.f32 %v5924_v20, %v3252_v45  ;;  %v3415_v60 = vld [vmem:[%s6337_s7 + $0x88] sm:$0xff]  ;;  %v3914_v9 = vpack.c.bf16 %v3412_v35, %v3410_v39  ;;  %v3416_v45 = vld [vmem:[%s6337_s7 + $0x90] sm:$0xff] }
 0x381   : > { %3046 = vst.msk [vmem:[#allocation2 + $0xf0] sm:$0xff] %vm6746_vm7, %v3986_v18  ;;  %v3077_v17 = vld [vmem:[#allocation2 + $0xe8] sm:$0xff]  ;;  %v3343_v5 = vmax.f32 %v3261_v16, 0.0  ;;  %v3414_v18 = vld [vmem:[%s6337_s7 + $0x80] sm:$0xff] }
 0x382   : > { %3047 = vst.msk [vmem:[#allocation2 + $0xf8] sm:$0xff] %vm6747_vm14, %v3987_v43  ;;  %v3371_v26 = vadd.f32 %v3370_v21, %v3340_v6  ;;  %v3341_v8 = vmax.f32 %v3253_v25, 0.0  ;;  %v3076_v27 = vld [vmem:[#allocation2 + $0xe0] sm:$0xff]  ;;  %v3401_v21 = vld [vmem:[%s6337_s7 + $0x18] sm:$0xff]  ;;  %v3916_v43 = vpack.c.bf16 %v3417_v3, %v3415_v60  ;;  %v3918_v55 = vpack.c.bf16 %v3416_v45, %v3414_v18 }
 0x383   : > { %v3094_v37 = vpack.c.bf16 %v3077_v17, %v3076_v27  ;;  %v3900_v63 = vpack.c.bf16 %v3401_v21, %v3399_v54  ;;  %v3426_v54 = vld [vmem:[%s6337_s7 + $0xe0] sm:$0xff]  ;;  %v3428_v21 = vld [vmem:[%s6337_s7 + $0xf0] sm:$0xff] }
 0x384   : > { %v3372_v4 = vadd.f32 %v3371_v26, %v3341_v8  ;;  %v3930_v33 = vpack.c.bf16 %v3428_v21, %v3426_v54 }
 0x385   : > { %3872 = vmatprep.mubr.bf16.mxu1 %v3094_v37  ;;  %3901 = vmatprep.subr.bf16.mxu0 %v3900_v63 }
 0x386   : > { %v3373_v24 = vadd.f32 %v3372_v4, %v3342_v58  ;;  %3903 = vmatpush1.bf16.msra.mxu0 %v3902_v22 }
 0x387   : > { %3905 = vmatprep.subr.bf16.mxu0 %v3904_v13 }
 0x388   : > { %v3078_v15 = vld [vmem:[#allocation2 + $0xf0] sm:$0xff]  ;;  %v3374_v52 = vadd.f32 %v3373_v24, %v3343_v5 }
 0x389   : > { %v3079_v23 = vld [vmem:[#allocation2 + $0xf8] sm:$0xff] }
 0x38a   : > { %v3095_v0 = vpack.c.bf16 %v3079_v23, %v3078_v15  ;;  %3907 = vmatpush1.bf16.msra.mxu0 %v3906_v38 }
 0x38b   : > { %3909 = vmatprep.subr.bf16.mxu0 %v3908_v7 }
 0x38c   : > { %3873 = vmatmul.mubr.bf16.gmra.mrb[32].mxu1 %v3095_v0 }
 0x38e   : > { %3911 = vmatpush1.bf16.msra.mxu0 %v3910_v49 }
 0x38f   : > { %3913 = vmatprep.subr.bf16.mxu0 %v3912_v36 }
 0x392   : > { %3915 = vmatpush1.bf16.msra.mxu0 %v3914_v9 }
 0x393   : > { %3917 = vmatprep.subr.bf16.mxu0 %v3916_v43 }
 0x396   : > { %3919 = vmatpush1.bf16.msra.mxu0 %v3918_v55 }
 0x3a4   : > { %v3862_v51 = vpop.f32.mrb[20].mxu1 }
 0x3a5   : > { %v3265_v62 = vpop.f32.mrb[21].mxu1  ;;  %v3274_v46 = vadd.f32 %v3862_v51, %v5924_v20  ;;  %v3419_v51 = vld [vmem:[%s6337_s7 + $0xa8] sm:$0xff] }
 0x3a6   : > { %v3266_v31 = vadd.f32 %v5924_v20, %v3265_v62  ;;  %v3863_v57 = vpop.f32.mrb[22].mxu1  ;;  %v3421_v62 = vld [vmem:[%s6337_s7 + $0xb8] sm:$0xff] }
 0x3a7   : > { %v3268_v48 = vpop.f32.mrb[23].mxu1  ;;  %v3277_v19 = vadd.f32 %v3863_v57, %v5924_v20  ;;  %v3346_v40 = vmax.f32 %v3274_v46, 0.0  ;;  %v3920_v57 = vpack.c.bf16 %v3421_v62, %v3419_v51  ;;  %v3423_v46 = vld [vmem:[%s6337_s7 + $0xc8] sm:$0xff] }
 0x3a8   : > { %v3344_v44 = vmax.f32 %v3266_v31, 0.0  ;;  %v3269_v32 = vadd.f32 %v5924_v20, %v3268_v48  ;;  %v3418_v31 = vld [vmem:[%s6337_s7 + $0xa0] sm:$0xff]  ;;  %v3420_v48 = vld [vmem:[%s6337_s7 + $0xb0] sm:$0xff] }
 0x3a9   : > { %v3347_v47 = vmax.f32 %v3277_v19, 0.0  ;;  %v3422_v19 = vld [vmem:[%s6337_s7 + $0xc0] sm:$0xff]  ;;  %3921 = vmatprep.subr.bf16.mxu0 %v3920_v57 }
 0x3aa   : > { %v3375_v30 = vadd.f32 %v3374_v52, %v3344_v44  ;;  %v3345_v10 = vmax.f32 %v3269_v32, 0.0  ;;  %v3425_v44 = vld [vmem:[%s6337_s7 + $0xd8] sm:$0xff]  ;;  %v3922_v32 = vpack.c.bf16 %v3420_v48, %v3418_v31 }
 0x3ac   : > { %v3376_v61 = vadd.f32 %v3375_v30, %v3345_v10  ;;  %v3924_v30 = vpack.c.bf16 %v3425_v44, %v3423_v46  ;;  %v3424_v10 = vld [vmem:[%s6337_s7 + $0xd0] sm:$0xff]  ;;  %3923 = vmatpush1.bf16.msra.mxu0 %v3922_v32 }
 0x3ae   : > { %v3377_v42 = vadd.f32 %v3376_v61, %v3346_v40  ;;  %v3427_v40 = vld [vmem:[%s6337_s7 + $0xe8] sm:$0xff]  ;;  %v3429_v61 = vld [vmem:[%s6337_s7 + $0xf8] sm:$0xff]  ;;  %3925 = vmatprep.subr.bf16.mxu0 %v3924_v30 }
 0x3b0   : > { %v3378_v14 = vadd.f32 %v3377_v42, %v3347_v47  ;;  %v3926_v47 = vpack.c.bf16 %v3424_v10, %v3422_v19  ;;  %v3928_v42 = vpack.c.bf16 %v3429_v61, %v3427_v40 }
 0x3b2   : > { %3927 = vmatpush1.bf16.msra.mxu0 %v3926_v47 }
 0x3b3   : > { %3929 = vmatprep.subr.bf16.mxu0 %v3928_v42 }
 0x3b6   : > { %3931 = vmatpush1.bf16.msra.mxu0 %v3930_v33 }
 0x3e4   : > { %v3866_v6 = vpop.f32.mrb[24].mxu1 }
 0x3e5   : > { %v3281_v25 = vpop.f32.mrb[25].mxu1  ;;  %v3290_v8 = vadd.f32 %v3866_v6, %v5924_v20 }
 0x3e6   : > { %v3282_v17 = vadd.f32 %v5924_v20, %v3281_v25  ;;  %v3867_v26 = vpop.f32.mrb[26].mxu1 }
 0x3e7   : > { %v3284_v16 = vpop.f32.mrb[27].mxu1  ;;  %v3293_v4 = vadd.f32 %v3867_v26, %v5924_v20  ;;  %v3350_v24 = vmax.f32 %v3290_v8, 0.0 }
 0x3e8   : > { %v3348_v27 = vmax.f32 %v3282_v17, 0.0  ;;  %v3285_v37 = vadd.f32 %v5924_v20, %v3284_v16 }
 0x3e9   : > { %v3351_v23 = vmax.f32 %v3293_v4, 0.0 }
 0x3ea   : > { %v3379_v58 = vadd.f32 %v3378_v14, %v3348_v27  ;;  %v3349_v5 = vmax.f32 %v3285_v37, 0.0 }
 0x3ec   : > { %v3380_v15 = vadd.f32 %v3379_v58, %v3349_v5 }
 0x3ee   : > { %v3381_v52 = vadd.f32 %v3380_v15, %v3350_v24 }
 0x3f0   : > { %v3382_v0 = vadd.f32 %v3381_v52, %v3351_v23 }
 0x424   : > { %v3870_v63 = vpop.f32.mrb[28].mxu1 }
 0x425   : > { %v3297_v41 = vpop.f32.mrb[29].mxu1  ;;  %v3306_v22 = vadd.f32 %v3870_v63, %v5924_v20 }
 0x426   : > { %v3298_v53 = vadd.f32 %v5924_v20, %v3297_v41  ;;  %v3871_v29 = vpop.f32.mrb[30].mxu1 }
 0x427   : > { %v3300_v14 = vpop.f32.mrb[31].mxu1  ;;  %v3309_v11 = vadd.f32 %v3871_v29, %v5924_v20  ;;  %v3354_v38 = vmax.f32 %v3306_v22, 0.0 }
 0x428   : > { %v3352_v13 = vmax.f32 %v3298_v53, 0.0  ;;  %v3301_v59 = vadd.f32 %v5924_v20, %v3300_v14 }
 0x429   : > { %v3355_v50 = vmax.f32 %v3309_v11, 0.0 }
 0x42a   : > { %v3383_v1 = vadd.f32 %v3382_v0, %v3352_v13  ;;  %v3353_v12 = vmax.f32 %v3301_v59, 0.0 }
 0x42c   : > { %v3384_v7 = vadd.f32 %v3383_v1, %v3353_v12 }
 0x42e   : > { %v3385_v56 = vadd.f32 %v3384_v7, %v3354_v38 }
 0x430   : > { %v3386_v2 = vadd.f32 %v3385_v56, %v3355_v50 }
 0x45f   : > { %v3874_v34 = vpop.f32.mrb[32].mxu1 }
 0x460   : > { %v3313_v49 = vpop.f32.mrb[33].mxu1  ;;  %v3322_v60 = vadd.f32 %v3874_v34, %v5924_v20 }
 0x461   : > { %v3314_v36 = vadd.f32 %v5924_v20, %v3313_v49  ;;  %v3875_v39 = vpop.f32.mrb[34].mxu1 }
 0x462   : > { %v3316_v35 = vpop.f32.mrb[35].mxu1  ;;  %v3325_v18 = vadd.f32 %v3875_v39, %v5924_v20  ;;  %v3358_v55 = vmax.f32 %v3322_v60, 0.0 }
 0x463   : > { %v3356_v3 = vmax.f32 %v3314_v36, 0.0  ;;  %v3317_v9 = vadd.f32 %v5924_v20, %v3316_v35 }
 0x464   : > { %v3359_v25 = vmax.f32 %v3325_v18, 0.0 }
 0x465   : > { %v3387_v43 = vadd.f32 %v3386_v2, %v3356_v3  ;;  %v3357_v45 = vmax.f32 %v3317_v9, 0.0 }
 0x467   : > { %v3388_v6 = vadd.f32 %v3387_v43, %v3357_v45 }
 0x469   : > { %v3389_v17 = vadd.f32 %v3388_v6, %v3358_v55 }
 0x46b   : > { %v3390_v26 = vadd.f32 %v3389_v17, %v3359_v25 }
 0x46d   : > { %v3391_v16 = vrot.slane %v3390_v26, 4 }
 0x46f   : > { %v3392_v8 = vadd.f32 %v3391_v16, %v3390_v26 }
 0x471   : > { %v3393_v27 = vrot.slane %v3392_v8, 2 }
 0x473   : > { %v3394_v37 = vadd.f32 %v3393_v27, %v3392_v8 }
 0x475   : > { %v3395_v58 = vrot.slane %v3394_v37, 1 }
 0x477   : > { %v3396_v4 = vadd.f32 %v3395_v58, %v3394_v37 }
 0x479   : > { %v3397_v5 = vmul.f32 0.00390625, %v3396_v4 }
 0x47b   : > { %3507 = vmatmul.mubr.f32.vlgmr.msra.gmra.mrb[32].mxu0 %v3397_v5 }
 0x47c   : > { %4033 = shalt.err (!%p4030_p3)
}
 0x47d   : > { %s4034_s17 = scalar_lea.hbm %s6280_s28, 16  ;;  %s4038_s18 = scalar_lea.hbm %s6339_s9, 32 }
 0x47e   : > { %p4035_p4 = scmp.ne.s32.totalorder %s6280_s28, %s4034_s17  ;;  %p4039_p9 = scmp.lt.u32.totalorder %s6280_s28, %s6339_s9 }
 0x47f   : > { %p4040_p10 = scmp.lt.u32.totalorder %s4038_s18, %s4034_s17  ;;  %p4042_p12 = scmp.lt.u32.totalorder %s4034_s17, %s6280_s28 }
 0x480   : > { %p4036_p7 = pnand %p4035_p4, %p4190_p5 }
 0x481   : > { %p4041_p11 = por %p4040_p10, %p4039_p9 }
 0x482   : > { %p4037_p8 = pneg %p4036_p7 }
 0x483   : > { %p4043_p13 = por %p4042_p12, %p4041_p11 }
 0x485   : > { %p4044_p0 = pnand %p4043_p13, %p4037_p8 }
 0x487   : > { %4047 = shalt.err (!%p4044_p0)
}
 0x488   : > { %3932 = dma.vmem_to_hbm [thread:$0]  (%p4190_p5), %s3554_s21, 16, %s6280_s28, %s3537_s12   ;;  %v3434_v20 = vsub.s32 0, %v4296_v28  ;;  %v3430_v24 = vld [vmem:[%s6338_s8] sm:$0x3]  ;;  %v3438_v15 = vsub.s32 1, %v4296_v28  ;;  %v6749_v19 = vlaneseq }
 0x489   : > { %v4096_v23 = vmov 1966171168   ;;  %s3641_s23 = sshll.u32 %s4208_s29, 1 }
 0x48a   : > { %v3517_v52 = vunpack.c.l.s4 %v4096_v23  ;;  %v3435_v0 = vrot.slane %v3430_v24, %v3434_v20  ;;  %v3439_v51 = vrot.slane %v3430_v24, %v3438_v15  ;;  %s367_s12 = scalar_lea.vmem %s6340_s10, %s3641_s23  ;;  %vm3533_vm0 = vcmp.lt.s32.totalorder %v6749_v19, 256 }
 0x48c   : > { %v3518_v62 = vunpack.c.0.s8 %v3517_v52 }
 0x48e   : > { %v3521_v44 = vsub.s32 %v3518_v62, %v4296_v28 }
 0x54e   : > { %v3508_v31 = vpop.f32.mrb[32].mxu0 }
 0x54f   : > { %v3509_v57 = vadd.f32 %v3508_v31, %v3435_v0  ;;  %v3510_v48 = vpop.f32.mrb[33].mxu0 }
 0x550   : > { %v3511_v46 = vadd.f32 %v3510_v48, %v3439_v51 }
 0x552   : > { %v3515_v32 = vcombine.low %v3509_v57, %v3511_v46 }
 0x554   : > { %v3522_v30 = vrot.slane %v3515_v32, %v3521_v44 }
 0x556   : > { %v3529_v10 = vrot.slane %v3522_v30, %v3521_v44 }
 0x558   : > { %3535 = vst.msk [vmem:[%s367_s12] sm:$0x3] %vm3533_vm0, %v3529_v10 }
 0x559 PF: > { %p3938_p5 = scmp.ge.s32.totalorder %s4082_s16, 2  ;;  %s3568_s0 = sand.u32 1, %s4070_s13  }
 0x55a   : > { %s3569_s11 = scalar_lea.sflag [#allocation4], %s3568_s0 }
 0x55b   : > { %p3935_p1 = pnand %p3938_p5, %p4194_p6 }
 0x55d   : > { %4065 = dma.done.wait (!%p3935_p1), %s3569_s11, 16  }
 0x55e   : > { %4067 = vsyncadd (!%p3935_p1), %s3569_s11, 4294967280  ;;  %p21_p2 = scmp.ge.s32.totalorder %s4177_s19, 4   ;;  %s6750_s13 = smov %s4074_s14 }
 0x55f   : > { %s6751_s14 = smov %s4078_s15  ;;  %s6752_s15 = smov %s4188_s22 }
 0x560   : > { %s6753_s16 = smov %s4177_s19  ;;  %23 = sbr.rel (!%p21_p2) target bundleno = 6 (0x6), region = 103 }
 0x567   :  { %3580 = vsyncpa [#allocation4], 1 }
 0x568   :  { %3582 = vsyncpa [#allocation4 + $0x1], 1 }

</bundles_post_ra>
